<compile_context>
chip_gen: v5e
topology: v5e:2x2
jax: 0.10.0
libtpu: 0.0.40
codegen_flags: <defaults>
</compile_context>

<pallas_src>
import functools
import math

import jax
import jax.numpy as jnp
from jax import lax
from jax.experimental import pallas as pl
from jax.experimental.pallas import tpu as pltpu

NEG = -1e9            # finite "-inf": exp underflows to exactly 0, never NaN
LN_EPS = 1e-5
MM_DTYPE = jnp.bfloat16   # MXU operand dtype (accumulation stays f32)

ENC_VEC_ROWS = 8      # per-encoder-layer rows in the vector slab
DEC_VEC_ROWS = 12     # per-decoder-layer rows in the vector slab


# ----------------------------- in-kernel helpers (pure jnp on values) -----------------------------

def _mm(a, b):
    """(M,K) @ (K,N) with bf16 MXU operands and f32 accumulation."""
    return jnp.dot(a.astype(MM_DTYPE), b.astype(MM_DTYPE),
                   preferred_element_type=jnp.float32)


def _mm_t(a, b):
    """(M,K) @ (N,K)^T -> (M,N); rhs given transposed (MXU-native contraction)."""
    return lax.dot_general(a.astype(MM_DTYPE), b.astype(MM_DTYPE),
                           (((1,), (1,)), ((), ())),
                           preferred_element_type=jnp.float32)


def _layernorm(x, g, b):
    mean = jnp.mean(x, axis=-1, keepdims=True)
    c = x - mean
    var = jnp.mean(c * c, axis=-1, keepdims=True)
    return c * lax.rsqrt(var + LN_EPS) * g + b


def _softmax_rows(s):
    m = jnp.max(s, axis=-1, keepdims=True)
    p = jnp.exp(s - m)
    l = jnp.sum(p, axis=-1, keepdims=True)
    return p * pl.reciprocal(l, approx=True)


def _mha(q_in, kv_in, wqkv, wo, bqkv, bo, bias, nhead, fused_qkv):
    """Multi-head attention on flattened (block_B*L, D) row blocks.

    q_in: (Mq, D), kv_in: (Mk, D), wqkv: (D, 3D) bf16, wo: (D, D) bf16,
    bqkv: (1, 3D) f32, bo: (1, D) f32, bias: (Mq, Mk) additive f32 score bias
    (block-diagonal over batch elements + key padding + optional causal).
    1/sqrt(head_dim) is pre-folded into the Q columns of wqkv/bqkv host-side.
    """
    D = q_in.shape[-1]
    dh = D // nhead

    if fused_qkv:                          # self-attention: one fused (Mq, 3D) matmul
        qkv = _mm(q_in, wqkv) + bqkv
        q, k, v = qkv[:, :D], qkv[:, D:2 * D], qkv[:, 2 * D:]
    else:                                  # cross-attention: q from q_in, fused k/v from kv_in
        q = _mm(q_in, wqkv[:, :D]) + bqkv[:, :D]
        kv = _mm(kv_in, wqkv[:, D:]) + bqkv[:, D:]
        k, v = kv[:, :D], kv[:, D:]

    out = None
    # TODO(synk): dh=8 head slices at lane offsets 8/16/24 still cost XLU extracts; a
    # host-prepacked per-head block-diagonal K/V layout could fold all heads into one MXU
    # call, but at 4 heads it is next-tier after the grid/DMA fixes.
    for h in range(nhead):                 # static loop, H=4
        sl = slice(h * dh, (h + 1) * dh)
        s = _mm_t(q[:, sl], k[:, sl]) + bias           # (Mq, Mk) f32
        p = _softmax_rows(s)
        o_h = _mm(p, v[:, sl])                          # (Mq, dh)
        # head-merge + out-proj fused: concat_h(o_h) @ Wo == sum_h o_h @ Wo[h*dh:(h+1)*dh]
        c = _mm(o_h, wo[sl, :])                         # (Mq, D)
        out = c if out is None else out + c
    return out + bo


# ----------------------------- fused whole-model kernel -----------------------------

def _fused_forward_kernel(
        # per-block (batched) inputs
        src_emb_ref, tgt_emb_ref, enc_bias_ref, self_bias_ref, cross_bias_ref,
        # packed shared weights (constant index_map -> VMEM-resident)
        qkv_ref, wo_ref, w1_ref, w2_ref, vec_ref, fcw_ref,
        # output
        out_ref,
        *, nhead, n_enc, n_dec, d_model, d_ff):

    D = d_model

    def vrow(r, width):                    # (1, width) f32 slice of the vector slab
        return vec_ref[r:r + 1, 0:width]

    enc_bias = enc_bias_ref[0]             # (Ms, Ms)
    self_bias = self_bias_ref[0]           # (Mt, Mt)  causal + padding + cross-batch (host-built)
    cross_bias = cross_bias_ref[0]         # (Mt, Ms)

    # ---------------- encoder stack (post-norm, ReLU FFN) ----------------
    mem = src_emb_ref[0]                   # (Ms, D) f32
    for i in range(n_enc):
        base = i * ENC_VEC_ROWS
        a = _mha(mem, mem, qkv_ref[i], wo_ref[i],
                 vrow(base + 0, 3 * D), vrow(base + 1, D),
                 enc_bias, nhead, fused_qkv=True)
        mem = _layernorm(mem + a, vrow(base + 4, D), vrow(base + 5, D))
        h = jnp.maximum(_mm(mem, w1_ref[i]) + vrow(base + 2, d_ff), 0.0)
        h = _mm(h, w2_ref[i]) + vrow(base + 3, D)
        mem = _layernorm(mem + h, vrow(base + 6, D), vrow(base + 7, D))

    # ---------------- decoder stack ----------------
    y = tgt_emb_ref[0]                     # (Mt, D) f32
    for i in range(n_dec):
        base = n_enc * ENC_VEC_ROWS + i * DEC_VEC_ROWS
        a = _mha(y, y, qkv_ref[n_enc + i], wo_ref[n_enc + i],
                 vrow(base + 0, 3 * D), vrow(base + 1, D),
                 self_bias, nhead, fused_qkv=True)
        y = _layernorm(y + a, vrow(base + 6, D), vrow(base + 7, D))
        c = _mha(y, mem, qkv_ref[n_enc + n_dec + i], wo_ref[n_enc + n_dec + i],
                 vrow(base + 2, 3 * D), vrow(base + 3, D),
                 cross_bias, nhead, fused_qkv=False)
        y = _layernorm(y + c, vrow(base + 8, D), vrow(base + 9, D))
        h = jnp.maximum(_mm(y, w1_ref[n_enc + i]) + vrow(base + 4, d_ff), 0.0)
        h = _mm(h, w2_ref[n_enc + i]) + vrow(base + 5, D)
        y = _layernorm(y + h, vrow(base + 10, D), vrow(base + 11, D))

    # ---------------- lane-dense output projection (vocab zero-padded to 128) ----------------
    fc_row = n_enc * ENC_VEC_ROWS + n_dec * DEC_VEC_ROWS
    logits = _mm(y, fcw_ref[...]) + vrow(fc_row, 128)
    out_ref[0] = logits


# ----------------------------- host-side glue -----------------------------

def positional_encoding(max_len, d_model):
    position = jnp.arange(max_len, dtype=jnp.float32)[:, None]
    div_term = jnp.exp(jnp.arange(0, d_model, 2, dtype=jnp.float32)
                       * (-math.log(10000.0) / d_model))
    pe = jnp.zeros((max_len, d_model), jnp.float32)
    pe = pe.at[:, 0::2].set(jnp.sin(position * div_term))
    pe = pe.at[:, 1::2].set(jnp.cos(position * div_term))
    return pe  # (max_len, d_model)


def _pack_weights(params, d_model, nhead):
    """Pack all per-layer weights into 6 operands:
       4 bf16 matrix slabs (QKV, out-proj, FFN-W1, FFN-W2 stacked over layers/roles),
       1 f32 (rows, 128) vector slab for biases + LayerNorm params + fc_b,
       1 bf16 (D, 128) lane-padded fc_w."""
    enc, dec = params['enc'], params['dec']
    n_enc = enc['wqkv'].shape[0]
    n_dec = dec['wqkv'].shape[0]
    D = d_model
    V = params['fc_w'].shape[1]
    scale = 1.0 / math.sqrt(D // nhead)

    fold_w = lambda w: w.at[:, :, :D].multiply(scale)   # fold 1/sqrt(dh) into Q projection
    fold_b = lambda b: b.at[:, :, :D].multiply(scale)

    qkv_all = jnp.concatenate([fold_w(enc['wqkv']), fold_w(dec['wqkv']),
                               fold_w(dec['cwqkv'])], axis=0).astype(MM_DTYPE)
    wo_all = jnp.concatenate([enc['wo'], dec['wo'], dec['cwo']], axis=0).astype(MM_DTYPE)
    w1_all = jnp.concatenate([enc['w1'], dec['w1']], axis=0).astype(MM_DTYPE)
    w2_all = jnp.concatenate([enc['w2'], dec['w2']], axis=0).astype(MM_DTYPE)
    fc_w = jnp.zeros((D, 128), MM_DTYPE).at[:, :V].set(params['fc_w'].astype(MM_DTYPE))

    e_bqkv = fold_b(enc['bqkv'])
    d_bqkv = fold_b(dec['bqkv'])
    d_cbqkv = fold_b(dec['cbqkv'])

    rows = []

    def row(v):
        v = jnp.reshape(v, (-1,)).astype(jnp.float32)
        rows.append(jnp.zeros((128,), jnp.float32).at[:v.shape[0]].set(v))

    for i in range(n_enc):
        for v in (e_bqkv[i], enc['bo'][i], enc['b1'][i], enc['b2'][i],
                  enc['g1'][i], enc['be1'][i], enc['g2'][i], enc['be2'][i]):
            row(v)
    for i in range(n_dec):
        for v in (d_bqkv[i], dec['bo'][i], d_cbqkv[i], dec['cbo'][i],
                  dec['b1'][i], dec['b2'][i],
                  dec['g1'][i], dec['be1'][i], dec['g2'][i], dec['be2'][i],
                  dec['g3'][i], dec['be3'][i]):
            row(v)
    row(params['fc_b'])
    vec_all = jnp.stack(rows)
    r_pad = -(-vec_all.shape[0] // 8) * 8
    vec_all = jnp.zeros((r_pad, 128), jnp.float32).at[:vec_all.shape[0]].set(vec_all)

    return (qkv_all, wo_all, w1_all, w2_all, vec_all, fc_w), n_enc, n_dec


def _block_bias(key_pad, Lq, block_B, causal=None):
    """Additive attention bias per grid block, block-diagonal over batch elements:
    bias[blk, p*Lq+i, q*Lk+j] = (0 if p==q else NEG) + (NEG if key padded) (+ causal[i,j])."""
    B_pad, Lk = key_pad.shape
    nb = B_pad // block_B
    kb = jnp.where(key_pad, NEG, 0.0).astype(jnp.float32).reshape(nb, block_B, Lk)
    eye = jnp.where(jnp.eye(block_B, dtype=bool), 0.0, NEG).astype(jnp.float32)
    bias = eye[None, :, None, :, None] + kb[:, None, None, :, :]
    if causal is not None:
        bias = bias + causal[None, None, :, None, :]
    bias = jnp.broadcast_to(bias, (nb, block_B, Lq, block_B, Lk))
    return bias.reshape(nb, block_B * Lq, block_B * Lk)


def smiles_transformer_forward(params, src, tgt, src_padding_mask, tgt_padding_mask,
                               *, d_model, nhead):
    B, Ls = src.shape
    Lt = tgt.shape[1]
    V = params['fc_w'].shape[1]
    d_ff = params['enc']['w1'].shape[-1]
    Vp = 128                                        # lane-dense padded vocab (V <= 128 here)

    (qkv_all, wo_all, w1_all, w2_all, vec_all, fc_w), n_enc, n_dec = \
        _pack_weights(params, d_model, nhead)

    # ---- batch blocking: block_B elements per grid step (matmul M ~= block_B*L),
    #      but keep >= 2 grid steps when B >= 2 so v7x megacore still shards work. ----
    L = max(Ls, Lt)
    block_B = max(1, 128 // L)
    if B >= 2:
        block_B = min(block_B, (B + 1) // 2)
    block_B = max(1, min(block_B, B))
    nb = -(-B // block_B)
    B_pad = nb * block_B

    if B_pad > B:
        pad = B_pad - B
        src = jnp.concatenate([src, jnp.zeros((pad, Ls), src.dtype)], axis=0)
        tgt = jnp.concatenate([tgt, jnp.zeros((pad, Lt), tgt.dtype)], axis=0)
        src_padding_mask = jnp.concatenate(
            [src_padding_mask, jnp.zeros((pad, Ls), bool)], axis=0)
        tgt_padding_mask = jnp.concatenate(
            [tgt_padding_mask, jnp.zeros((pad, Lt), bool)], axis=0)

    # Embedding gather + positional encoding in plain JAX.
    # TODO(synk): embedding gather stays in XLA (no clean Pallas TPU gather here); dropout
    # omitted (eval-mode / deterministic semantics).
    pe = positional_encoding(max(Ls, Lt), d_model)
    scale_e = math.sqrt(d_model)
    src_embed = jnp.take(params['embedding'], src, axis=0) * scale_e + pe[None, :Ls, :]
    tgt_embed = jnp.take(params['embedding'], tgt, axis=0) * scale_e + pe[None, :Lt, :]
    src_flat = src_embed.astype(jnp.float32).reshape(nb, block_B * Ls, d_model)
    tgt_flat = tgt_embed.astype(jnp.float32).reshape(nb, block_B * Lt, d_model)

    # host-built additive score biases (causal mask hoisted out of the kernel; f32, finite -1e9)
    causal = jnp.where(jnp.triu(jnp.ones((Lt, Lt), dtype=bool), k=1),
                       jnp.float32(NEG), jnp.float32(0.0))
    enc_bias = _block_bias(src_padding_mask, Ls, block_B)
    self_bias = _block_bias(tgt_padding_mask, Lt, block_B, causal=causal)
    cross_bias = _block_bias(src_padding_mask, Lt, block_B)

    batched = [src_flat, tgt_flat, enc_bias, self_bias, cross_bias]
    shared = [qkv_all, wo_all, w1_all, w2_all, vec_all, fc_w]

    def batched_spec(x):
        tail = (0,) * (x.ndim - 1)
        return pl.BlockSpec((1,) + x.shape[1:], lambda b, t=tail: (b,) + t)

    def shared_spec(x):
        zeros = (0,) * x.ndim               # constant index_map -> VMEM-resident across steps
        return pl.BlockSpec(x.shape, lambda b, z=zeros: z)

    out = pl.pallas_call(
        functools.partial(_fused_forward_kernel, nhead=nhead, n_enc=n_enc, n_dec=n_dec,
                          d_model=d_model, d_ff=d_ff),
        out_shape=jax.ShapeDtypeStruct((nb, block_B * Lt, Vp), jnp.float32),
        grid=(nb,),
        in_specs=[batched_spec(a) for a in batched] + [shared_spec(a) for a in shared],
        out_specs=pl.BlockSpec((1, block_B * Lt, Vp), lambda b: (b, 0, 0)),
        compiler_params=pltpu.CompilerParams(dimension_semantics=("parallel",)),
    )(*batched, *shared)

    return out.reshape(B_pad, Lt, Vp)[:B, :, :V]    # (B, Lt, vocab)


# ----------------------------- deterministic params -----------------------------

def init_params(key, vocab_size, d_model, nhead, n_enc, n_dec, d_ff):
    keys = iter(jax.random.split(key, 64))
    u = lambda shape: jax.random.uniform(next(keys), shape, jnp.float32, -0.1, 0.1)
    z = lambda shape: jnp.zeros(shape, jnp.float32)
    o = lambda shape: jnp.ones(shape, jnp.float32)

    enc = dict(
        wqkv=u((n_enc, d_model, 3 * d_model)), bqkv=z((n_enc, 1, 3 * d_model)),
        wo=u((n_enc, d_model, d_model)),       bo=z((n_enc, 1, d_model)),
        w1=u((n_enc, d_model, d_ff)),          b1=z((n_enc, 1, d_ff)),
        w2=u((n_enc, d_ff, d_model)),          b2=z((n_enc, 1, d_model)),
        g1=o((n_enc, 1, d_model)), be1=z((n_enc, 1, d_model)),
        g2=o((n_enc, 1, d_model)), be2=z((n_enc, 1, d_model)),
    )
    dec = dict(
        wqkv=u((n_dec, d_model, 3 * d_model)),  bqkv=z((n_dec, 1, 3 * d_model)),
        wo=u((n_dec, d_model, d_model)),        bo=z((n_dec, 1, d_model)),
        cwqkv=u((n_dec, d_model, 3 * d_model)), cbqkv=z((n_dec, 1, 3 * d_model)),
        cwo=u((n_dec, d_model, d_model)),       cbo=z((n_dec, 1, d_model)),
        w1=u((n_dec, d_model, d_ff)),           b1=z((n_dec, 1, d_ff)),
        w2=u((n_dec, d_ff, d_model)),           b2=z((n_dec, 1, d_model)),
        g1=o((n_dec, 1, d_model)), be1=z((n_dec, 1, d_model)),
        g2=o((n_dec, 1, d_model)), be2=z((n_dec, 1, d_model)),
        g3=o((n_dec, 1, d_model)), be3=z((n_dec, 1, d_model)),
    )
    return dict(
        embedding=u((vocab_size, d_model)),
        enc=enc, dec=dec,
        fc_w=u((d_model, vocab_size)),
        fc_b=jnp.zeros((vocab_size,), jnp.float32),
    )


# ----------------------------- main -----------------------------

if __name__ == "__main__":
    vocab_size = 50
    d_model = 32
    nhead = 4
    num_encoder_layers = 2
    num_decoder_layers = 2
    dim_feedforward = 64
    batch = 2
    seq = 8

    root = jax.random.PRNGKey(0)
    kp, ks, kt = jax.random.split(root, 3)
    params = init_params(kp, vocab_size, d_model, nhead,
                         num_encoder_layers, num_decoder_layers, dim_feedforward)

    src = jax.random.randint(ks, (batch, seq), 0, vocab_size, dtype=jnp.int32)
    tgt = jax.random.randint(kt, (batch, seq), 0, vocab_size, dtype=jnp.int32)
    # padding masks: True = padded/ignored (at least one valid key per row)
    src_padding_mask = jnp.array(
        [[False] * seq, [False] * (seq - 2) + [True] * 2], dtype=bool)
    tgt_padding_mask = jnp.array(
        [[False] * (seq - 1) + [True], [False] * seq], dtype=bool)

    fwd = jax.jit(functools.partial(smiles_transformer_forward,
                                    d_model=d_model, nhead=nhead))
    out = fwd(params, src, tgt, src_padding_mask, tgt_padding_mask)
    out = jax.block_until_ready(out)
    assert out.shape == (batch, seq, vocab_size), out.shape
    assert bool(jnp.all(jnp.isfinite(out)))
    print("KERNEL_OK")
</pallas_src>

<mosaic_0001>
module attributes {stable_mosaic.version = 11 : i64} {
  func.func @_fused_forward_kernel(%arg0: i32, %arg1: memref<1x8x32xf32, #tpu.memory_space<vmem>>, %arg2: memref<1x8x32xf32, #tpu.memory_space<vmem>>, %arg3: memref<1x8x8xf32, #tpu.memory_space<vmem>>, %arg4: memref<1x8x8xf32, #tpu.memory_space<vmem>>, %arg5: memref<1x8x8xf32, #tpu.memory_space<vmem>>, %arg6: memref<6x32x96xbf16, #tpu.memory_space<vmem>>, %arg7: memref<6x32x32xbf16, #tpu.memory_space<vmem>>, %arg8: memref<4x32x64xbf16, #tpu.memory_space<vmem>>, %arg9: memref<4x64x32xbf16, #tpu.memory_space<vmem>>, %arg10: memref<48x128xf32, #tpu.memory_space<vmem>>, %arg11: memref<32x128xbf16, #tpu.memory_space<vmem>>, %arg12: memref<1x8x128xf32, #tpu.memory_space<vmem>>) attributes {dimension_semantics = [#tpu.dimension_semantics<parallel>], iteration_bounds = array<i64: 2>, scalar_prefetch = 0 : i64, scratch_operands = 0 : i64, tpu.core_type = #tpu.core_type<tc>, window_params = [{transform_indices = @transform_0, window_bounds = array<i64: 1, 8, 32>}, {transform_indices = @transform_1, window_bounds = array<i64: 1, 8, 32>}, {transform_indices = @transform_2, window_bounds = array<i64: 1, 8, 8>}, {transform_indices = @transform_3, window_bounds = array<i64: 1, 8, 8>}, {transform_indices = @transform_4, window_bounds = array<i64: 1, 8, 8>}, {pipeline_mode = #tpu.pipeline_mode<synchronous>, transform_indices = @transform_5, window_bounds = array<i64: 6, 32, 96>}, {pipeline_mode = #tpu.pipeline_mode<synchronous>, transform_indices = @transform_6, window_bounds = array<i64: 6, 32, 32>}, {pipeline_mode = #tpu.pipeline_mode<synchronous>, transform_indices = @transform_7, window_bounds = array<i64: 4, 32, 64>}, {pipeline_mode = #tpu.pipeline_mode<synchronous>, transform_indices = @transform_8, window_bounds = array<i64: 4, 64, 32>}, {pipeline_mode = #tpu.pipeline_mode<synchronous>, transform_indices = @transform_9, window_bounds = array<i64: 48, 128>}, {pipeline_mode = #tpu.pipeline_mode<synchronous>, transform_indices = @transform_10, window_bounds = array<i64: 32, 128>}, {transform_indices = @transform_11, window_bounds = array<i64: 1, 8, 128>}]} {
    %c0 = arith.constant 0 : index
    %c0_0 = arith.constant 0 : index
    %c0_1 = arith.constant 0 : index
    %0 = vector.load %arg3[%c0, %c0_0, %c0_1] : memref<1x8x8xf32, #tpu.memory_space<vmem>>, vector<1x8x8xf32>
    %1 = vector.shape_cast %0 : vector<1x8x8xf32> to vector<8x8xf32>
    %c0_2 = arith.constant 0 : index
    %c0_3 = arith.constant 0 : index
    %c0_4 = arith.constant 0 : index
    %2 = vector.load %arg4[%c0_2, %c0_3, %c0_4] : memref<1x8x8xf32, #tpu.memory_space<vmem>>, vector<1x8x8xf32>
    %3 = vector.shape_cast %2 : vector<1x8x8xf32> to vector<8x8xf32>
    %c0_5 = arith.constant 0 : index
    %c0_6 = arith.constant 0 : index
    %c0_7 = arith.constant 0 : index
    %4 = vector.load %arg5[%c0_5, %c0_6, %c0_7] : memref<1x8x8xf32, #tpu.memory_space<vmem>>, vector<1x8x8xf32>
    %5 = vector.shape_cast %4 : vector<1x8x8xf32> to vector<8x8xf32>
    %c0_8 = arith.constant 0 : index
    %c0_9 = arith.constant 0 : index
    %c0_10 = arith.constant 0 : index
    %6 = vector.load %arg1[%c0_8, %c0_9, %c0_10] : memref<1x8x32xf32, #tpu.memory_space<vmem>>, vector<1x8x32xf32>
    %7 = vector.shape_cast %6 : vector<1x8x32xf32> to vector<8x32xf32>
    %c0_11 = arith.constant 0 : index
    %c0_12 = arith.constant 0 : index
    %c0_13 = arith.constant 0 : index
    %8 = vector.load %arg6[%c0_11, %c0_12, %c0_13] : memref<6x32x96xbf16, #tpu.memory_space<vmem>>, vector<1x32x96xbf16>
    %9 = vector.shape_cast %8 : vector<1x32x96xbf16> to vector<32x96xbf16>
    %c0_14 = arith.constant 0 : index
    %c0_15 = arith.constant 0 : index
    %c0_16 = arith.constant 0 : index
    %10 = vector.load %arg7[%c0_14, %c0_15, %c0_16] : memref<6x32x32xbf16, #tpu.memory_space<vmem>>, vector<1x32x32xbf16>
    %11 = vector.shape_cast %10 : vector<1x32x32xbf16> to vector<32x32xbf16>
    %c0_17 = arith.constant 0 : index
    %c0_18 = arith.constant 0 : index
    %12 = vector.load %arg10[%c0_17, %c0_18] : memref<48x128xf32, #tpu.memory_space<vmem>>, vector<1x96xf32>
    %c1 = arith.constant 1 : index
    %c0_19 = arith.constant 0 : index
    %13 = vector.load %arg10[%c1, %c0_19] : memref<48x128xf32, #tpu.memory_space<vmem>>, vector<1x32xf32>
    %14 = arith.truncf %7 : vector<8x32xf32> to vector<8x32xbf16>
    %cst = arith.constant dense<0.000000e+00> : vector<8x96xf32>
    %15 = tpu.matmul %14, %9, %cst {dimension_numbers = #tpu.dot_dimension_numbers<[1], [0], [0], [1], [0, 0, 1, 1], [], []>} : vector<8x32xbf16>, vector<32x96xbf16>, vector<8x96xf32> -> vector<8x96xf32>
    %16 = vector.broadcast %12 : vector<1x96xf32> to vector<8x96xf32>
    %17 = arith.addf %15, %16 : vector<8x96xf32>
    %18 = vector.extract_strided_slice %17 {offsets = [0, 0], sizes = [8, 32], strides = [1, 1]} : vector<8x96xf32> to vector<8x32xf32>
    %19 = vector.extract_strided_slice %17 {offsets = [0, 32], sizes = [8, 32], strides = [1, 1]} : vector<8x96xf32> to vector<8x32xf32>
    %20 = vector.extract_strided_slice %17 {offsets = [0, 64], sizes = [8, 32], strides = [1, 1]} : vector<8x96xf32> to vector<8x32xf32>
    %21 = vector.extract_strided_slice %18 {offsets = [0, 0], sizes = [8, 8], strides = [1, 1]} : vector<8x32xf32> to vector<8x8xf32>
    %22 = vector.extract_strided_slice %19 {offsets = [0, 0], sizes = [8, 8], strides = [1, 1]} : vector<8x32xf32> to vector<8x8xf32>
    %23 = arith.truncf %21 : vector<8x8xf32> to vector<8x8xbf16>
    %24 = arith.truncf %22 : vector<8x8xf32> to vector<8x8xbf16>
    %cst_20 = arith.constant dense<0.000000e+00> : vector<8x8xf32>
    %25 = tpu.matmul %23, %24, %cst_20 {dimension_numbers = #tpu.dot_dimension_numbers<[1], [1], [0], [0], [0, 0, 1, 0], [], []>} : vector<8x8xbf16>, vector<8x8xbf16>, vector<8x8xf32> -> vector<8x8xf32>
    %26 = arith.addf %25, %1 : vector<8x8xf32>
    %cst_21 = arith.constant dense<0xFF800000> : vector<8xf32>
    %27 = vector.multi_reduction <maximumf>, %26, %cst_21 [1] : vector<8x8xf32> to vector<8xf32>
    %28 = vector.shape_cast %27 : vector<8xf32> to vector<8x1xf32>
    %29 = vector.broadcast %28 : vector<8x1xf32> to vector<8x8xf32>
    %30 = arith.subf %26, %29 : vector<8x8xf32>
    %31 = math.exp %30 : vector<8x8xf32>
    %cst_22 = arith.constant dense<0.000000e+00> : vector<8xf32>
    %32 = vector.multi_reduction <add>, %31, %cst_22 [1] : vector<8x8xf32> to vector<8xf32>
    %33 = vector.shape_cast %32 : vector<8xf32> to vector<8x1xf32>
    %34 = tpu.reciprocal %33 {approx = true} : vector<8x1xf32> -> vector<8x1xf32>
    %35 = vector.broadcast %34 : vector<8x1xf32> to vector<8x8xf32>
    %36 = arith.mulf %31, %35 : vector<8x8xf32>
    %37 = vector.extract_strided_slice %20 {offsets = [0, 0], sizes = [8, 8], strides = [1, 1]} : vector<8x32xf32> to vector<8x8xf32>
    %38 = arith.truncf %36 : vector<8x8xf32> to vector<8x8xbf16>
    %39 = arith.truncf %37 : vector<8x8xf32> to vector<8x8xbf16>
    %cst_23 = arith.constant dense<0.000000e+00> : vector<8x8xf32>
    %40 = tpu.matmul %38, %39, %cst_23 {dimension_numbers = #tpu.dot_dimension_numbers<[1], [0], [0], [1], [0, 0, 1, 1], [], []>} : vector<8x8xbf16>, vector<8x8xbf16>, vector<8x8xf32> -> vector<8x8xf32>
    %41 = vector.extract_strided_slice %11 {offsets = [0, 0], sizes = [8, 32], strides = [1, 1]} : vector<32x32xbf16> to vector<8x32xbf16>
    %42 = arith.truncf %40 : vector<8x8xf32> to vector<8x8xbf16>
    %cst_24 = arith.constant dense<0.000000e+00> : vector<8x32xf32>
    %43 = tpu.matmul %42, %41, %cst_24 {dimension_numbers = #tpu.dot_dimension_numbers<[1], [0], [0], [1], [0, 0, 1, 1], [], []>} : vector<8x8xbf16>, vector<8x32xbf16>, vector<8x32xf32> -> vector<8x32xf32>
    %44 = vector.extract_strided_slice %18 {offsets = [0, 8], sizes = [8, 8], strides = [1, 1]} : vector<8x32xf32> to vector<8x8xf32>
    %45 = vector.extract_strided_slice %19 {offsets = [0, 8], sizes = [8, 8], strides = [1, 1]} : vector<8x32xf32> to vector<8x8xf32>
    %46 = arith.truncf %44 : vector<8x8xf32> to vector<8x8xbf16>
    %47 = arith.truncf %45 : vector<8x8xf32> to vector<8x8xbf16>
    %cst_25 = arith.constant dense<0.000000e+00> : vector<8x8xf32>
    %48 = tpu.matmul %46, %47, %cst_25 {dimension_numbers = #tpu.dot_dimension_numbers<[1], [1], [0], [0], [0, 0, 1, 0], [], []>} : vector<8x8xbf16>, vector<8x8xbf16>, vector<8x8xf32> -> vector<8x8xf32>
    %49 = arith.addf %48, %1 : vector<8x8xf32>
    %cst_26 = arith.constant dense<0xFF800000> : vector<8xf32>
    %50 = vector.multi_reduction <maximumf>, %49, %cst_26 [1] : vector<8x8xf32> to vector<8xf32>
    %51 = vector.shape_cast %50 : vector<8xf32> to vector<8x1xf32>
    %52 = vector.broadcast %51 : vector<8x1xf32> to vector<8x8xf32>
    %53 = arith.subf %49, %52 : vector<8x8xf32>
    %54 = math.exp %53 : vector<8x8xf32>
    %cst_27 = arith.constant dense<0.000000e+00> : vector<8xf32>
    %55 = vector.multi_reduction <add>, %54, %cst_27 [1] : vector<8x8xf32> to vector<8xf32>
    %56 = vector.shape_cast %55 : vector<8xf32> to vector<8x1xf32>
    %57 = tpu.reciprocal %56 {approx = true} : vector<8x1xf32> -> vector<8x1xf32>
    %58 = vector.broadcast %57 : vector<8x1xf32> to vector<8x8xf32>
    %59 = arith.mulf %54, %58 : vector<8x8xf32>
    %60 = vector.extract_strided_slice %20 {offsets = [0, 8], sizes = [8, 8], strides = [1, 1]} : vector<8x32xf32> to vector<8x8xf32>
    %61 = arith.truncf %59 : vector<8x8xf32> to vector<8x8xbf16>
    %62 = arith.truncf %60 : vector<8x8xf32> to vector<8x8xbf16>
    %cst_28 = arith.constant dense<0.000000e+00> : vector<8x8xf32>
    %63 = tpu.matmul %61, %62, %cst_28 {dimension_numbers = #tpu.dot_dimension_numbers<[1], [0], [0], [1], [0, 0, 1, 1], [], []>} : vector<8x8xbf16>, vector<8x8xbf16>, vector<8x8xf32> -> vector<8x8xf32>
    %64 = vector.extract_strided_slice %11 {offsets = [8, 0], sizes = [8, 32], strides = [1, 1]} : vector<32x32xbf16> to vector<8x32xbf16>
    %65 = arith.truncf %63 : vector<8x8xf32> to vector<8x8xbf16>
    %cst_29 = arith.constant dense<0.000000e+00> : vector<8x32xf32>
    %66 = tpu.matmul %65, %64, %cst_29 {dimension_numbers = #tpu.dot_dimension_numbers<[1], [0], [0], [1], [0, 0, 1, 1], [], []>} : vector<8x8xbf16>, vector<8x32xbf16>, vector<8x32xf32> -> vector<8x32xf32>
    %67 = arith.addf %43, %66 : vector<8x32xf32>
    %68 = vector.extract_strided_slice %18 {offsets = [0, 16], sizes = [8, 8], strides = [1, 1]} : vector<8x32xf32> to vector<8x8xf32>
    %69 = vector.extract_strided_slice %19 {offsets = [0, 16], sizes = [8, 8], strides = [1, 1]} : vector<8x32xf32> to vector<8x8xf32>
    %70 = arith.truncf %68 : vector<8x8xf32> to vector<8x8xbf16>
    %71 = arith.truncf %69 : vector<8x8xf32> to vector<8x8xbf16>
    %cst_30 = arith.constant dense<0.000000e+00> : vector<8x8xf32>
    %72 = tpu.matmul %70, %71, %cst_30 {dimension_numbers = #tpu.dot_dimension_numbers<[1], [1], [0], [0], [0, 0, 1, 0], [], []>} : vector<8x8xbf16>, vector<8x8xbf16>, vector<8x8xf32> -> vector<8x8xf32>
    %73 = arith.addf %72, %1 : vector<8x8xf32>
    %cst_31 = arith.constant dense<0xFF800000> : vector<8xf32>
    %74 = vector.multi_reduction <maximumf>, %73, %cst_31 [1] : vector<8x8xf32> to vector<8xf32>
    %75 = vector.shape_cast %74 : vector<8xf32> to vector<8x1xf32>
    %76 = vector.broadcast %75 : vector<8x1xf32> to vector<8x8xf32>
    %77 = arith.subf %73, %76 : vector<8x8xf32>
    %78 = math.exp %77 : vector<8x8xf32>
    %cst_32 = arith.constant dense<0.000000e+00> : vector<8xf32>
    %79 = vector.multi_reduction <add>, %78, %cst_32 [1] : vector<8x8xf32> to vector<8xf32>
    %80 = vector.shape_cast %79 : vector<8xf32> to vector<8x1xf32>
    %81 = tpu.reciprocal %80 {approx = true} : vector<8x1xf32> -> vector<8x1xf32>
    %82 = vector.broadcast %81 : vector<8x1xf32> to vector<8x8xf32>
    %83 = arith.mulf %78, %82 : vector<8x8xf32>
    %84 = vector.extract_strided_slice %20 {offsets = [0, 16], sizes = [8, 8], strides = [1, 1]} : vector<8x32xf32> to vector<8x8xf32>
    %85 = arith.truncf %83 : vector<8x8xf32> to vector<8x8xbf16>
    %86 = arith.truncf %84 : vector<8x8xf32> to vector<8x8xbf16>
    %cst_33 = arith.constant dense<0.000000e+00> : vector<8x8xf32>
    %87 = tpu.matmul %85, %86, %cst_33 {dimension_numbers = #tpu.dot_dimension_numbers<[1], [0], [0], [1], [0, 0, 1, 1], [], []>} : vector<8x8xbf16>, vector<8x8xbf16>, vector<8x8xf32> -> vector<8x8xf32>
    %88 = vector.extract_strided_slice %11 {offsets = [16, 0], sizes = [8, 32], strides = [1, 1]} : vector<32x32xbf16> to vector<8x32xbf16>
    %89 = arith.truncf %87 : vector<8x8xf32> to vector<8x8xbf16>
    %cst_34 = arith.constant dense<0.000000e+00> : vector<8x32xf32>
    %90 = tpu.matmul %89, %88, %cst_34 {dimension_numbers = #tpu.dot_dimension_numbers<[1], [0], [0], [1], [0, 0, 1, 1], [], []>} : vector<8x8xbf16>, vector<8x32xbf16>, vector<8x32xf32> -> vector<8x32xf32>
    %91 = arith.addf %67, %90 : vector<8x32xf32>
    %92 = vector.extract_strided_slice %18 {offsets = [0, 24], sizes = [8, 8], strides = [1, 1]} : vector<8x32xf32> to vector<8x8xf32>
    %93 = vector.extract_strided_slice %19 {offsets = [0, 24], sizes = [8, 8], strides = [1, 1]} : vector<8x32xf32> to vector<8x8xf32>
    %94 = arith.truncf %92 : vector<8x8xf32> to vector<8x8xbf16>
    %95 = arith.truncf %93 : vector<8x8xf32> to vector<8x8xbf16>
    %cst_35 = arith.constant dense<0.000000e+00> : vector<8x8xf32>
    %96 = tpu.matmul %94, %95, %cst_35 {dimension_numbers = #tpu.dot_dimension_numbers<[1], [1], [0], [0], [0, 0, 1, 0], [], []>} : vector<8x8xbf16>, vector<8x8xbf16>, vector<8x8xf32> -> vector<8x8xf32>
    %97 = arith.addf %96, %1 : vector<8x8xf32>
    %cst_36 = arith.constant dense<0xFF800000> : vector<8xf32>
    %98 = vector.multi_reduction <maximumf>, %97, %cst_36 [1] : vector<8x8xf32> to vector<8xf32>
    %99 = vector.shape_cast %98 : vector<8xf32> to vector<8x1xf32>
    %100 = vector.broadcast %99 : vector<8x1xf32> to vector<8x8xf32>
    %101 = arith.subf %97, %100 : vector<8x8xf32>
    %102 = math.exp %101 : vector<8x8xf32>
    %cst_37 = arith.constant dense<0.000000e+00> : vector<8xf32>
    %103 = vector.multi_reduction <add>, %102, %cst_37 [1] : vector<8x8xf32> to vector<8xf32>
    %104 = vector.shape_cast %103 : vector<8xf32> to vector<8x1xf32>
    %105 = tpu.reciprocal %104 {approx = true} : vector<8x1xf32> -> vector<8x1xf32>
    %106 = vector.broadcast %105 : vector<8x1xf32> to vector<8x8xf32>
    %107 = arith.mulf %102, %106 : vector<8x8xf32>
    %108 = vector.extract_strided_slice %20 {offsets = [0, 24], sizes = [8, 8], strides = [1, 1]} : vector<8x32xf32> to vector<8x8xf32>
    %109 = arith.truncf %107 : vector<8x8xf32> to vector<8x8xbf16>
    %110 = arith.truncf %108 : vector<8x8xf32> to vector<8x8xbf16>
    %cst_38 = arith.constant dense<0.000000e+00> : vector<8x8xf32>
    %111 = tpu.matmul %109, %110, %cst_38 {dimension_numbers = #tpu.dot_dimension_numbers<[1], [0], [0], [1], [0, 0, 1, 1], [], []>} : vector<8x8xbf16>, vector<8x8xbf16>, vector<8x8xf32> -> vector<8x8xf32>
    %112 = vector.extract_strided_slice %11 {offsets = [24, 0], sizes = [8, 32], strides = [1, 1]} : vector<32x32xbf16> to vector<8x32xbf16>
    %113 = arith.truncf %111 : vector<8x8xf32> to vector<8x8xbf16>
    %cst_39 = arith.constant dense<0.000000e+00> : vector<8x32xf32>
    %114 = tpu.matmul %113, %112, %cst_39 {dimension_numbers = #tpu.dot_dimension_numbers<[1], [0], [0], [1], [0, 0, 1, 1], [], []>} : vector<8x8xbf16>, vector<8x32xbf16>, vector<8x32xf32> -> vector<8x32xf32>
    %115 = arith.addf %91, %114 : vector<8x32xf32>
    %116 = vector.broadcast %13 : vector<1x32xf32> to vector<8x32xf32>
    %117 = arith.addf %115, %116 : vector<8x32xf32>
    %118 = arith.addf %7, %117 : vector<8x32xf32>
    %c4 = arith.constant 4 : index
    %c0_40 = arith.constant 0 : index
    %119 = vector.load %arg10[%c4, %c0_40] : memref<48x128xf32, #tpu.memory_space<vmem>>, vector<1x32xf32>
    %c5 = arith.constant 5 : index
    %c0_41 = arith.constant 0 : index
    %120 = vector.load %arg10[%c5, %c0_41] : memref<48x128xf32, #tpu.memory_space<vmem>>, vector<1x32xf32>
    %cst_42 = arith.constant dense<0.000000e+00> : vector<8xf32>
    %121 = vector.multi_reduction <add>, %118, %cst_42 [1] : vector<8x32xf32> to vector<8xf32>
    %122 = vector.shape_cast %121 : vector<8xf32> to vector<8x1xf32>
    %cst_43 = arith.constant 3.200000e+01 : f32
    %123 = vector.broadcast %cst_43 : f32 to vector<8x1xf32>
    %124 = arith.divf %122, %123 : vector<8x1xf32>
    %125 = vector.broadcast %124 : vector<8x1xf32> to vector<8x32xf32>
    %126 = arith.subf %118, %125 : vector<8x32xf32>
    %127 = arith.mulf %126, %126 : vector<8x32xf32>
    %cst_44 = arith.constant dense<0.000000e+00> : vector<8xf32>
    %128 = vector.multi_reduction <add>, %127, %cst_44 [1] : vector<8x32xf32> to vector<8xf32>
    %129 = vector.shape_cast %128 : vector<8xf32> to vector<8x1xf32>
    %cst_45 = arith.constant 3.200000e+01 : f32
    %130 = vector.broadcast %cst_45 : f32 to vector<8x1xf32>
    %131 = arith.divf %129, %130 : vector<8x1xf32>
    %cst_46 = arith.constant 9.99999974E-6 : f32
    %132 = vector.broadcast %cst_46 : f32 to vector<8x1xf32>
    %133 = arith.addf %131, %132 : vector<8x1xf32>
    %134 = math.rsqrt %133 : vector<8x1xf32>
    %135 = vector.broadcast %134 : vector<8x1xf32> to vector<8x32xf32>
    %136 = arith.mulf %126, %135 : vector<8x32xf32>
    %137 = vector.broadcast %119 : vector<1x32xf32> to vector<8x32xf32>
    %138 = arith.mulf %136, %137 : vector<8x32xf32>
    %139 = vector.broadcast %120 : vector<1x32xf32> to vector<8x32xf32>
    %140 = arith.addf %138, %139 : vector<8x32xf32>
    %c0_47 = arith.constant 0 : index
    %c0_48 = arith.constant 0 : index
    %c0_49 = arith.constant 0 : index
    %141 = vector.load %arg8[%c0_47, %c0_48, %c0_49] : memref<4x32x64xbf16, #tpu.memory_space<vmem>>, vector<1x32x64xbf16>
    %142 = vector.shape_cast %141 : vector<1x32x64xbf16> to vector<32x64xbf16>
    %143 = arith.truncf %140 : vector<8x32xf32> to vector<8x32xbf16>
    %cst_50 = arith.constant dense<0.000000e+00> : vector<8x64xf32>
    %144 = tpu.matmul %143, %142, %cst_50 {dimension_numbers = #tpu.dot_dimension_numbers<[1], [0], [0], [1], [0, 0, 1, 1], [], []>} : vector<8x32xbf16>, vector<32x64xbf16>, vector<8x64xf32> -> vector<8x64xf32>
    %c2 = arith.constant 2 : index
    %c0_51 = arith.constant 0 : index
    %145 = vector.load %arg10[%c2, %c0_51] : memref<48x128xf32, #tpu.memory_space<vmem>>, vector<1x64xf32>
    %146 = vector.broadcast %145 : vector<1x64xf32> to vector<8x64xf32>
    %147 = arith.addf %144, %146 : vector<8x64xf32>
    %cst_52 = arith.constant 0.000000e+00 : f32
    %148 = vector.broadcast %cst_52 : f32 to vector<8x64xf32>
    %149 = arith.maximumf %147, %148 : vector<8x64xf32>
    %c0_53 = arith.constant 0 : index
    %c0_54 = arith.constant 0 : index
    %c0_55 = arith.constant 0 : index
    %150 = vector.load %arg9[%c0_53, %c0_54, %c0_55] : memref<4x64x32xbf16, #tpu.memory_space<vmem>>, vector<1x64x32xbf16>
    %151 = vector.shape_cast %150 : vector<1x64x32xbf16> to vector<64x32xbf16>
    %152 = arith.truncf %149 : vector<8x64xf32> to vector<8x64xbf16>
    %cst_56 = arith.constant dense<0.000000e+00> : vector<8x32xf32>
    %153 = tpu.matmul %152, %151, %cst_56 {dimension_numbers = #tpu.dot_dimension_numbers<[1], [0], [0], [1], [0, 0, 1, 1], [], []>} : vector<8x64xbf16>, vector<64x32xbf16>, vector<8x32xf32> -> vector<8x32xf32>
    %c3 = arith.constant 3 : index
    %c0_57 = arith.constant 0 : index
    %154 = vector.load %arg10[%c3, %c0_57] : memref<48x128xf32, #tpu.memory_space<vmem>>, vector<1x32xf32>
    %155 = vector.broadcast %154 : vector<1x32xf32> to vector<8x32xf32>
    %156 = arith.addf %153, %155 : vector<8x32xf32>
    %157 = arith.addf %140, %156 : vector<8x32xf32>
    %c6 = arith.constant 6 : index
    %c0_58 = arith.constant 0 : index
    %158 = vector.load %arg10[%c6, %c0_58] : memref<48x128xf32, #tpu.memory_space<vmem>>, vector<1x32xf32>
    %c7 = arith.constant 7 : index
    %c0_59 = arith.constant 0 : index
    %159 = vector.load %arg10[%c7, %c0_59] : memref<48x128xf32, #tpu.memory_space<vmem>>, vector<1x32xf32>
    %cst_60 = arith.constant dense<0.000000e+00> : vector<8xf32>
    %160 = vector.multi_reduction <add>, %157, %cst_60 [1] : vector<8x32xf32> to vector<8xf32>
    %161 = vector.shape_cast %160 : vector<8xf32> to vector<8x1xf32>
    %cst_61 = arith.constant 3.200000e+01 : f32
    %162 = vector.broadcast %cst_61 : f32 to vector<8x1xf32>
    %163 = arith.divf %161, %162 : vector<8x1xf32>
    %164 = vector.broadcast %163 : vector<8x1xf32> to vector<8x32xf32>
    %165 = arith.subf %157, %164 : vector<8x32xf32>
    %166 = arith.mulf %165, %165 : vector<8x32xf32>
    %cst_62 = arith.constant dense<0.000000e+00> : vector<8xf32>
    %167 = vector.multi_reduction <add>, %166, %cst_62 [1] : vector<8x32xf32> to vector<8xf32>
    %168 = vector.shape_cast %167 : vector<8xf32> to vector<8x1xf32>
    %cst_63 = arith.constant 3.200000e+01 : f32
    %169 = vector.broadcast %cst_63 : f32 to vector<8x1xf32>
    %170 = arith.divf %168, %169 : vector<8x1xf32>
    %cst_64 = arith.constant 9.99999974E-6 : f32
    %171 = vector.broadcast %cst_64 : f32 to vector<8x1xf32>
    %172 = arith.addf %170, %171 : vector<8x1xf32>
    %173 = math.rsqrt %172 : vector<8x1xf32>
    %174 = vector.broadcast %173 : vector<8x1xf32> to vector<8x32xf32>
    %175 = arith.mulf %165, %174 : vector<8x32xf32>
    %176 = vector.broadcast %158 : vector<1x32xf32> to vector<8x32xf32>
    %177 = arith.mulf %175, %176 : vector<8x32xf32>
    %178 = vector.broadcast %159 : vector<1x32xf32> to vector<8x32xf32>
    %179 = arith.addf %177, %178 : vector<8x32xf32>
    %c1_65 = arith.constant 1 : index
    %c0_66 = arith.constant 0 : index
    %c0_67 = arith.constant 0 : index
    %180 = vector.load %arg6[%c1_65, %c0_66, %c0_67] : memref<6x32x96xbf16, #tpu.memory_space<vmem>>, vector<1x32x96xbf16>
    %181 = vector.shape_cast %180 : vector<1x32x96xbf16> to vector<32x96xbf16>
    %c1_68 = arith.constant 1 : index
    %c0_69 = arith.constant 0 : index
    %c0_70 = arith.constant 0 : index
    %182 = vector.load %arg7[%c1_68, %c0_69, %c0_70] : memref<6x32x32xbf16, #tpu.memory_space<vmem>>, vector<1x32x32xbf16>
    %183 = vector.shape_cast %182 : vector<1x32x32xbf16> to vector<32x32xbf16>
    %c8 = arith.constant 8 : index
    %c0_71 = arith.constant 0 : index
    %184 = vector.load %arg10[%c8, %c0_71] : memref<48x128xf32, #tpu.memory_space<vmem>>, vector<1x96xf32>
    %c9 = arith.constant 9 : index
    %c0_72 = arith.constant 0 : index
    %185 = vector.load %arg10[%c9, %c0_72] : memref<48x128xf32, #tpu.memory_space<vmem>>, vector<1x32xf32>
    %186 = arith.truncf %179 : vector<8x32xf32> to vector<8x32xbf16>
    %cst_73 = arith.constant dense<0.000000e+00> : vector<8x96xf32>
    %187 = tpu.matmul %186, %181, %cst_73 {dimension_numbers = #tpu.dot_dimension_numbers<[1], [0], [0], [1], [0, 0, 1, 1], [], []>} : vector<8x32xbf16>, vector<32x96xbf16>, vector<8x96xf32> -> vector<8x96xf32>
    %188 = vector.broadcast %184 : vector<1x96xf32> to vector<8x96xf32>
    %189 = arith.addf %187, %188 : vector<8x96xf32>
    %190 = vector.extract_strided_slice %189 {offsets = [0, 0], sizes = [8, 32], strides = [1, 1]} : vector<8x96xf32> to vector<8x32xf32>
    %191 = vector.extract_strided_slice %189 {offsets = [0, 32], sizes = [8, 32], strides = [1, 1]} : vector<8x96xf32> to vector<8x32xf32>
    %192 = vector.extract_strided_slice %189 {offsets = [0, 64], sizes = [8, 32], strides = [1, 1]} : vector<8x96xf32> to vector<8x32xf32>
    %193 = vector.extract_strided_slice %190 {offsets = [0, 0], sizes = [8, 8], strides = [1, 1]} : vector<8x32xf32> to vector<8x8xf32>
    %194 = vector.extract_strided_slice %191 {offsets = [0, 0], sizes = [8, 8], strides = [1, 1]} : vector<8x32xf32> to vector<8x8xf32>
    %195 = arith.truncf %193 : vector<8x8xf32> to vector<8x8xbf16>
    %196 = arith.truncf %194 : vector<8x8xf32> to vector<8x8xbf16>
    %cst_74 = arith.constant dense<0.000000e+00> : vector<8x8xf32>
    %197 = tpu.matmul %195, %196, %cst_74 {dimension_numbers = #tpu.dot_dimension_numbers<[1], [1], [0], [0], [0, 0, 1, 0], [], []>} : vector<8x8xbf16>, vector<8x8xbf16>, vector<8x8xf32> -> vector<8x8xf32>
    %198 = arith.addf %197, %1 : vector<8x8xf32>
    %cst_75 = arith.constant dense<0xFF800000> : vector<8xf32>
    %199 = vector.multi_reduction <maximumf>, %198, %cst_75 [1] : vector<8x8xf32> to vector<8xf32>
    %200 = vector.shape_cast %199 : vector<8xf32> to vector<8x1xf32>
    %201 = vector.broadcast %200 : vector<8x1xf32> to vector<8x8xf32>
    %202 = arith.subf %198, %201 : vector<8x8xf32>
    %203 = math.exp %202 : vector<8x8xf32>
    %cst_76 = arith.constant dense<0.000000e+00> : vector<8xf32>
    %204 = vector.multi_reduction <add>, %203, %cst_76 [1] : vector<8x8xf32> to vector<8xf32>
    %205 = vector.shape_cast %204 : vector<8xf32> to vector<8x1xf32>
    %206 = tpu.reciprocal %205 {approx = true} : vector<8x1xf32> -> vector<8x1xf32>
    %207 = vector.broadcast %206 : vector<8x1xf32> to vector<8x8xf32>
    %208 = arith.mulf %203, %207 : vector<8x8xf32>
    %209 = vector.extract_strided_slice %192 {offsets = [0, 0], sizes = [8, 8], strides = [1, 1]} : vector<8x32xf32> to vector<8x8xf32>
    %210 = arith.truncf %208 : vector<8x8xf32> to vector<8x8xbf16>
    %211 = arith.truncf %209 : vector<8x8xf32> to vector<8x8xbf16>
    %cst_77 = arith.constant dense<0.000000e+00> : vector<8x8xf32>
    %212 = tpu.matmul %210, %211, %cst_77 {dimension_numbers = #tpu.dot_dimension_numbers<[1], [0], [0], [1], [0, 0, 1, 1], [], []>} : vector<8x8xbf16>, vector<8x8xbf16>, vector<8x8xf32> -> vector<8x8xf32>
    %213 = vector.extract_strided_slice %183 {offsets = [0, 0], sizes = [8, 32], strides = [1, 1]} : vector<32x32xbf16> to vector<8x32xbf16>
    %214 = arith.truncf %212 : vector<8x8xf32> to vector<8x8xbf16>
    %cst_78 = arith.constant dense<0.000000e+00> : vector<8x32xf32>
    %215 = tpu.matmul %214, %213, %cst_78 {dimension_numbers = #tpu.dot_dimension_numbers<[1], [0], [0], [1], [0, 0, 1, 1], [], []>} : vector<8x8xbf16>, vector<8x32xbf16>, vector<8x32xf32> -> vector<8x32xf32>
    %216 = vector.extract_strided_slice %190 {offsets = [0, 8], sizes = [8, 8], strides = [1, 1]} : vector<8x32xf32> to vector<8x8xf32>
    %217 = vector.extract_strided_slice %191 {offsets = [0, 8], sizes = [8, 8], strides = [1, 1]} : vector<8x32xf32> to vector<8x8xf32>
    %218 = arith.truncf %216 : vector<8x8xf32> to vector<8x8xbf16>
    %219 = arith.truncf %217 : vector<8x8xf32> to vector<8x8xbf16>
    %cst_79 = arith.constant dense<0.000000e+00> : vector<8x8xf32>
    %220 = tpu.matmul %218, %219, %cst_79 {dimension_numbers = #tpu.dot_dimension_numbers<[1], [1], [0], [0], [0, 0, 1, 0], [], []>} : vector<8x8xbf16>, vector<8x8xbf16>, vector<8x8xf32> -> vector<8x8xf32>
    %221 = arith.addf %220, %1 : vector<8x8xf32>
    %cst_80 = arith.constant dense<0xFF800000> : vector<8xf32>
    %222 = vector.multi_reduction <maximumf>, %221, %cst_80 [1] : vector<8x8xf32> to vector<8xf32>
    %223 = vector.shape_cast %222 : vector<8xf32> to vector<8x1xf32>
    %224 = vector.broadcast %223 : vector<8x1xf32> to vector<8x8xf32>
    %225 = arith.subf %221, %224 : vector<8x8xf32>
    %226 = math.exp %225 : vector<8x8xf32>
    %cst_81 = arith.constant dense<0.000000e+00> : vector<8xf32>
    %227 = vector.multi_reduction <add>, %226, %cst_81 [1] : vector<8x8xf32> to vector<8xf32>
    %228 = vector.shape_cast %227 : vector<8xf32> to vector<8x1xf32>
    %229 = tpu.reciprocal %228 {approx = true} : vector<8x1xf32> -> vector<8x1xf32>
    %230 = vector.broadcast %229 : vector<8x1xf32> to vector<8x8xf32>
    %231 = arith.mulf %226, %230 : vector<8x8xf32>
    %232 = vector.extract_strided_slice %192 {offsets = [0, 8], sizes = [8, 8], strides = [1, 1]} : vector<8x32xf32> to vector<8x8xf32>
    %233 = arith.truncf %231 : vector<8x8xf32> to vector<8x8xbf16>
    %234 = arith.truncf %232 : vector<8x8xf32> to vector<8x8xbf16>
    %cst_82 = arith.constant dense<0.000000e+00> : vector<8x8xf32>
    %235 = tpu.matmul %233, %234, %cst_82 {dimension_numbers = #tpu.dot_dimension_numbers<[1], [0], [0], [1], [0, 0, 1, 1], [], []>} : vector<8x8xbf16>, vector<8x8xbf16>, vector<8x8xf32> -> vector<8x8xf32>
    %236 = vector.extract_strided_slice %183 {offsets = [8, 0], sizes = [8, 32], strides = [1, 1]} : vector<32x32xbf16> to vector<8x32xbf16>
    %237 = arith.truncf %235 : vector<8x8xf32> to vector<8x8xbf16>
    %cst_83 = arith.constant dense<0.000000e+00> : vector<8x32xf32>
    %238 = tpu.matmul %237, %236, %cst_83 {dimension_numbers = #tpu.dot_dimension_numbers<[1], [0], [0], [1], [0, 0, 1, 1], [], []>} : vector<8x8xbf16>, vector<8x32xbf16>, vector<8x32xf32> -> vector<8x32xf32>
    %239 = arith.addf %215, %238 : vector<8x32xf32>
    %240 = vector.extract_strided_slice %190 {offsets = [0, 16], sizes = [8, 8], strides = [1, 1]} : vector<8x32xf32> to vector<8x8xf32>
    %241 = vector.extract_strided_slice %191 {offsets = [0, 16], sizes = [8, 8], strides = [1, 1]} : vector<8x32xf32> to vector<8x8xf32>
    %242 = arith.truncf %240 : vector<8x8xf32> to vector<8x8xbf16>
    %243 = arith.truncf %241 : vector<8x8xf32> to vector<8x8xbf16>
    %cst_84 = arith.constant dense<0.000000e+00> : vector<8x8xf32>
    %244 = tpu.matmul %242, %243, %cst_84 {dimension_numbers = #tpu.dot_dimension_numbers<[1], [1], [0], [0], [0, 0, 1, 0], [], []>} : vector<8x8xbf16>, vector<8x8xbf16>, vector<8x8xf32> -> vector<8x8xf32>
    %245 = arith.addf %244, %1 : vector<8x8xf32>
    %cst_85 = arith.constant dense<0xFF800000> : vector<8xf32>
    %246 = vector.multi_reduction <maximumf>, %245, %cst_85 [1] : vector<8x8xf32> to vector<8xf32>
    %247 = vector.shape_cast %246 : vector<8xf32> to vector<8x1xf32>
    %248 = vector.broadcast %247 : vector<8x1xf32> to vector<8x8xf32>
    %249 = arith.subf %245, %248 : vector<8x8xf32>
    %250 = math.exp %249 : vector<8x8xf32>
    %cst_86 = arith.constant dense<0.000000e+00> : vector<8xf32>
    %251 = vector.multi_reduction <add>, %250, %cst_86 [1] : vector<8x8xf32> to vector<8xf32>
    %252 = vector.shape_cast %251 : vector<8xf32> to vector<8x1xf32>
    %253 = tpu.reciprocal %252 {approx = true} : vector<8x1xf32> -> vector<8x1xf32>
    %254 = vector.broadcast %253 : vector<8x1xf32> to vector<8x8xf32>
    %255 = arith.mulf %250, %254 : vector<8x8xf32>
    %256 = vector.extract_strided_slice %192 {offsets = [0, 16], sizes = [8, 8], strides = [1, 1]} : vector<8x32xf32> to vector<8x8xf32>
    %257 = arith.truncf %255 : vector<8x8xf32> to vector<8x8xbf16>
    %258 = arith.truncf %256 : vector<8x8xf32> to vector<8x8xbf16>
    %cst_87 = arith.constant dense<0.000000e+00> : vector<8x8xf32>
    %259 = tpu.matmul %257, %258, %cst_87 {dimension_numbers = #tpu.dot_dimension_numbers<[1], [0], [0], [1], [0, 0, 1, 1], [], []>} : vector<8x8xbf16>, vector<8x8xbf16>, vector<8x8xf32> -> vector<8x8xf32>
    %260 = vector.extract_strided_slice %183 {offsets = [16, 0], sizes = [8, 32], strides = [1, 1]} : vector<32x32xbf16> to vector<8x32xbf16>
    %261 = arith.truncf %259 : vector<8x8xf32> to vector<8x8xbf16>
    %cst_88 = arith.constant dense<0.000000e+00> : vector<8x32xf32>
    %262 = tpu.matmul %261, %260, %cst_88 {dimension_numbers = #tpu.dot_dimension_numbers<[1], [0], [0], [1], [0, 0, 1, 1], [], []>} : vector<8x8xbf16>, vector<8x32xbf16>, vector<8x32xf32> -> vector<8x32xf32>
    %263 = arith.addf %239, %262 : vector<8x32xf32>
    %264 = vector.extract_strided_slice %190 {offsets = [0, 24], sizes = [8, 8], strides = [1, 1]} : vector<8x32xf32> to vector<8x8xf32>
    %265 = vector.extract_strided_slice %191 {offsets = [0, 24], sizes = [8, 8], strides = [1, 1]} : vector<8x32xf32> to vector<8x8xf32>
    %266 = arith.truncf %264 : vector<8x8xf32> to vector<8x8xbf16>
    %267 = arith.truncf %265 : vector<8x8xf32> to vector<8x8xbf16>
    %cst_89 = arith.constant dense<0.000000e+00> : vector<8x8xf32>
    %268 = tpu.matmul %266, %267, %cst_89 {dimension_numbers = #tpu.dot_dimension_numbers<[1], [1], [0], [0], [0, 0, 1, 0], [], []>} : vector<8x8xbf16>, vector<8x8xbf16>, vector<8x8xf32> -> vector<8x8xf32>
    %269 = arith.addf %268, %1 : vector<8x8xf32>
    %cst_90 = arith.constant dense<0xFF800000> : vector<8xf32>
    %270 = vector.multi_reduction <maximumf>, %269, %cst_90 [1] : vector<8x8xf32> to vector<8xf32>
    %271 = vector.shape_cast %270 : vector<8xf32> to vector<8x1xf32>
    %272 = vector.broadcast %271 : vector<8x1xf32> to vector<8x8xf32>
    %273 = arith.subf %269, %272 : vector<8x8xf32>
    %274 = math.exp %273 : vector<8x8xf32>
    %cst_91 = arith.constant dense<0.000000e+00> : vector<8xf32>
    %275 = vector.multi_reduction <add>, %274, %cst_91 [1] : vector<8x8xf32> to vector<8xf32>
    %276 = vector.shape_cast %275 : vector<8xf32> to vector<8x1xf32>
    %277 = tpu.reciprocal %276 {approx = true} : vector<8x1xf32> -> vector<8x1xf32>
    %278 = vector.broadcast %277 : vector<8x1xf32> to vector<8x8xf32>
    %279 = arith.mulf %274, %278 : vector<8x8xf32>
    %280 = vector.extract_strided_slice %192 {offsets = [0, 24], sizes = [8, 8], strides = [1, 1]} : vector<8x32xf32> to vector<8x8xf32>
    %281 = arith.truncf %279 : vector<8x8xf32> to vector<8x8xbf16>
    %282 = arith.truncf %280 : vector<8x8xf32> to vector<8x8xbf16>
    %cst_92 = arith.constant dense<0.000000e+00> : vector<8x8xf32>
    %283 = tpu.matmul %281, %282, %cst_92 {dimension_numbers = #tpu.dot_dimension_numbers<[1], [0], [0], [1], [0, 0, 1, 1], [], []>} : vector<8x8xbf16>, vector<8x8xbf16>, vector<8x8xf32> -> vector<8x8xf32>
    %284 = vector.extract_strided_slice %183 {offsets = [24, 0], sizes = [8, 32], strides = [1, 1]} : vector<32x32xbf16> to vector<8x32xbf16>
    %285 = arith.truncf %283 : vector<8x8xf32> to vector<8x8xbf16>
    %cst_93 = arith.constant dense<0.000000e+00> : vector<8x32xf32>
    %286 = tpu.matmul %285, %284, %cst_93 {dimension_numbers = #tpu.dot_dimension_numbers<[1], [0], [0], [1], [0, 0, 1, 1], [], []>} : vector<8x8xbf16>, vector<8x32xbf16>, vector<8x32xf32> -> vector<8x32xf32>
    %287 = arith.addf %263, %286 : vector<8x32xf32>
    %288 = vector.broadcast %185 : vector<1x32xf32> to vector<8x32xf32>
    %289 = arith.addf %287, %288 : vector<8x32xf32>
    %290 = arith.addf %179, %289 : vector<8x32xf32>
    %c12 = arith.constant 12 : index
    %c0_94 = arith.constant 0 : index
    %291 = vector.load %arg10[%c12, %c0_94] : memref<48x128xf32, #tpu.memory_space<vmem>>, vector<1x32xf32>
    %c13 = arith.constant 13 : index
    %c0_95 = arith.constant 0 : index
    %292 = vector.load %arg10[%c13, %c0_95] : memref<48x128xf32, #tpu.memory_space<vmem>>, vector<1x32xf32>
    %cst_96 = arith.constant dense<0.000000e+00> : vector<8xf32>
    %293 = vector.multi_reduction <add>, %290, %cst_96 [1] : vector<8x32xf32> to vector<8xf32>
    %294 = vector.shape_cast %293 : vector<8xf32> to vector<8x1xf32>
    %cst_97 = arith.constant 3.200000e+01 : f32
    %295 = vector.broadcast %cst_97 : f32 to vector<8x1xf32>
    %296 = arith.divf %294, %295 : vector<8x1xf32>
    %297 = vector.broadcast %296 : vector<8x1xf32> to vector<8x32xf32>
    %298 = arith.subf %290, %297 : vector<8x32xf32>
    %299 = arith.mulf %298, %298 : vector<8x32xf32>
    %cst_98 = arith.constant dense<0.000000e+00> : vector<8xf32>
    %300 = vector.multi_reduction <add>, %299, %cst_98 [1] : vector<8x32xf32> to vector<8xf32>
    %301 = vector.shape_cast %300 : vector<8xf32> to vector<8x1xf32>
    %cst_99 = arith.constant 3.200000e+01 : f32
    %302 = vector.broadcast %cst_99 : f32 to vector<8x1xf32>
    %303 = arith.divf %301, %302 : vector<8x1xf32>
    %cst_100 = arith.constant 9.99999974E-6 : f32
    %304 = vector.broadcast %cst_100 : f32 to vector<8x1xf32>
    %305 = arith.addf %303, %304 : vector<8x1xf32>
    %306 = math.rsqrt %305 : vector<8x1xf32>
    %307 = vector.broadcast %306 : vector<8x1xf32> to vector<8x32xf32>
    %308 = arith.mulf %298, %307 : vector<8x32xf32>
    %309 = vector.broadcast %291 : vector<1x32xf32> to vector<8x32xf32>
    %310 = arith.mulf %308, %309 : vector<8x32xf32>
    %311 = vector.broadcast %292 : vector<1x32xf32> to vector<8x32xf32>
    %312 = arith.addf %310, %311 : vector<8x32xf32>
    %c1_101 = arith.constant 1 : index
    %c0_102 = arith.constant 0 : index
    %c0_103 = arith.constant 0 : index
    %313 = vector.load %arg8[%c1_101, %c0_102, %c0_103] : memref<4x32x64xbf16, #tpu.memory_space<vmem>>, vector<1x32x64xbf16>
    %314 = vector.shape_cast %313 : vector<1x32x64xbf16> to vector<32x64xbf16>
    %315 = arith.truncf %312 : vector<8x32xf32> to vector<8x32xbf16>
    %cst_104 = arith.constant dense<0.000000e+00> : vector<8x64xf32>
    %316 = tpu.matmul %315, %314, %cst_104 {dimension_numbers = #tpu.dot_dimension_numbers<[1], [0], [0], [1], [0, 0, 1, 1], [], []>} : vector<8x32xbf16>, vector<32x64xbf16>, vector<8x64xf32> -> vector<8x64xf32>
    %c10 = arith.constant 10 : index
    %c0_105 = arith.constant 0 : index
    %317 = vector.load %arg10[%c10, %c0_105] : memref<48x128xf32, #tpu.memory_space<vmem>>, vector<1x64xf32>
    %318 = vector.broadcast %317 : vector<1x64xf32> to vector<8x64xf32>
    %319 = arith.addf %316, %318 : vector<8x64xf32>
    %cst_106 = arith.constant 0.000000e+00 : f32
    %320 = vector.broadcast %cst_106 : f32 to vector<8x64xf32>
    %321 = arith.maximumf %319, %320 : vector<8x64xf32>
    %c1_107 = arith.constant 1 : index
    %c0_108 = arith.constant 0 : index
    %c0_109 = arith.constant 0 : index
    %322 = vector.load %arg9[%c1_107, %c0_108, %c0_109] : memref<4x64x32xbf16, #tpu.memory_space<vmem>>, vector<1x64x32xbf16>
    %323 = vector.shape_cast %322 : vector<1x64x32xbf16> to vector<64x32xbf16>
    %324 = arith.truncf %321 : vector<8x64xf32> to vector<8x64xbf16>
    %cst_110 = arith.constant dense<0.000000e+00> : vector<8x32xf32>
    %325 = tpu.matmul %324, %323, %cst_110 {dimension_numbers = #tpu.dot_dimension_numbers<[1], [0], [0], [1], [0, 0, 1, 1], [], []>} : vector<8x64xbf16>, vector<64x32xbf16>, vector<8x32xf32> -> vector<8x32xf32>
    %c11 = arith.constant 11 : index
    %c0_111 = arith.constant 0 : index
    %326 = vector.load %arg10[%c11, %c0_111] : memref<48x128xf32, #tpu.memory_space<vmem>>, vector<1x32xf32>
    %327 = vector.broadcast %326 : vector<1x32xf32> to vector<8x32xf32>
    %328 = arith.addf %325, %327 : vector<8x32xf32>
    %329 = arith.addf %312, %328 : vector<8x32xf32>
    %c14 = arith.constant 14 : index
    %c0_112 = arith.constant 0 : index
    %330 = vector.load %arg10[%c14, %c0_112] : memref<48x128xf32, #tpu.memory_space<vmem>>, vector<1x32xf32>
    %c15 = arith.constant 15 : index
    %c0_113 = arith.constant 0 : index
    %331 = vector.load %arg10[%c15, %c0_113] : memref<48x128xf32, #tpu.memory_space<vmem>>, vector<1x32xf32>
    %cst_114 = arith.constant dense<0.000000e+00> : vector<8xf32>
    %332 = vector.multi_reduction <add>, %329, %cst_114 [1] : vector<8x32xf32> to vector<8xf32>
    %333 = vector.shape_cast %332 : vector<8xf32> to vector<8x1xf32>
    %cst_115 = arith.constant 3.200000e+01 : f32
    %334 = vector.broadcast %cst_115 : f32 to vector<8x1xf32>
    %335 = arith.divf %333, %334 : vector<8x1xf32>
    %336 = vector.broadcast %335 : vector<8x1xf32> to vector<8x32xf32>
    %337 = arith.subf %329, %336 : vector<8x32xf32>
    %338 = arith.mulf %337, %337 : vector<8x32xf32>
    %cst_116 = arith.constant dense<0.000000e+00> : vector<8xf32>
    %339 = vector.multi_reduction <add>, %338, %cst_116 [1] : vector<8x32xf32> to vector<8xf32>
    %340 = vector.shape_cast %339 : vector<8xf32> to vector<8x1xf32>
    %cst_117 = arith.constant 3.200000e+01 : f32
    %341 = vector.broadcast %cst_117 : f32 to vector<8x1xf32>
    %342 = arith.divf %340, %341 : vector<8x1xf32>
    %cst_118 = arith.constant 9.99999974E-6 : f32
    %343 = vector.broadcast %cst_118 : f32 to vector<8x1xf32>
    %344 = arith.addf %342, %343 : vector<8x1xf32>
    %345 = math.rsqrt %344 : vector<8x1xf32>
    %346 = vector.broadcast %345 : vector<8x1xf32> to vector<8x32xf32>
    %347 = arith.mulf %337, %346 : vector<8x32xf32>
    %348 = vector.broadcast %330 : vector<1x32xf32> to vector<8x32xf32>
    %349 = arith.mulf %347, %348 : vector<8x32xf32>
    %350 = vector.broadcast %331 : vector<1x32xf32> to vector<8x32xf32>
    %351 = arith.addf %349, %350 : vector<8x32xf32>
    %c0_119 = arith.constant 0 : index
    %c0_120 = arith.constant 0 : index
    %c0_121 = arith.constant 0 : index
    %352 = vector.load %arg2[%c0_119, %c0_120, %c0_121] : memref<1x8x32xf32, #tpu.memory_space<vmem>>, vector<1x8x32xf32>
    %353 = vector.shape_cast %352 : vector<1x8x32xf32> to vector<8x32xf32>
    %c2_122 = arith.constant 2 : index
    %c0_123 = arith.constant 0 : index
    %c0_124 = arith.constant 0 : index
    %354 = vector.load %arg6[%c2_122, %c0_123, %c0_124] : memref<6x32x96xbf16, #tpu.memory_space<vmem>>, vector<1x32x96xbf16>
    %355 = vector.shape_cast %354 : vector<1x32x96xbf16> to vector<32x96xbf16>
    %c2_125 = arith.constant 2 : index
    %c0_126 = arith.constant 0 : index
    %c0_127 = arith.constant 0 : index
    %356 = vector.load %arg7[%c2_125, %c0_126, %c0_127] : memref<6x32x32xbf16, #tpu.memory_space<vmem>>, vector<1x32x32xbf16>
    %357 = vector.shape_cast %356 : vector<1x32x32xbf16> to vector<32x32xbf16>
    %c16 = arith.constant 16 : index
    %c0_128 = arith.constant 0 : index
    %358 = vector.load %arg10[%c16, %c0_128] : memref<48x128xf32, #tpu.memory_space<vmem>>, vector<1x96xf32>
    %c17 = arith.constant 17 : index
    %c0_129 = arith.constant 0 : index
    %359 = vector.load %arg10[%c17, %c0_129] : memref<48x128xf32, #tpu.memory_space<vmem>>, vector<1x32xf32>
    %360 = arith.truncf %353 : vector<8x32xf32> to vector<8x32xbf16>
    %cst_130 = arith.constant dense<0.000000e+00> : vector<8x96xf32>
    %361 = tpu.matmul %360, %355, %cst_130 {dimension_numbers = #tpu.dot_dimension_numbers<[1], [0], [0], [1], [0, 0, 1, 1], [], []>} : vector<8x32xbf16>, vector<32x96xbf16>, vector<8x96xf32> -> vector<8x96xf32>
    %362 = vector.broadcast %358 : vector<1x96xf32> to vector<8x96xf32>
    %363 = arith.addf %361, %362 : vector<8x96xf32>
    %364 = vector.extract_strided_slice %363 {offsets = [0, 0], sizes = [8, 32], strides = [1, 1]} : vector<8x96xf32> to vector<8x32xf32>
    %365 = vector.extract_strided_slice %363 {offsets = [0, 32], sizes = [8, 32], strides = [1, 1]} : vector<8x96xf32> to vector<8x32xf32>
    %366 = vector.extract_strided_slice %363 {offsets = [0, 64], sizes = [8, 32], strides = [1, 1]} : vector<8x96xf32> to vector<8x32xf32>
    %367 = vector.extract_strided_slice %364 {offsets = [0, 0], sizes = [8, 8], strides = [1, 1]} : vector<8x32xf32> to vector<8x8xf32>
    %368 = vector.extract_strided_slice %365 {offsets = [0, 0], sizes = [8, 8], strides = [1, 1]} : vector<8x32xf32> to vector<8x8xf32>
    %369 = arith.truncf %367 : vector<8x8xf32> to vector<8x8xbf16>
    %370 = arith.truncf %368 : vector<8x8xf32> to vector<8x8xbf16>
    %cst_131 = arith.constant dense<0.000000e+00> : vector<8x8xf32>
    %371 = tpu.matmul %369, %370, %cst_131 {dimension_numbers = #tpu.dot_dimension_numbers<[1], [1], [0], [0], [0, 0, 1, 0], [], []>} : vector<8x8xbf16>, vector<8x8xbf16>, vector<8x8xf32> -> vector<8x8xf32>
    %372 = arith.addf %371, %3 : vector<8x8xf32>
    %cst_132 = arith.constant dense<0xFF800000> : vector<8xf32>
    %373 = vector.multi_reduction <maximumf>, %372, %cst_132 [1] : vector<8x8xf32> to vector<8xf32>
    %374 = vector.shape_cast %373 : vector<8xf32> to vector<8x1xf32>
    %375 = vector.broadcast %374 : vector<8x1xf32> to vector<8x8xf32>
    %376 = arith.subf %372, %375 : vector<8x8xf32>
    %377 = math.exp %376 : vector<8x8xf32>
    %cst_133 = arith.constant dense<0.000000e+00> : vector<8xf32>
    %378 = vector.multi_reduction <add>, %377, %cst_133 [1] : vector<8x8xf32> to vector<8xf32>
    %379 = vector.shape_cast %378 : vector<8xf32> to vector<8x1xf32>
    %380 = tpu.reciprocal %379 {approx = true} : vector<8x1xf32> -> vector<8x1xf32>
    %381 = vector.broadcast %380 : vector<8x1xf32> to vector<8x8xf32>
    %382 = arith.mulf %377, %381 : vector<8x8xf32>
    %383 = vector.extract_strided_slice %366 {offsets = [0, 0], sizes = [8, 8], strides = [1, 1]} : vector<8x32xf32> to vector<8x8xf32>
    %384 = arith.truncf %382 : vector<8x8xf32> to vector<8x8xbf16>
    %385 = arith.truncf %383 : vector<8x8xf32> to vector<8x8xbf16>
    %cst_134 = arith.constant dense<0.000000e+00> : vector<8x8xf32>
    %386 = tpu.matmul %384, %385, %cst_134 {dimension_numbers = #tpu.dot_dimension_numbers<[1], [0], [0], [1], [0, 0, 1, 1], [], []>} : vector<8x8xbf16>, vector<8x8xbf16>, vector<8x8xf32> -> vector<8x8xf32>
    %387 = vector.extract_strided_slice %357 {offsets = [0, 0], sizes = [8, 32], strides = [1, 1]} : vector<32x32xbf16> to vector<8x32xbf16>
    %388 = arith.truncf %386 : vector<8x8xf32> to vector<8x8xbf16>
    %cst_135 = arith.constant dense<0.000000e+00> : vector<8x32xf32>
    %389 = tpu.matmul %388, %387, %cst_135 {dimension_numbers = #tpu.dot_dimension_numbers<[1], [0], [0], [1], [0, 0, 1, 1], [], []>} : vector<8x8xbf16>, vector<8x32xbf16>, vector<8x32xf32> -> vector<8x32xf32>
    %390 = vector.extract_strided_slice %364 {offsets = [0, 8], sizes = [8, 8], strides = [1, 1]} : vector<8x32xf32> to vector<8x8xf32>
    %391 = vector.extract_strided_slice %365 {offsets = [0, 8], sizes = [8, 8], strides = [1, 1]} : vector<8x32xf32> to vector<8x8xf32>
    %392 = arith.truncf %390 : vector<8x8xf32> to vector<8x8xbf16>
    %393 = arith.truncf %391 : vector<8x8xf32> to vector<8x8xbf16>
    %cst_136 = arith.constant dense<0.000000e+00> : vector<8x8xf32>
    %394 = tpu.matmul %392, %393, %cst_136 {dimension_numbers = #tpu.dot_dimension_numbers<[1], [1], [0], [0], [0, 0, 1, 0], [], []>} : vector<8x8xbf16>, vector<8x8xbf16>, vector<8x8xf32> -> vector<8x8xf32>
    %395 = arith.addf %394, %3 : vector<8x8xf32>
    %cst_137 = arith.constant dense<0xFF800000> : vector<8xf32>
    %396 = vector.multi_reduction <maximumf>, %395, %cst_137 [1] : vector<8x8xf32> to vector<8xf32>
    %397 = vector.shape_cast %396 : vector<8xf32> to vector<8x1xf32>
    %398 = vector.broadcast %397 : vector<8x1xf32> to vector<8x8xf32>
    %399 = arith.subf %395, %398 : vector<8x8xf32>
    %400 = math.exp %399 : vector<8x8xf32>
    %cst_138 = arith.constant dense<0.000000e+00> : vector<8xf32>
    %401 = vector.multi_reduction <add>, %400, %cst_138 [1] : vector<8x8xf32> to vector<8xf32>
    %402 = vector.shape_cast %401 : vector<8xf32> to vector<8x1xf32>
    %403 = tpu.reciprocal %402 {approx = true} : vector<8x1xf32> -> vector<8x1xf32>
    %404 = vector.broadcast %403 : vector<8x1xf32> to vector<8x8xf32>
    %405 = arith.mulf %400, %404 : vector<8x8xf32>
    %406 = vector.extract_strided_slice %366 {offsets = [0, 8], sizes = [8, 8], strides = [1, 1]} : vector<8x32xf32> to vector<8x8xf32>
    %407 = arith.truncf %405 : vector<8x8xf32> to vector<8x8xbf16>
    %408 = arith.truncf %406 : vector<8x8xf32> to vector<8x8xbf16>
    %cst_139 = arith.constant dense<0.000000e+00> : vector<8x8xf32>
    %409 = tpu.matmul %407, %408, %cst_139 {dimension_numbers = #tpu.dot_dimension_numbers<[1], [0], [0], [1], [0, 0, 1, 1], [], []>} : vector<8x8xbf16>, vector<8x8xbf16>, vector<8x8xf32> -> vector<8x8xf32>
    %410 = vector.extract_strided_slice %357 {offsets = [8, 0], sizes = [8, 32], strides = [1, 1]} : vector<32x32xbf16> to vector<8x32xbf16>
    %411 = arith.truncf %409 : vector<8x8xf32> to vector<8x8xbf16>
    %cst_140 = arith.constant dense<0.000000e+00> : vector<8x32xf32>
    %412 = tpu.matmul %411, %410, %cst_140 {dimension_numbers = #tpu.dot_dimension_numbers<[1], [0], [0], [1], [0, 0, 1, 1], [], []>} : vector<8x8xbf16>, vector<8x32xbf16>, vector<8x32xf32> -> vector<8x32xf32>
    %413 = arith.addf %389, %412 : vector<8x32xf32>
    %414 = vector.extract_strided_slice %364 {offsets = [0, 16], sizes = [8, 8], strides = [1, 1]} : vector<8x32xf32> to vector<8x8xf32>
    %415 = vector.extract_strided_slice %365 {offsets = [0, 16], sizes = [8, 8], strides = [1, 1]} : vector<8x32xf32> to vector<8x8xf32>
    %416 = arith.truncf %414 : vector<8x8xf32> to vector<8x8xbf16>
    %417 = arith.truncf %415 : vector<8x8xf32> to vector<8x8xbf16>
    %cst_141 = arith.constant dense<0.000000e+00> : vector<8x8xf32>
    %418 = tpu.matmul %416, %417, %cst_141 {dimension_numbers = #tpu.dot_dimension_numbers<[1], [1], [0], [0], [0, 0, 1, 0], [], []>} : vector<8x8xbf16>, vector<8x8xbf16>, vector<8x8xf32> -> vector<8x8xf32>
    %419 = arith.addf %418, %3 : vector<8x8xf32>
    %cst_142 = arith.constant dense<0xFF800000> : vector<8xf32>
    %420 = vector.multi_reduction <maximumf>, %419, %cst_142 [1] : vector<8x8xf32> to vector<8xf32>
    %421 = vector.shape_cast %420 : vector<8xf32> to vector<8x1xf32>
    %422 = vector.broadcast %421 : vector<8x1xf32> to vector<8x8xf32>
    %423 = arith.subf %419, %422 : vector<8x8xf32>
    %424 = math.exp %423 : vector<8x8xf32>
    %cst_143 = arith.constant dense<0.000000e+00> : vector<8xf32>
    %425 = vector.multi_reduction <add>, %424, %cst_143 [1] : vector<8x8xf32> to vector<8xf32>
    %426 = vector.shape_cast %425 : vector<8xf32> to vector<8x1xf32>
    %427 = tpu.reciprocal %426 {approx = true} : vector<8x1xf32> -> vector<8x1xf32>
    %428 = vector.broadcast %427 : vector<8x1xf32> to vector<8x8xf32>
    %429 = arith.mulf %424, %428 : vector<8x8xf32>
    %430 = vector.extract_strided_slice %366 {offsets = [0, 16], sizes = [8, 8], strides = [1, 1]} : vector<8x32xf32> to vector<8x8xf32>
    %431 = arith.truncf %429 : vector<8x8xf32> to vector<8x8xbf16>
    %432 = arith.truncf %430 : vector<8x8xf32> to vector<8x8xbf16>
    %cst_144 = arith.constant dense<0.000000e+00> : vector<8x8xf32>
    %433 = tpu.matmul %431, %432, %cst_144 {dimension_numbers = #tpu.dot_dimension_numbers<[1], [0], [0], [1], [0, 0, 1, 1], [], []>} : vector<8x8xbf16>, vector<8x8xbf16>, vector<8x8xf32> -> vector<8x8xf32>
    %434 = vector.extract_strided_slice %357 {offsets = [16, 0], sizes = [8, 32], strides = [1, 1]} : vector<32x32xbf16> to vector<8x32xbf16>
    %435 = arith.truncf %433 : vector<8x8xf32> to vector<8x8xbf16>
    %cst_145 = arith.constant dense<0.000000e+00> : vector<8x32xf32>
    %436 = tpu.matmul %435, %434, %cst_145 {dimension_numbers = #tpu.dot_dimension_numbers<[1], [0], [0], [1], [0, 0, 1, 1], [], []>} : vector<8x8xbf16>, vector<8x32xbf16>, vector<8x32xf32> -> vector<8x32xf32>
    %437 = arith.addf %413, %436 : vector<8x32xf32>
    %438 = vector.extract_strided_slice %364 {offsets = [0, 24], sizes = [8, 8], strides = [1, 1]} : vector<8x32xf32> to vector<8x8xf32>
    %439 = vector.extract_strided_slice %365 {offsets = [0, 24], sizes = [8, 8], strides = [1, 1]} : vector<8x32xf32> to vector<8x8xf32>
    %440 = arith.truncf %438 : vector<8x8xf32> to vector<8x8xbf16>
    %441 = arith.truncf %439 : vector<8x8xf32> to vector<8x8xbf16>
    %cst_146 = arith.constant dense<0.000000e+00> : vector<8x8xf32>
    %442 = tpu.matmul %440, %441, %cst_146 {dimension_numbers = #tpu.dot_dimension_numbers<[1], [1], [0], [0], [0, 0, 1, 0], [], []>} : vector<8x8xbf16>, vector<8x8xbf16>, vector<8x8xf32> -> vector<8x8xf32>
    %443 = arith.addf %442, %3 : vector<8x8xf32>
    %cst_147 = arith.constant dense<0xFF800000> : vector<8xf32>
    %444 = vector.multi_reduction <maximumf>, %443, %cst_147 [1] : vector<8x8xf32> to vector<8xf32>
    %445 = vector.shape_cast %444 : vector<8xf32> to vector<8x1xf32>
    %446 = vector.broadcast %445 : vector<8x1xf32> to vector<8x8xf32>
    %447 = arith.subf %443, %446 : vector<8x8xf32>
    %448 = math.exp %447 : vector<8x8xf32>
    %cst_148 = arith.constant dense<0.000000e+00> : vector<8xf32>
    %449 = vector.multi_reduction <add>, %448, %cst_148 [1] : vector<8x8xf32> to vector<8xf32>
    %450 = vector.shape_cast %449 : vector<8xf32> to vector<8x1xf32>
    %451 = tpu.reciprocal %450 {approx = true} : vector<8x1xf32> -> vector<8x1xf32>
    %452 = vector.broadcast %451 : vector<8x1xf32> to vector<8x8xf32>
    %453 = arith.mulf %448, %452 : vector<8x8xf32>
    %454 = vector.extract_strided_slice %366 {offsets = [0, 24], sizes = [8, 8], strides = [1, 1]} : vector<8x32xf32> to vector<8x8xf32>
    %455 = arith.truncf %453 : vector<8x8xf32> to vector<8x8xbf16>
    %456 = arith.truncf %454 : vector<8x8xf32> to vector<8x8xbf16>
    %cst_149 = arith.constant dense<0.000000e+00> : vector<8x8xf32>
    %457 = tpu.matmul %455, %456, %cst_149 {dimension_numbers = #tpu.dot_dimension_numbers<[1], [0], [0], [1], [0, 0, 1, 1], [], []>} : vector<8x8xbf16>, vector<8x8xbf16>, vector<8x8xf32> -> vector<8x8xf32>
    %458 = vector.extract_strided_slice %357 {offsets = [24, 0], sizes = [8, 32], strides = [1, 1]} : vector<32x32xbf16> to vector<8x32xbf16>
    %459 = arith.truncf %457 : vector<8x8xf32> to vector<8x8xbf16>
    %cst_150 = arith.constant dense<0.000000e+00> : vector<8x32xf32>
    %460 = tpu.matmul %459, %458, %cst_150 {dimension_numbers = #tpu.dot_dimension_numbers<[1], [0], [0], [1], [0, 0, 1, 1], [], []>} : vector<8x8xbf16>, vector<8x32xbf16>, vector<8x32xf32> -> vector<8x32xf32>
    %461 = arith.addf %437, %460 : vector<8x32xf32>
    %462 = vector.broadcast %359 : vector<1x32xf32> to vector<8x32xf32>
    %463 = arith.addf %461, %462 : vector<8x32xf32>
    %464 = arith.addf %353, %463 : vector<8x32xf32>
    %c22 = arith.constant 22 : index
    %c0_151 = arith.constant 0 : index
    %465 = vector.load %arg10[%c22, %c0_151] : memref<48x128xf32, #tpu.memory_space<vmem>>, vector<1x32xf32>
    %c23 = arith.constant 23 : index
    %c0_152 = arith.constant 0 : index
    %466 = vector.load %arg10[%c23, %c0_152] : memref<48x128xf32, #tpu.memory_space<vmem>>, vector<1x32xf32>
    %cst_153 = arith.constant dense<0.000000e+00> : vector<8xf32>
    %467 = vector.multi_reduction <add>, %464, %cst_153 [1] : vector<8x32xf32> to vector<8xf32>
    %468 = vector.shape_cast %467 : vector<8xf32> to vector<8x1xf32>
    %cst_154 = arith.constant 3.200000e+01 : f32
    %469 = vector.broadcast %cst_154 : f32 to vector<8x1xf32>
    %470 = arith.divf %468, %469 : vector<8x1xf32>
    %471 = vector.broadcast %470 : vector<8x1xf32> to vector<8x32xf32>
    %472 = arith.subf %464, %471 : vector<8x32xf32>
    %473 = arith.mulf %472, %472 : vector<8x32xf32>
    %cst_155 = arith.constant dense<0.000000e+00> : vector<8xf32>
    %474 = vector.multi_reduction <add>, %473, %cst_155 [1] : vector<8x32xf32> to vector<8xf32>
    %475 = vector.shape_cast %474 : vector<8xf32> to vector<8x1xf32>
    %cst_156 = arith.constant 3.200000e+01 : f32
    %476 = vector.broadcast %cst_156 : f32 to vector<8x1xf32>
    %477 = arith.divf %475, %476 : vector<8x1xf32>
    %cst_157 = arith.constant 9.99999974E-6 : f32
    %478 = vector.broadcast %cst_157 : f32 to vector<8x1xf32>
    %479 = arith.addf %477, %478 : vector<8x1xf32>
    %480 = math.rsqrt %479 : vector<8x1xf32>
    %481 = vector.broadcast %480 : vector<8x1xf32> to vector<8x32xf32>
    %482 = arith.mulf %472, %481 : vector<8x32xf32>
    %483 = vector.broadcast %465 : vector<1x32xf32> to vector<8x32xf32>
    %484 = arith.mulf %482, %483 : vector<8x32xf32>
    %485 = vector.broadcast %466 : vector<1x32xf32> to vector<8x32xf32>
    %486 = arith.addf %484, %485 : vector<8x32xf32>
    %c4_158 = arith.constant 4 : index
    %c0_159 = arith.constant 0 : index
    %c0_160 = arith.constant 0 : index
    %487 = vector.load %arg6[%c4_158, %c0_159, %c0_160] : memref<6x32x96xbf16, #tpu.memory_space<vmem>>, vector<1x32x96xbf16>
    %488 = vector.shape_cast %487 : vector<1x32x96xbf16> to vector<32x96xbf16>
    %c4_161 = arith.constant 4 : index
    %c0_162 = arith.constant 0 : index
    %c0_163 = arith.constant 0 : index
    %489 = vector.load %arg7[%c4_161, %c0_162, %c0_163] : memref<6x32x32xbf16, #tpu.memory_space<vmem>>, vector<1x32x32xbf16>
    %490 = vector.shape_cast %489 : vector<1x32x32xbf16> to vector<32x32xbf16>
    %c18 = arith.constant 18 : index
    %c0_164 = arith.constant 0 : index
    %491 = vector.load %arg10[%c18, %c0_164] : memref<48x128xf32, #tpu.memory_space<vmem>>, vector<1x96xf32>
    %c19 = arith.constant 19 : index
    %c0_165 = arith.constant 0 : index
    %492 = vector.load %arg10[%c19, %c0_165] : memref<48x128xf32, #tpu.memory_space<vmem>>, vector<1x32xf32>
    %493 = vector.extract_strided_slice %488 {offsets = [0, 0], sizes = [32, 32], strides = [1, 1]} : vector<32x96xbf16> to vector<32x32xbf16>
    %494 = arith.truncf %486 : vector<8x32xf32> to vector<8x32xbf16>
    %cst_166 = arith.constant dense<0.000000e+00> : vector<8x32xf32>
    %495 = tpu.matmul %494, %493, %cst_166 {dimension_numbers = #tpu.dot_dimension_numbers<[1], [0], [0], [1], [0, 0, 1, 1], [], []>} : vector<8x32xbf16>, vector<32x32xbf16>, vector<8x32xf32> -> vector<8x32xf32>
    %496 = vector.extract_strided_slice %491 {offsets = [0, 0], sizes = [1, 32], strides = [1, 1]} : vector<1x96xf32> to vector<1x32xf32>
    %497 = vector.broadcast %496 : vector<1x32xf32> to vector<8x32xf32>
    %498 = arith.addf %495, %497 : vector<8x32xf32>
    %499 = vector.extract_strided_slice %488 {offsets = [0, 32], sizes = [32, 64], strides = [1, 1]} : vector<32x96xbf16> to vector<32x64xbf16>
    %500 = arith.truncf %351 : vector<8x32xf32> to vector<8x32xbf16>
    %cst_167 = arith.constant dense<0.000000e+00> : vector<8x64xf32>
    %501 = tpu.matmul %500, %499, %cst_167 {dimension_numbers = #tpu.dot_dimension_numbers<[1], [0], [0], [1], [0, 0, 1, 1], [], []>} : vector<8x32xbf16>, vector<32x64xbf16>, vector<8x64xf32> -> vector<8x64xf32>
    %502 = vector.extract_strided_slice %491 {offsets = [0, 32], sizes = [1, 64], strides = [1, 1]} : vector<1x96xf32> to vector<1x64xf32>
    %503 = vector.broadcast %502 : vector<1x64xf32> to vector<8x64xf32>
    %504 = arith.addf %501, %503 : vector<8x64xf32>
    %505 = vector.extract_strided_slice %504 {offsets = [0, 0], sizes = [8, 32], strides = [1, 1]} : vector<8x64xf32> to vector<8x32xf32>
    %506 = vector.extract_strided_slice %504 {offsets = [0, 32], sizes = [8, 32], strides = [1, 1]} : vector<8x64xf32> to vector<8x32xf32>
    %507 = vector.extract_strided_slice %498 {offsets = [0, 0], sizes = [8, 8], strides = [1, 1]} : vector<8x32xf32> to vector<8x8xf32>
    %508 = vector.extract_strided_slice %505 {offsets = [0, 0], sizes = [8, 8], strides = [1, 1]} : vector<8x32xf32> to vector<8x8xf32>
    %509 = arith.truncf %507 : vector<8x8xf32> to vector<8x8xbf16>
    %510 = arith.truncf %508 : vector<8x8xf32> to vector<8x8xbf16>
    %cst_168 = arith.constant dense<0.000000e+00> : vector<8x8xf32>
    %511 = tpu.matmul %509, %510, %cst_168 {dimension_numbers = #tpu.dot_dimension_numbers<[1], [1], [0], [0], [0, 0, 1, 0], [], []>} : vector<8x8xbf16>, vector<8x8xbf16>, vector<8x8xf32> -> vector<8x8xf32>
    %512 = arith.addf %511, %5 : vector<8x8xf32>
    %cst_169 = arith.constant dense<0xFF800000> : vector<8xf32>
    %513 = vector.multi_reduction <maximumf>, %512, %cst_169 [1] : vector<8x8xf32> to vector<8xf32>
    %514 = vector.shape_cast %513 : vector<8xf32> to vector<8x1xf32>
    %515 = vector.broadcast %514 : vector<8x1xf32> to vector<8x8xf32>
    %516 = arith.subf %512, %515 : vector<8x8xf32>
    %517 = math.exp %516 : vector<8x8xf32>
    %cst_170 = arith.constant dense<0.000000e+00> : vector<8xf32>
    %518 = vector.multi_reduction <add>, %517, %cst_170 [1] : vector<8x8xf32> to vector<8xf32>
    %519 = vector.shape_cast %518 : vector<8xf32> to vector<8x1xf32>
    %520 = tpu.reciprocal %519 {approx = true} : vector<8x1xf32> -> vector<8x1xf32>
    %521 = vector.broadcast %520 : vector<8x1xf32> to vector<8x8xf32>
    %522 = arith.mulf %517, %521 : vector<8x8xf32>
    %523 = vector.extract_strided_slice %506 {offsets = [0, 0], sizes = [8, 8], strides = [1, 1]} : vector<8x32xf32> to vector<8x8xf32>
    %524 = arith.truncf %522 : vector<8x8xf32> to vector<8x8xbf16>
    %525 = arith.truncf %523 : vector<8x8xf32> to vector<8x8xbf16>
    %cst_171 = arith.constant dense<0.000000e+00> : vector<8x8xf32>
    %526 = tpu.matmul %524, %525, %cst_171 {dimension_numbers = #tpu.dot_dimension_numbers<[1], [0], [0], [1], [0, 0, 1, 1], [], []>} : vector<8x8xbf16>, vector<8x8xbf16>, vector<8x8xf32> -> vector<8x8xf32>
    %527 = vector.extract_strided_slice %490 {offsets = [0, 0], sizes = [8, 32], strides = [1, 1]} : vector<32x32xbf16> to vector<8x32xbf16>
    %528 = arith.truncf %526 : vector<8x8xf32> to vector<8x8xbf16>
    %cst_172 = arith.constant dense<0.000000e+00> : vector<8x32xf32>
    %529 = tpu.matmul %528, %527, %cst_172 {dimension_numbers = #tpu.dot_dimension_numbers<[1], [0], [0], [1], [0, 0, 1, 1], [], []>} : vector<8x8xbf16>, vector<8x32xbf16>, vector<8x32xf32> -> vector<8x32xf32>
    %530 = vector.extract_strided_slice %498 {offsets = [0, 8], sizes = [8, 8], strides = [1, 1]} : vector<8x32xf32> to vector<8x8xf32>
    %531 = vector.extract_strided_slice %505 {offsets = [0, 8], sizes = [8, 8], strides = [1, 1]} : vector<8x32xf32> to vector<8x8xf32>
    %532 = arith.truncf %530 : vector<8x8xf32> to vector<8x8xbf16>
    %533 = arith.truncf %531 : vector<8x8xf32> to vector<8x8xbf16>
    %cst_173 = arith.constant dense<0.000000e+00> : vector<8x8xf32>
    %534 = tpu.matmul %532, %533, %cst_173 {dimension_numbers = #tpu.dot_dimension_numbers<[1], [1], [0], [0], [0, 0, 1, 0], [], []>} : vector<8x8xbf16>, vector<8x8xbf16>, vector<8x8xf32> -> vector<8x8xf32>
    %535 = arith.addf %534, %5 : vector<8x8xf32>
    %cst_174 = arith.constant dense<0xFF800000> : vector<8xf32>
    %536 = vector.multi_reduction <maximumf>, %535, %cst_174 [1] : vector<8x8xf32> to vector<8xf32>
    %537 = vector.shape_cast %536 : vector<8xf32> to vector<8x1xf32>
    %538 = vector.broadcast %537 : vector<8x1xf32> to vector<8x8xf32>
    %539 = arith.subf %535, %538 : vector<8x8xf32>
    %540 = math.exp %539 : vector<8x8xf32>
    %cst_175 = arith.constant dense<0.000000e+00> : vector<8xf32>
    %541 = vector.multi_reduction <add>, %540, %cst_175 [1] : vector<8x8xf32> to vector<8xf32>
    %542 = vector.shape_cast %541 : vector<8xf32> to vector<8x1xf32>
    %543 = tpu.reciprocal %542 {approx = true} : vector<8x1xf32> -> vector<8x1xf32>
    %544 = vector.broadcast %543 : vector<8x1xf32> to vector<8x8xf32>
    %545 = arith.mulf %540, %544 : vector<8x8xf32>
    %546 = vector.extract_strided_slice %506 {offsets = [0, 8], sizes = [8, 8], strides = [1, 1]} : vector<8x32xf32> to vector<8x8xf32>
    %547 = arith.truncf %545 : vector<8x8xf32> to vector<8x8xbf16>
    %548 = arith.truncf %546 : vector<8x8xf32> to vector<8x8xbf16>
    %cst_176 = arith.constant dense<0.000000e+00> : vector<8x8xf32>
    %549 = tpu.matmul %547, %548, %cst_176 {dimension_numbers = #tpu.dot_dimension_numbers<[1], [0], [0], [1], [0, 0, 1, 1], [], []>} : vector<8x8xbf16>, vector<8x8xbf16>, vector<8x8xf32> -> vector<8x8xf32>
    %550 = vector.extract_strided_slice %490 {offsets = [8, 0], sizes = [8, 32], strides = [1, 1]} : vector<32x32xbf16> to vector<8x32xbf16>
    %551 = arith.truncf %549 : vector<8x8xf32> to vector<8x8xbf16>
    %cst_177 = arith.constant dense<0.000000e+00> : vector<8x32xf32>
    %552 = tpu.matmul %551, %550, %cst_177 {dimension_numbers = #tpu.dot_dimension_numbers<[1], [0], [0], [1], [0, 0, 1, 1], [], []>} : vector<8x8xbf16>, vector<8x32xbf16>, vector<8x32xf32> -> vector<8x32xf32>
    %553 = arith.addf %529, %552 : vector<8x32xf32>
    %554 = vector.extract_strided_slice %498 {offsets = [0, 16], sizes = [8, 8], strides = [1, 1]} : vector<8x32xf32> to vector<8x8xf32>
    %555 = vector.extract_strided_slice %505 {offsets = [0, 16], sizes = [8, 8], strides = [1, 1]} : vector<8x32xf32> to vector<8x8xf32>
    %556 = arith.truncf %554 : vector<8x8xf32> to vector<8x8xbf16>
    %557 = arith.truncf %555 : vector<8x8xf32> to vector<8x8xbf16>
    %cst_178 = arith.constant dense<0.000000e+00> : vector<8x8xf32>
    %558 = tpu.matmul %556, %557, %cst_178 {dimension_numbers = #tpu.dot_dimension_numbers<[1], [1], [0], [0], [0, 0, 1, 0], [], []>} : vector<8x8xbf16>, vector<8x8xbf16>, vector<8x8xf32> -> vector<8x8xf32>
    %559 = arith.addf %558, %5 : vector<8x8xf32>
    %cst_179 = arith.constant dense<0xFF800000> : vector<8xf32>
    %560 = vector.multi_reduction <maximumf>, %559, %cst_179 [1] : vector<8x8xf32> to vector<8xf32>
    %561 = vector.shape_cast %560 : vector<8xf32> to vector<8x1xf32>
    %562 = vector.broadcast %561 : vector<8x1xf32> to vector<8x8xf32>
    %563 = arith.subf %559, %562 : vector<8x8xf32>
    %564 = math.exp %563 : vector<8x8xf32>
    %cst_180 = arith.constant dense<0.000000e+00> : vector<8xf32>
    %565 = vector.multi_reduction <add>, %564, %cst_180 [1] : vector<8x8xf32> to vector<8xf32>
    %566 = vector.shape_cast %565 : vector<8xf32> to vector<8x1xf32>
    %567 = tpu.reciprocal %566 {approx = true} : vector<8x1xf32> -> vector<8x1xf32>
    %568 = vector.broadcast %567 : vector<8x1xf32> to vector<8x8xf32>
    %569 = arith.mulf %564, %568 : vector<8x8xf32>
    %570 = vector.extract_strided_slice %506 {offsets = [0, 16], sizes = [8, 8], strides = [1, 1]} : vector<8x32xf32> to vector<8x8xf32>
    %571 = arith.truncf %569 : vector<8x8xf32> to vector<8x8xbf16>
    %572 = arith.truncf %570 : vector<8x8xf32> to vector<8x8xbf16>
    %cst_181 = arith.constant dense<0.000000e+00> : vector<8x8xf32>
    %573 = tpu.matmul %571, %572, %cst_181 {dimension_numbers = #tpu.dot_dimension_numbers<[1], [0], [0], [1], [0, 0, 1, 1], [], []>} : vector<8x8xbf16>, vector<8x8xbf16>, vector<8x8xf32> -> vector<8x8xf32>
    %574 = vector.extract_strided_slice %490 {offsets = [16, 0], sizes = [8, 32], strides = [1, 1]} : vector<32x32xbf16> to vector<8x32xbf16>
    %575 = arith.truncf %573 : vector<8x8xf32> to vector<8x8xbf16>
    %cst_182 = arith.constant dense<0.000000e+00> : vector<8x32xf32>
    %576 = tpu.matmul %575, %574, %cst_182 {dimension_numbers = #tpu.dot_dimension_numbers<[1], [0], [0], [1], [0, 0, 1, 1], [], []>} : vector<8x8xbf16>, vector<8x32xbf16>, vector<8x32xf32> -> vector<8x32xf32>
    %577 = arith.addf %553, %576 : vector<8x32xf32>
    %578 = vector.extract_strided_slice %498 {offsets = [0, 24], sizes = [8, 8], strides = [1, 1]} : vector<8x32xf32> to vector<8x8xf32>
    %579 = vector.extract_strided_slice %505 {offsets = [0, 24], sizes = [8, 8], strides = [1, 1]} : vector<8x32xf32> to vector<8x8xf32>
    %580 = arith.truncf %578 : vector<8x8xf32> to vector<8x8xbf16>
    %581 = arith.truncf %579 : vector<8x8xf32> to vector<8x8xbf16>
    %cst_183 = arith.constant dense<0.000000e+00> : vector<8x8xf32>
    %582 = tpu.matmul %580, %581, %cst_183 {dimension_numbers = #tpu.dot_dimension_numbers<[1], [1], [0], [0], [0, 0, 1, 0], [], []>} : vector<8x8xbf16>, vector<8x8xbf16>, vector<8x8xf32> -> vector<8x8xf32>
    %583 = arith.addf %582, %5 : vector<8x8xf32>
    %cst_184 = arith.constant dense<0xFF800000> : vector<8xf32>
    %584 = vector.multi_reduction <maximumf>, %583, %cst_184 [1] : vector<8x8xf32> to vector<8xf32>
    %585 = vector.shape_cast %584 : vector<8xf32> to vector<8x1xf32>
    %586 = vector.broadcast %585 : vector<8x1xf32> to vector<8x8xf32>
    %587 = arith.subf %583, %586 : vector<8x8xf32>
    %588 = math.exp %587 : vector<8x8xf32>
    %cst_185 = arith.constant dense<0.000000e+00> : vector<8xf32>
    %589 = vector.multi_reduction <add>, %588, %cst_185 [1] : vector<8x8xf32> to vector<8xf32>
    %590 = vector.shape_cast %589 : vector<8xf32> to vector<8x1xf32>
    %591 = tpu.reciprocal %590 {approx = true} : vector<8x1xf32> -> vector<8x1xf32>
    %592 = vector.broadcast %591 : vector<8x1xf32> to vector<8x8xf32>
    %593 = arith.mulf %588, %592 : vector<8x8xf32>
    %594 = vector.extract_strided_slice %506 {offsets = [0, 24], sizes = [8, 8], strides = [1, 1]} : vector<8x32xf32> to vector<8x8xf32>
    %595 = arith.truncf %593 : vector<8x8xf32> to vector<8x8xbf16>
    %596 = arith.truncf %594 : vector<8x8xf32> to vector<8x8xbf16>
    %cst_186 = arith.constant dense<0.000000e+00> : vector<8x8xf32>
    %597 = tpu.matmul %595, %596, %cst_186 {dimension_numbers = #tpu.dot_dimension_numbers<[1], [0], [0], [1], [0, 0, 1, 1], [], []>} : vector<8x8xbf16>, vector<8x8xbf16>, vector<8x8xf32> -> vector<8x8xf32>
    %598 = vector.extract_strided_slice %490 {offsets = [24, 0], sizes = [8, 32], strides = [1, 1]} : vector<32x32xbf16> to vector<8x32xbf16>
    %599 = arith.truncf %597 : vector<8x8xf32> to vector<8x8xbf16>
    %cst_187 = arith.constant dense<0.000000e+00> : vector<8x32xf32>
    %600 = tpu.matmul %599, %598, %cst_187 {dimension_numbers = #tpu.dot_dimension_numbers<[1], [0], [0], [1], [0, 0, 1, 1], [], []>} : vector<8x8xbf16>, vector<8x32xbf16>, vector<8x32xf32> -> vector<8x32xf32>
    %601 = arith.addf %577, %600 : vector<8x32xf32>
    %602 = vector.broadcast %492 : vector<1x32xf32> to vector<8x32xf32>
    %603 = arith.addf %601, %602 : vector<8x32xf32>
    %604 = arith.addf %486, %603 : vector<8x32xf32>
    %c24 = arith.constant 24 : index
    %c0_188 = arith.constant 0 : index
    %605 = vector.load %arg10[%c24, %c0_188] : memref<48x128xf32, #tpu.memory_space<vmem>>, vector<1x32xf32>
    %c25 = arith.constant 25 : index
    %c0_189 = arith.constant 0 : index
    %606 = vector.load %arg10[%c25, %c0_189] : memref<48x128xf32, #tpu.memory_space<vmem>>, vector<1x32xf32>
    %cst_190 = arith.constant dense<0.000000e+00> : vector<8xf32>
    %607 = vector.multi_reduction <add>, %604, %cst_190 [1] : vector<8x32xf32> to vector<8xf32>
    %608 = vector.shape_cast %607 : vector<8xf32> to vector<8x1xf32>
    %cst_191 = arith.constant 3.200000e+01 : f32
    %609 = vector.broadcast %cst_191 : f32 to vector<8x1xf32>
    %610 = arith.divf %608, %609 : vector<8x1xf32>
    %611 = vector.broadcast %610 : vector<8x1xf32> to vector<8x32xf32>
    %612 = arith.subf %604, %611 : vector<8x32xf32>
    %613 = arith.mulf %612, %612 : vector<8x32xf32>
    %cst_192 = arith.constant dense<0.000000e+00> : vector<8xf32>
    %614 = vector.multi_reduction <add>, %613, %cst_192 [1] : vector<8x32xf32> to vector<8xf32>
    %615 = vector.shape_cast %614 : vector<8xf32> to vector<8x1xf32>
    %cst_193 = arith.constant 3.200000e+01 : f32
    %616 = vector.broadcast %cst_193 : f32 to vector<8x1xf32>
    %617 = arith.divf %615, %616 : vector<8x1xf32>
    %cst_194 = arith.constant 9.99999974E-6 : f32
    %618 = vector.broadcast %cst_194 : f32 to vector<8x1xf32>
    %619 = arith.addf %617, %618 : vector<8x1xf32>
    %620 = math.rsqrt %619 : vector<8x1xf32>
    %621 = vector.broadcast %620 : vector<8x1xf32> to vector<8x32xf32>
    %622 = arith.mulf %612, %621 : vector<8x32xf32>
    %623 = vector.broadcast %605 : vector<1x32xf32> to vector<8x32xf32>
    %624 = arith.mulf %622, %623 : vector<8x32xf32>
    %625 = vector.broadcast %606 : vector<1x32xf32> to vector<8x32xf32>
    %626 = arith.addf %624, %625 : vector<8x32xf32>
    %c2_195 = arith.constant 2 : index
    %c0_196 = arith.constant 0 : index
    %c0_197 = arith.constant 0 : index
    %627 = vector.load %arg8[%c2_195, %c0_196, %c0_197] : memref<4x32x64xbf16, #tpu.memory_space<vmem>>, vector<1x32x64xbf16>
    %628 = vector.shape_cast %627 : vector<1x32x64xbf16> to vector<32x64xbf16>
    %629 = arith.truncf %626 : vector<8x32xf32> to vector<8x32xbf16>
    %cst_198 = arith.constant dense<0.000000e+00> : vector<8x64xf32>
    %630 = tpu.matmul %629, %628, %cst_198 {dimension_numbers = #tpu.dot_dimension_numbers<[1], [0], [0], [1], [0, 0, 1, 1], [], []>} : vector<8x32xbf16>, vector<32x64xbf16>, vector<8x64xf32> -> vector<8x64xf32>
    %c20 = arith.constant 20 : index
    %c0_199 = arith.constant 0 : index
    %631 = vector.load %arg10[%c20, %c0_199] : memref<48x128xf32, #tpu.memory_space<vmem>>, vector<1x64xf32>
    %632 = vector.broadcast %631 : vector<1x64xf32> to vector<8x64xf32>
    %633 = arith.addf %630, %632 : vector<8x64xf32>
    %cst_200 = arith.constant 0.000000e+00 : f32
    %634 = vector.broadcast %cst_200 : f32 to vector<8x64xf32>
    %635 = arith.maximumf %633, %634 : vector<8x64xf32>
    %c2_201 = arith.constant 2 : index
    %c0_202 = arith.constant 0 : index
    %c0_203 = arith.constant 0 : index
    %636 = vector.load %arg9[%c2_201, %c0_202, %c0_203] : memref<4x64x32xbf16, #tpu.memory_space<vmem>>, vector<1x64x32xbf16>
    %637 = vector.shape_cast %636 : vector<1x64x32xbf16> to vector<64x32xbf16>
    %638 = arith.truncf %635 : vector<8x64xf32> to vector<8x64xbf16>
    %cst_204 = arith.constant dense<0.000000e+00> : vector<8x32xf32>
    %639 = tpu.matmul %638, %637, %cst_204 {dimension_numbers = #tpu.dot_dimension_numbers<[1], [0], [0], [1], [0, 0, 1, 1], [], []>} : vector<8x64xbf16>, vector<64x32xbf16>, vector<8x32xf32> -> vector<8x32xf32>
    %c21 = arith.constant 21 : index
    %c0_205 = arith.constant 0 : index
    %640 = vector.load %arg10[%c21, %c0_205] : memref<48x128xf32, #tpu.memory_space<vmem>>, vector<1x32xf32>
    %641 = vector.broadcast %640 : vector<1x32xf32> to vector<8x32xf32>
    %642 = arith.addf %639, %641 : vector<8x32xf32>
    %643 = arith.addf %626, %642 : vector<8x32xf32>
    %c26 = arith.constant 26 : index
    %c0_206 = arith.constant 0 : index
    %644 = vector.load %arg10[%c26, %c0_206] : memref<48x128xf32, #tpu.memory_space<vmem>>, vector<1x32xf32>
    %c27 = arith.constant 27 : index
    %c0_207 = arith.constant 0 : index
    %645 = vector.load %arg10[%c27, %c0_207] : memref<48x128xf32, #tpu.memory_space<vmem>>, vector<1x32xf32>
    %cst_208 = arith.constant dense<0.000000e+00> : vector<8xf32>
    %646 = vector.multi_reduction <add>, %643, %cst_208 [1] : vector<8x32xf32> to vector<8xf32>
    %647 = vector.shape_cast %646 : vector<8xf32> to vector<8x1xf32>
    %cst_209 = arith.constant 3.200000e+01 : f32
    %648 = vector.broadcast %cst_209 : f32 to vector<8x1xf32>
    %649 = arith.divf %647, %648 : vector<8x1xf32>
    %650 = vector.broadcast %649 : vector<8x1xf32> to vector<8x32xf32>
    %651 = arith.subf %643, %650 : vector<8x32xf32>
    %652 = arith.mulf %651, %651 : vector<8x32xf32>
    %cst_210 = arith.constant dense<0.000000e+00> : vector<8xf32>
    %653 = vector.multi_reduction <add>, %652, %cst_210 [1] : vector<8x32xf32> to vector<8xf32>
    %654 = vector.shape_cast %653 : vector<8xf32> to vector<8x1xf32>
    %cst_211 = arith.constant 3.200000e+01 : f32
    %655 = vector.broadcast %cst_211 : f32 to vector<8x1xf32>
    %656 = arith.divf %654, %655 : vector<8x1xf32>
    %cst_212 = arith.constant 9.99999974E-6 : f32
    %657 = vector.broadcast %cst_212 : f32 to vector<8x1xf32>
    %658 = arith.addf %656, %657 : vector<8x1xf32>
    %659 = math.rsqrt %658 : vector<8x1xf32>
    %660 = vector.broadcast %659 : vector<8x1xf32> to vector<8x32xf32>
    %661 = arith.mulf %651, %660 : vector<8x32xf32>
    %662 = vector.broadcast %644 : vector<1x32xf32> to vector<8x32xf32>
    %663 = arith.mulf %661, %662 : vector<8x32xf32>
    %664 = vector.broadcast %645 : vector<1x32xf32> to vector<8x32xf32>
    %665 = arith.addf %663, %664 : vector<8x32xf32>
    %c3_213 = arith.constant 3 : index
    %c0_214 = arith.constant 0 : index
    %c0_215 = arith.constant 0 : index
    %666 = vector.load %arg6[%c3_213, %c0_214, %c0_215] : memref<6x32x96xbf16, #tpu.memory_space<vmem>>, vector<1x32x96xbf16>
    %667 = vector.shape_cast %666 : vector<1x32x96xbf16> to vector<32x96xbf16>
    %c3_216 = arith.constant 3 : index
    %c0_217 = arith.constant 0 : index
    %c0_218 = arith.constant 0 : index
    %668 = vector.load %arg7[%c3_216, %c0_217, %c0_218] : memref<6x32x32xbf16, #tpu.memory_space<vmem>>, vector<1x32x32xbf16>
    %669 = vector.shape_cast %668 : vector<1x32x32xbf16> to vector<32x32xbf16>
    %c28 = arith.constant 28 : index
    %c0_219 = arith.constant 0 : index
    %670 = vector.load %arg10[%c28, %c0_219] : memref<48x128xf32, #tpu.memory_space<vmem>>, vector<1x96xf32>
    %c29 = arith.constant 29 : index
    %c0_220 = arith.constant 0 : index
    %671 = vector.load %arg10[%c29, %c0_220] : memref<48x128xf32, #tpu.memory_space<vmem>>, vector<1x32xf32>
    %672 = arith.truncf %665 : vector<8x32xf32> to vector<8x32xbf16>
    %cst_221 = arith.constant dense<0.000000e+00> : vector<8x96xf32>
    %673 = tpu.matmul %672, %667, %cst_221 {dimension_numbers = #tpu.dot_dimension_numbers<[1], [0], [0], [1], [0, 0, 1, 1], [], []>} : vector<8x32xbf16>, vector<32x96xbf16>, vector<8x96xf32> -> vector<8x96xf32>
    %674 = vector.broadcast %670 : vector<1x96xf32> to vector<8x96xf32>
    %675 = arith.addf %673, %674 : vector<8x96xf32>
    %676 = vector.extract_strided_slice %675 {offsets = [0, 0], sizes = [8, 32], strides = [1, 1]} : vector<8x96xf32> to vector<8x32xf32>
    %677 = vector.extract_strided_slice %675 {offsets = [0, 32], sizes = [8, 32], strides = [1, 1]} : vector<8x96xf32> to vector<8x32xf32>
    %678 = vector.extract_strided_slice %675 {offsets = [0, 64], sizes = [8, 32], strides = [1, 1]} : vector<8x96xf32> to vector<8x32xf32>
    %679 = vector.extract_strided_slice %676 {offsets = [0, 0], sizes = [8, 8], strides = [1, 1]} : vector<8x32xf32> to vector<8x8xf32>
    %680 = vector.extract_strided_slice %677 {offsets = [0, 0], sizes = [8, 8], strides = [1, 1]} : vector<8x32xf32> to vector<8x8xf32>
    %681 = arith.truncf %679 : vector<8x8xf32> to vector<8x8xbf16>
    %682 = arith.truncf %680 : vector<8x8xf32> to vector<8x8xbf16>
    %cst_222 = arith.constant dense<0.000000e+00> : vector<8x8xf32>
    %683 = tpu.matmul %681, %682, %cst_222 {dimension_numbers = #tpu.dot_dimension_numbers<[1], [1], [0], [0], [0, 0, 1, 0], [], []>} : vector<8x8xbf16>, vector<8x8xbf16>, vector<8x8xf32> -> vector<8x8xf32>
    %684 = arith.addf %683, %3 : vector<8x8xf32>
    %cst_223 = arith.constant dense<0xFF800000> : vector<8xf32>
    %685 = vector.multi_reduction <maximumf>, %684, %cst_223 [1] : vector<8x8xf32> to vector<8xf32>
    %686 = vector.shape_cast %685 : vector<8xf32> to vector<8x1xf32>
    %687 = vector.broadcast %686 : vector<8x1xf32> to vector<8x8xf32>
    %688 = arith.subf %684, %687 : vector<8x8xf32>
    %689 = math.exp %688 : vector<8x8xf32>
    %cst_224 = arith.constant dense<0.000000e+00> : vector<8xf32>
    %690 = vector.multi_reduction <add>, %689, %cst_224 [1] : vector<8x8xf32> to vector<8xf32>
    %691 = vector.shape_cast %690 : vector<8xf32> to vector<8x1xf32>
    %692 = tpu.reciprocal %691 {approx = true} : vector<8x1xf32> -> vector<8x1xf32>
    %693 = vector.broadcast %692 : vector<8x1xf32> to vector<8x8xf32>
    %694 = arith.mulf %689, %693 : vector<8x8xf32>
    %695 = vector.extract_strided_slice %678 {offsets = [0, 0], sizes = [8, 8], strides = [1, 1]} : vector<8x32xf32> to vector<8x8xf32>
    %696 = arith.truncf %694 : vector<8x8xf32> to vector<8x8xbf16>
    %697 = arith.truncf %695 : vector<8x8xf32> to vector<8x8xbf16>
    %cst_225 = arith.constant dense<0.000000e+00> : vector<8x8xf32>
    %698 = tpu.matmul %696, %697, %cst_225 {dimension_numbers = #tpu.dot_dimension_numbers<[1], [0], [0], [1], [0, 0, 1, 1], [], []>} : vector<8x8xbf16>, vector<8x8xbf16>, vector<8x8xf32> -> vector<8x8xf32>
    %699 = vector.extract_strided_slice %669 {offsets = [0, 0], sizes = [8, 32], strides = [1, 1]} : vector<32x32xbf16> to vector<8x32xbf16>
    %700 = arith.truncf %698 : vector<8x8xf32> to vector<8x8xbf16>
    %cst_226 = arith.constant dense<0.000000e+00> : vector<8x32xf32>
    %701 = tpu.matmul %700, %699, %cst_226 {dimension_numbers = #tpu.dot_dimension_numbers<[1], [0], [0], [1], [0, 0, 1, 1], [], []>} : vector<8x8xbf16>, vector<8x32xbf16>, vector<8x32xf32> -> vector<8x32xf32>
    %702 = vector.extract_strided_slice %676 {offsets = [0, 8], sizes = [8, 8], strides = [1, 1]} : vector<8x32xf32> to vector<8x8xf32>
    %703 = vector.extract_strided_slice %677 {offsets = [0, 8], sizes = [8, 8], strides = [1, 1]} : vector<8x32xf32> to vector<8x8xf32>
    %704 = arith.truncf %702 : vector<8x8xf32> to vector<8x8xbf16>
    %705 = arith.truncf %703 : vector<8x8xf32> to vector<8x8xbf16>
    %cst_227 = arith.constant dense<0.000000e+00> : vector<8x8xf32>
    %706 = tpu.matmul %704, %705, %cst_227 {dimension_numbers = #tpu.dot_dimension_numbers<[1], [1], [0], [0], [0, 0, 1, 0], [], []>} : vector<8x8xbf16>, vector<8x8xbf16>, vector<8x8xf32> -> vector<8x8xf32>
    %707 = arith.addf %706, %3 : vector<8x8xf32>
    %cst_228 = arith.constant dense<0xFF800000> : vector<8xf32>
    %708 = vector.multi_reduction <maximumf>, %707, %cst_228 [1] : vector<8x8xf32> to vector<8xf32>
    %709 = vector.shape_cast %708 : vector<8xf32> to vector<8x1xf32>
    %710 = vector.broadcast %709 : vector<8x1xf32> to vector<8x8xf32>
    %711 = arith.subf %707, %710 : vector<8x8xf32>
    %712 = math.exp %711 : vector<8x8xf32>
    %cst_229 = arith.constant dense<0.000000e+00> : vector<8xf32>
    %713 = vector.multi_reduction <add>, %712, %cst_229 [1] : vector<8x8xf32> to vector<8xf32>
    %714 = vector.shape_cast %713 : vector<8xf32> to vector<8x1xf32>
    %715 = tpu.reciprocal %714 {approx = true} : vector<8x1xf32> -> vector<8x1xf32>
    %716 = vector.broadcast %715 : vector<8x1xf32> to vector<8x8xf32>
    %717 = arith.mulf %712, %716 : vector<8x8xf32>
    %718 = vector.extract_strided_slice %678 {offsets = [0, 8], sizes = [8, 8], strides = [1, 1]} : vector<8x32xf32> to vector<8x8xf32>
    %719 = arith.truncf %717 : vector<8x8xf32> to vector<8x8xbf16>
    %720 = arith.truncf %718 : vector<8x8xf32> to vector<8x8xbf16>
    %cst_230 = arith.constant dense<0.000000e+00> : vector<8x8xf32>
    %721 = tpu.matmul %719, %720, %cst_230 {dimension_numbers = #tpu.dot_dimension_numbers<[1], [0], [0], [1], [0, 0, 1, 1], [], []>} : vector<8x8xbf16>, vector<8x8xbf16>, vector<8x8xf32> -> vector<8x8xf32>
    %722 = vector.extract_strided_slice %669 {offsets = [8, 0], sizes = [8, 32], strides = [1, 1]} : vector<32x32xbf16> to vector<8x32xbf16>
    %723 = arith.truncf %721 : vector<8x8xf32> to vector<8x8xbf16>
    %cst_231 = arith.constant dense<0.000000e+00> : vector<8x32xf32>
    %724 = tpu.matmul %723, %722, %cst_231 {dimension_numbers = #tpu.dot_dimension_numbers<[1], [0], [0], [1], [0, 0, 1, 1], [], []>} : vector<8x8xbf16>, vector<8x32xbf16>, vector<8x32xf32> -> vector<8x32xf32>
    %725 = arith.addf %701, %724 : vector<8x32xf32>
    %726 = vector.extract_strided_slice %676 {offsets = [0, 16], sizes = [8, 8], strides = [1, 1]} : vector<8x32xf32> to vector<8x8xf32>
    %727 = vector.extract_strided_slice %677 {offsets = [0, 16], sizes = [8, 8], strides = [1, 1]} : vector<8x32xf32> to vector<8x8xf32>
    %728 = arith.truncf %726 : vector<8x8xf32> to vector<8x8xbf16>
    %729 = arith.truncf %727 : vector<8x8xf32> to vector<8x8xbf16>
    %cst_232 = arith.constant dense<0.000000e+00> : vector<8x8xf32>
    %730 = tpu.matmul %728, %729, %cst_232 {dimension_numbers = #tpu.dot_dimension_numbers<[1], [1], [0], [0], [0, 0, 1, 0], [], []>} : vector<8x8xbf16>, vector<8x8xbf16>, vector<8x8xf32> -> vector<8x8xf32>
    %731 = arith.addf %730, %3 : vector<8x8xf32>
    %cst_233 = arith.constant dense<0xFF800000> : vector<8xf32>
    %732 = vector.multi_reduction <maximumf>, %731, %cst_233 [1] : vector<8x8xf32> to vector<8xf32>
    %733 = vector.shape_cast %732 : vector<8xf32> to vector<8x1xf32>
    %734 = vector.broadcast %733 : vector<8x1xf32> to vector<8x8xf32>
    %735 = arith.subf %731, %734 : vector<8x8xf32>
    %736 = math.exp %735 : vector<8x8xf32>
    %cst_234 = arith.constant dense<0.000000e+00> : vector<8xf32>
    %737 = vector.multi_reduction <add>, %736, %cst_234 [1] : vector<8x8xf32> to vector<8xf32>
    %738 = vector.shape_cast %737 : vector<8xf32> to vector<8x1xf32>
    %739 = tpu.reciprocal %738 {approx = true} : vector<8x1xf32> -> vector<8x1xf32>
    %740 = vector.broadcast %739 : vector<8x1xf32> to vector<8x8xf32>
    %741 = arith.mulf %736, %740 : vector<8x8xf32>
    %742 = vector.extract_strided_slice %678 {offsets = [0, 16], sizes = [8, 8], strides = [1, 1]} : vector<8x32xf32> to vector<8x8xf32>
    %743 = arith.truncf %741 : vector<8x8xf32> to vector<8x8xbf16>
    %744 = arith.truncf %742 : vector<8x8xf32> to vector<8x8xbf16>
    %cst_235 = arith.constant dense<0.000000e+00> : vector<8x8xf32>
    %745 = tpu.matmul %743, %744, %cst_235 {dimension_numbers = #tpu.dot_dimension_numbers<[1], [0], [0], [1], [0, 0, 1, 1], [], []>} : vector<8x8xbf16>, vector<8x8xbf16>, vector<8x8xf32> -> vector<8x8xf32>
    %746 = vector.extract_strided_slice %669 {offsets = [16, 0], sizes = [8, 32], strides = [1, 1]} : vector<32x32xbf16> to vector<8x32xbf16>
    %747 = arith.truncf %745 : vector<8x8xf32> to vector<8x8xbf16>
    %cst_236 = arith.constant dense<0.000000e+00> : vector<8x32xf32>
    %748 = tpu.matmul %747, %746, %cst_236 {dimension_numbers = #tpu.dot_dimension_numbers<[1], [0], [0], [1], [0, 0, 1, 1], [], []>} : vector<8x8xbf16>, vector<8x32xbf16>, vector<8x32xf32> -> vector<8x32xf32>
    %749 = arith.addf %725, %748 : vector<8x32xf32>
    %750 = vector.extract_strided_slice %676 {offsets = [0, 24], sizes = [8, 8], strides = [1, 1]} : vector<8x32xf32> to vector<8x8xf32>
    %751 = vector.extract_strided_slice %677 {offsets = [0, 24], sizes = [8, 8], strides = [1, 1]} : vector<8x32xf32> to vector<8x8xf32>
    %752 = arith.truncf %750 : vector<8x8xf32> to vector<8x8xbf16>
    %753 = arith.truncf %751 : vector<8x8xf32> to vector<8x8xbf16>
    %cst_237 = arith.constant dense<0.000000e+00> : vector<8x8xf32>
    %754 = tpu.matmul %752, %753, %cst_237 {dimension_numbers = #tpu.dot_dimension_numbers<[1], [1], [0], [0], [0, 0, 1, 0], [], []>} : vector<8x8xbf16>, vector<8x8xbf16>, vector<8x8xf32> -> vector<8x8xf32>
    %755 = arith.addf %754, %3 : vector<8x8xf32>
    %cst_238 = arith.constant dense<0xFF800000> : vector<8xf32>
    %756 = vector.multi_reduction <maximumf>, %755, %cst_238 [1] : vector<8x8xf32> to vector<8xf32>
    %757 = vector.shape_cast %756 : vector<8xf32> to vector<8x1xf32>
    %758 = vector.broadcast %757 : vector<8x1xf32> to vector<8x8xf32>
    %759 = arith.subf %755, %758 : vector<8x8xf32>
    %760 = math.exp %759 : vector<8x8xf32>
    %cst_239 = arith.constant dense<0.000000e+00> : vector<8xf32>
    %761 = vector.multi_reduction <add>, %760, %cst_239 [1] : vector<8x8xf32> to vector<8xf32>
    %762 = vector.shape_cast %761 : vector<8xf32> to vector<8x1xf32>
    %763 = tpu.reciprocal %762 {approx = true} : vector<8x1xf32> -> vector<8x1xf32>
    %764 = vector.broadcast %763 : vector<8x1xf32> to vector<8x8xf32>
    %765 = arith.mulf %760, %764 : vector<8x8xf32>
    %766 = vector.extract_strided_slice %678 {offsets = [0, 24], sizes = [8, 8], strides = [1, 1]} : vector<8x32xf32> to vector<8x8xf32>
    %767 = arith.truncf %765 : vector<8x8xf32> to vector<8x8xbf16>
    %768 = arith.truncf %766 : vector<8x8xf32> to vector<8x8xbf16>
    %cst_240 = arith.constant dense<0.000000e+00> : vector<8x8xf32>
    %769 = tpu.matmul %767, %768, %cst_240 {dimension_numbers = #tpu.dot_dimension_numbers<[1], [0], [0], [1], [0, 0, 1, 1], [], []>} : vector<8x8xbf16>, vector<8x8xbf16>, vector<8x8xf32> -> vector<8x8xf32>
    %770 = vector.extract_strided_slice %669 {offsets = [24, 0], sizes = [8, 32], strides = [1, 1]} : vector<32x32xbf16> to vector<8x32xbf16>
    %771 = arith.truncf %769 : vector<8x8xf32> to vector<8x8xbf16>
    %cst_241 = arith.constant dense<0.000000e+00> : vector<8x32xf32>
    %772 = tpu.matmul %771, %770, %cst_241 {dimension_numbers = #tpu.dot_dimension_numbers<[1], [0], [0], [1], [0, 0, 1, 1], [], []>} : vector<8x8xbf16>, vector<8x32xbf16>, vector<8x32xf32> -> vector<8x32xf32>
    %773 = arith.addf %749, %772 : vector<8x32xf32>
    %774 = vector.broadcast %671 : vector<1x32xf32> to vector<8x32xf32>
    %775 = arith.addf %773, %774 : vector<8x32xf32>
    %776 = arith.addf %665, %775 : vector<8x32xf32>
    %c34 = arith.constant 34 : index
    %c0_242 = arith.constant 0 : index
    %777 = vector.load %arg10[%c34, %c0_242] : memref<48x128xf32, #tpu.memory_space<vmem>>, vector<1x32xf32>
    %c35 = arith.constant 35 : index
    %c0_243 = arith.constant 0 : index
    %778 = vector.load %arg10[%c35, %c0_243] : memref<48x128xf32, #tpu.memory_space<vmem>>, vector<1x32xf32>
    %cst_244 = arith.constant dense<0.000000e+00> : vector<8xf32>
    %779 = vector.multi_reduction <add>, %776, %cst_244 [1] : vector<8x32xf32> to vector<8xf32>
    %780 = vector.shape_cast %779 : vector<8xf32> to vector<8x1xf32>
    %cst_245 = arith.constant 3.200000e+01 : f32
    %781 = vector.broadcast %cst_245 : f32 to vector<8x1xf32>
    %782 = arith.divf %780, %781 : vector<8x1xf32>
    %783 = vector.broadcast %782 : vector<8x1xf32> to vector<8x32xf32>
    %784 = arith.subf %776, %783 : vector<8x32xf32>
    %785 = arith.mulf %784, %784 : vector<8x32xf32>
    %cst_246 = arith.constant dense<0.000000e+00> : vector<8xf32>
    %786 = vector.multi_reduction <add>, %785, %cst_246 [1] : vector<8x32xf32> to vector<8xf32>
    %787 = vector.shape_cast %786 : vector<8xf32> to vector<8x1xf32>
    %cst_247 = arith.constant 3.200000e+01 : f32
    %788 = vector.broadcast %cst_247 : f32 to vector<8x1xf32>
    %789 = arith.divf %787, %788 : vector<8x1xf32>
    %cst_248 = arith.constant 9.99999974E-6 : f32
    %790 = vector.broadcast %cst_248 : f32 to vector<8x1xf32>
    %791 = arith.addf %789, %790 : vector<8x1xf32>
    %792 = math.rsqrt %791 : vector<8x1xf32>
    %793 = vector.broadcast %792 : vector<8x1xf32> to vector<8x32xf32>
    %794 = arith.mulf %784, %793 : vector<8x32xf32>
    %795 = vector.broadcast %777 : vector<1x32xf32> to vector<8x32xf32>
    %796 = arith.mulf %794, %795 : vector<8x32xf32>
    %797 = vector.broadcast %778 : vector<1x32xf32> to vector<8x32xf32>
    %798 = arith.addf %796, %797 : vector<8x32xf32>
    %c5_249 = arith.constant 5 : index
    %c0_250 = arith.constant 0 : index
    %c0_251 = arith.constant 0 : index
    %799 = vector.load %arg6[%c5_249, %c0_250, %c0_251] : memref<6x32x96xbf16, #tpu.memory_space<vmem>>, vector<1x32x96xbf16>
    %800 = vector.shape_cast %799 : vector<1x32x96xbf16> to vector<32x96xbf16>
    %c5_252 = arith.constant 5 : index
    %c0_253 = arith.constant 0 : index
    %c0_254 = arith.constant 0 : index
    %801 = vector.load %arg7[%c5_252, %c0_253, %c0_254] : memref<6x32x32xbf16, #tpu.memory_space<vmem>>, vector<1x32x32xbf16>
    %802 = vector.shape_cast %801 : vector<1x32x32xbf16> to vector<32x32xbf16>
    %c30 = arith.constant 30 : index
    %c0_255 = arith.constant 0 : index
    %803 = vector.load %arg10[%c30, %c0_255] : memref<48x128xf32, #tpu.memory_space<vmem>>, vector<1x96xf32>
    %c31 = arith.constant 31 : index
    %c0_256 = arith.constant 0 : index
    %804 = vector.load %arg10[%c31, %c0_256] : memref<48x128xf32, #tpu.memory_space<vmem>>, vector<1x32xf32>
    %805 = vector.extract_strided_slice %800 {offsets = [0, 0], sizes = [32, 32], strides = [1, 1]} : vector<32x96xbf16> to vector<32x32xbf16>
    %806 = arith.truncf %798 : vector<8x32xf32> to vector<8x32xbf16>
    %cst_257 = arith.constant dense<0.000000e+00> : vector<8x32xf32>
    %807 = tpu.matmul %806, %805, %cst_257 {dimension_numbers = #tpu.dot_dimension_numbers<[1], [0], [0], [1], [0, 0, 1, 1], [], []>} : vector<8x32xbf16>, vector<32x32xbf16>, vector<8x32xf32> -> vector<8x32xf32>
    %808 = vector.extract_strided_slice %803 {offsets = [0, 0], sizes = [1, 32], strides = [1, 1]} : vector<1x96xf32> to vector<1x32xf32>
    %809 = vector.broadcast %808 : vector<1x32xf32> to vector<8x32xf32>
    %810 = arith.addf %807, %809 : vector<8x32xf32>
    %811 = vector.extract_strided_slice %800 {offsets = [0, 32], sizes = [32, 64], strides = [1, 1]} : vector<32x96xbf16> to vector<32x64xbf16>
    %812 = arith.truncf %351 : vector<8x32xf32> to vector<8x32xbf16>
    %cst_258 = arith.constant dense<0.000000e+00> : vector<8x64xf32>
    %813 = tpu.matmul %812, %811, %cst_258 {dimension_numbers = #tpu.dot_dimension_numbers<[1], [0], [0], [1], [0, 0, 1, 1], [], []>} : vector<8x32xbf16>, vector<32x64xbf16>, vector<8x64xf32> -> vector<8x64xf32>
    %814 = vector.extract_strided_slice %803 {offsets = [0, 32], sizes = [1, 64], strides = [1, 1]} : vector<1x96xf32> to vector<1x64xf32>
    %815 = vector.broadcast %814 : vector<1x64xf32> to vector<8x64xf32>
    %816 = arith.addf %813, %815 : vector<8x64xf32>
    %817 = vector.extract_strided_slice %816 {offsets = [0, 0], sizes = [8, 32], strides = [1, 1]} : vector<8x64xf32> to vector<8x32xf32>
    %818 = vector.extract_strided_slice %816 {offsets = [0, 32], sizes = [8, 32], strides = [1, 1]} : vector<8x64xf32> to vector<8x32xf32>
    %819 = vector.extract_strided_slice %810 {offsets = [0, 0], sizes = [8, 8], strides = [1, 1]} : vector<8x32xf32> to vector<8x8xf32>
    %820 = vector.extract_strided_slice %817 {offsets = [0, 0], sizes = [8, 8], strides = [1, 1]} : vector<8x32xf32> to vector<8x8xf32>
    %821 = arith.truncf %819 : vector<8x8xf32> to vector<8x8xbf16>
    %822 = arith.truncf %820 : vector<8x8xf32> to vector<8x8xbf16>
    %cst_259 = arith.constant dense<0.000000e+00> : vector<8x8xf32>
    %823 = tpu.matmul %821, %822, %cst_259 {dimension_numbers = #tpu.dot_dimension_numbers<[1], [1], [0], [0], [0, 0, 1, 0], [], []>} : vector<8x8xbf16>, vector<8x8xbf16>, vector<8x8xf32> -> vector<8x8xf32>
    %824 = arith.addf %823, %5 : vector<8x8xf32>
    %cst_260 = arith.constant dense<0xFF800000> : vector<8xf32>
    %825 = vector.multi_reduction <maximumf>, %824, %cst_260 [1] : vector<8x8xf32> to vector<8xf32>
    %826 = vector.shape_cast %825 : vector<8xf32> to vector<8x1xf32>
    %827 = vector.broadcast %826 : vector<8x1xf32> to vector<8x8xf32>
    %828 = arith.subf %824, %827 : vector<8x8xf32>
    %829 = math.exp %828 : vector<8x8xf32>
    %cst_261 = arith.constant dense<0.000000e+00> : vector<8xf32>
    %830 = vector.multi_reduction <add>, %829, %cst_261 [1] : vector<8x8xf32> to vector<8xf32>
    %831 = vector.shape_cast %830 : vector<8xf32> to vector<8x1xf32>
    %832 = tpu.reciprocal %831 {approx = true} : vector<8x1xf32> -> vector<8x1xf32>
    %833 = vector.broadcast %832 : vector<8x1xf32> to vector<8x8xf32>
    %834 = arith.mulf %829, %833 : vector<8x8xf32>
    %835 = vector.extract_strided_slice %818 {offsets = [0, 0], sizes = [8, 8], strides = [1, 1]} : vector<8x32xf32> to vector<8x8xf32>
    %836 = arith.truncf %834 : vector<8x8xf32> to vector<8x8xbf16>
    %837 = arith.truncf %835 : vector<8x8xf32> to vector<8x8xbf16>
    %cst_262 = arith.constant dense<0.000000e+00> : vector<8x8xf32>
    %838 = tpu.matmul %836, %837, %cst_262 {dimension_numbers = #tpu.dot_dimension_numbers<[1], [0], [0], [1], [0, 0, 1, 1], [], []>} : vector<8x8xbf16>, vector<8x8xbf16>, vector<8x8xf32> -> vector<8x8xf32>
    %839 = vector.extract_strided_slice %802 {offsets = [0, 0], sizes = [8, 32], strides = [1, 1]} : vector<32x32xbf16> to vector<8x32xbf16>
    %840 = arith.truncf %838 : vector<8x8xf32> to vector<8x8xbf16>
    %cst_263 = arith.constant dense<0.000000e+00> : vector<8x32xf32>
    %841 = tpu.matmul %840, %839, %cst_263 {dimension_numbers = #tpu.dot_dimension_numbers<[1], [0], [0], [1], [0, 0, 1, 1], [], []>} : vector<8x8xbf16>, vector<8x32xbf16>, vector<8x32xf32> -> vector<8x32xf32>
    %842 = vector.extract_strided_slice %810 {offsets = [0, 8], sizes = [8, 8], strides = [1, 1]} : vector<8x32xf32> to vector<8x8xf32>
    %843 = vector.extract_strided_slice %817 {offsets = [0, 8], sizes = [8, 8], strides = [1, 1]} : vector<8x32xf32> to vector<8x8xf32>
    %844 = arith.truncf %842 : vector<8x8xf32> to vector<8x8xbf16>
    %845 = arith.truncf %843 : vector<8x8xf32> to vector<8x8xbf16>
    %cst_264 = arith.constant dense<0.000000e+00> : vector<8x8xf32>
    %846 = tpu.matmul %844, %845, %cst_264 {dimension_numbers = #tpu.dot_dimension_numbers<[1], [1], [0], [0], [0, 0, 1, 0], [], []>} : vector<8x8xbf16>, vector<8x8xbf16>, vector<8x8xf32> -> vector<8x8xf32>
    %847 = arith.addf %846, %5 : vector<8x8xf32>
    %cst_265 = arith.constant dense<0xFF800000> : vector<8xf32>
    %848 = vector.multi_reduction <maximumf>, %847, %cst_265 [1] : vector<8x8xf32> to vector<8xf32>
    %849 = vector.shape_cast %848 : vector<8xf32> to vector<8x1xf32>
    %850 = vector.broadcast %849 : vector<8x1xf32> to vector<8x8xf32>
    %851 = arith.subf %847, %850 : vector<8x8xf32>
    %852 = math.exp %851 : vector<8x8xf32>
    %cst_266 = arith.constant dense<0.000000e+00> : vector<8xf32>
    %853 = vector.multi_reduction <add>, %852, %cst_266 [1] : vector<8x8xf32> to vector<8xf32>
    %854 = vector.shape_cast %853 : vector<8xf32> to vector<8x1xf32>
    %855 = tpu.reciprocal %854 {approx = true} : vector<8x1xf32> -> vector<8x1xf32>
    %856 = vector.broadcast %855 : vector<8x1xf32> to vector<8x8xf32>
    %857 = arith.mulf %852, %856 : vector<8x8xf32>
    %858 = vector.extract_strided_slice %818 {offsets = [0, 8], sizes = [8, 8], strides = [1, 1]} : vector<8x32xf32> to vector<8x8xf32>
    %859 = arith.truncf %857 : vector<8x8xf32> to vector<8x8xbf16>
    %860 = arith.truncf %858 : vector<8x8xf32> to vector<8x8xbf16>
    %cst_267 = arith.constant dense<0.000000e+00> : vector<8x8xf32>
    %861 = tpu.matmul %859, %860, %cst_267 {dimension_numbers = #tpu.dot_dimension_numbers<[1], [0], [0], [1], [0, 0, 1, 1], [], []>} : vector<8x8xbf16>, vector<8x8xbf16>, vector<8x8xf32> -> vector<8x8xf32>
    %862 = vector.extract_strided_slice %802 {offsets = [8, 0], sizes = [8, 32], strides = [1, 1]} : vector<32x32xbf16> to vector<8x32xbf16>
    %863 = arith.truncf %861 : vector<8x8xf32> to vector<8x8xbf16>
    %cst_268 = arith.constant dense<0.000000e+00> : vector<8x32xf32>
    %864 = tpu.matmul %863, %862, %cst_268 {dimension_numbers = #tpu.dot_dimension_numbers<[1], [0], [0], [1], [0, 0, 1, 1], [], []>} : vector<8x8xbf16>, vector<8x32xbf16>, vector<8x32xf32> -> vector<8x32xf32>
    %865 = arith.addf %841, %864 : vector<8x32xf32>
    %866 = vector.extract_strided_slice %810 {offsets = [0, 16], sizes = [8, 8], strides = [1, 1]} : vector<8x32xf32> to vector<8x8xf32>
    %867 = vector.extract_strided_slice %817 {offsets = [0, 16], sizes = [8, 8], strides = [1, 1]} : vector<8x32xf32> to vector<8x8xf32>
    %868 = arith.truncf %866 : vector<8x8xf32> to vector<8x8xbf16>
    %869 = arith.truncf %867 : vector<8x8xf32> to vector<8x8xbf16>
    %cst_269 = arith.constant dense<0.000000e+00> : vector<8x8xf32>
    %870 = tpu.matmul %868, %869, %cst_269 {dimension_numbers = #tpu.dot_dimension_numbers<[1], [1], [0], [0], [0, 0, 1, 0], [], []>} : vector<8x8xbf16>, vector<8x8xbf16>, vector<8x8xf32> -> vector<8x8xf32>
    %871 = arith.addf %870, %5 : vector<8x8xf32>
    %cst_270 = arith.constant dense<0xFF800000> : vector<8xf32>
    %872 = vector.multi_reduction <maximumf>, %871, %cst_270 [1] : vector<8x8xf32> to vector<8xf32>
    %873 = vector.shape_cast %872 : vector<8xf32> to vector<8x1xf32>
    %874 = vector.broadcast %873 : vector<8x1xf32> to vector<8x8xf32>
    %875 = arith.subf %871, %874 : vector<8x8xf32>
    %876 = math.exp %875 : vector<8x8xf32>
    %cst_271 = arith.constant dense<0.000000e+00> : vector<8xf32>
    %877 = vector.multi_reduction <add>, %876, %cst_271 [1] : vector<8x8xf32> to vector<8xf32>
    %878 = vector.shape_cast %877 : vector<8xf32> to vector<8x1xf32>
    %879 = tpu.reciprocal %878 {approx = true} : vector<8x1xf32> -> vector<8x1xf32>
    %880 = vector.broadcast %879 : vector<8x1xf32> to vector<8x8xf32>
    %881 = arith.mulf %876, %880 : vector<8x8xf32>
    %882 = vector.extract_strided_slice %818 {offsets = [0, 16], sizes = [8, 8], strides = [1, 1]} : vector<8x32xf32> to vector<8x8xf32>
    %883 = arith.truncf %881 : vector<8x8xf32> to vector<8x8xbf16>
    %884 = arith.truncf %882 : vector<8x8xf32> to vector<8x8xbf16>
    %cst_272 = arith.constant dense<0.000000e+00> : vector<8x8xf32>
    %885 = tpu.matmul %883, %884, %cst_272 {dimension_numbers = #tpu.dot_dimension_numbers<[1], [0], [0], [1], [0, 0, 1, 1], [], []>} : vector<8x8xbf16>, vector<8x8xbf16>, vector<8x8xf32> -> vector<8x8xf32>
    %886 = vector.extract_strided_slice %802 {offsets = [16, 0], sizes = [8, 32], strides = [1, 1]} : vector<32x32xbf16> to vector<8x32xbf16>
    %887 = arith.truncf %885 : vector<8x8xf32> to vector<8x8xbf16>
    %cst_273 = arith.constant dense<0.000000e+00> : vector<8x32xf32>
    %888 = tpu.matmul %887, %886, %cst_273 {dimension_numbers = #tpu.dot_dimension_numbers<[1], [0], [0], [1], [0, 0, 1, 1], [], []>} : vector<8x8xbf16>, vector<8x32xbf16>, vector<8x32xf32> -> vector<8x32xf32>
    %889 = arith.addf %865, %888 : vector<8x32xf32>
    %890 = vector.extract_strided_slice %810 {offsets = [0, 24], sizes = [8, 8], strides = [1, 1]} : vector<8x32xf32> to vector<8x8xf32>
    %891 = vector.extract_strided_slice %817 {offsets = [0, 24], sizes = [8, 8], strides = [1, 1]} : vector<8x32xf32> to vector<8x8xf32>
    %892 = arith.truncf %890 : vector<8x8xf32> to vector<8x8xbf16>
    %893 = arith.truncf %891 : vector<8x8xf32> to vector<8x8xbf16>
    %cst_274 = arith.constant dense<0.000000e+00> : vector<8x8xf32>
    %894 = tpu.matmul %892, %893, %cst_274 {dimension_numbers = #tpu.dot_dimension_numbers<[1], [1], [0], [0], [0, 0, 1, 0], [], []>} : vector<8x8xbf16>, vector<8x8xbf16>, vector<8x8xf32> -> vector<8x8xf32>
    %895 = arith.addf %894, %5 : vector<8x8xf32>
    %cst_275 = arith.constant dense<0xFF800000> : vector<8xf32>
    %896 = vector.multi_reduction <maximumf>, %895, %cst_275 [1] : vector<8x8xf32> to vector<8xf32>
    %897 = vector.shape_cast %896 : vector<8xf32> to vector<8x1xf32>
    %898 = vector.broadcast %897 : vector<8x1xf32> to vector<8x8xf32>
    %899 = arith.subf %895, %898 : vector<8x8xf32>
    %900 = math.exp %899 : vector<8x8xf32>
    %cst_276 = arith.constant dense<0.000000e+00> : vector<8xf32>
    %901 = vector.multi_reduction <add>, %900, %cst_276 [1] : vector<8x8xf32> to vector<8xf32>
    %902 = vector.shape_cast %901 : vector<8xf32> to vector<8x1xf32>
    %903 = tpu.reciprocal %902 {approx = true} : vector<8x1xf32> -> vector<8x1xf32>
    %904 = vector.broadcast %903 : vector<8x1xf32> to vector<8x8xf32>
    %905 = arith.mulf %900, %904 : vector<8x8xf32>
    %906 = vector.extract_strided_slice %818 {offsets = [0, 24], sizes = [8, 8], strides = [1, 1]} : vector<8x32xf32> to vector<8x8xf32>
    %907 = arith.truncf %905 : vector<8x8xf32> to vector<8x8xbf16>
    %908 = arith.truncf %906 : vector<8x8xf32> to vector<8x8xbf16>
    %cst_277 = arith.constant dense<0.000000e+00> : vector<8x8xf32>
    %909 = tpu.matmul %907, %908, %cst_277 {dimension_numbers = #tpu.dot_dimension_numbers<[1], [0], [0], [1], [0, 0, 1, 1], [], []>} : vector<8x8xbf16>, vector<8x8xbf16>, vector<8x8xf32> -> vector<8x8xf32>
    %910 = vector.extract_strided_slice %802 {offsets = [24, 0], sizes = [8, 32], strides = [1, 1]} : vector<32x32xbf16> to vector<8x32xbf16>
    %911 = arith.truncf %909 : vector<8x8xf32> to vector<8x8xbf16>
    %cst_278 = arith.constant dense<0.000000e+00> : vector<8x32xf32>
    %912 = tpu.matmul %911, %910, %cst_278 {dimension_numbers = #tpu.dot_dimension_numbers<[1], [0], [0], [1], [0, 0, 1, 1], [], []>} : vector<8x8xbf16>, vector<8x32xbf16>, vector<8x32xf32> -> vector<8x32xf32>
    %913 = arith.addf %889, %912 : vector<8x32xf32>
    %914 = vector.broadcast %804 : vector<1x32xf32> to vector<8x32xf32>
    %915 = arith.addf %913, %914 : vector<8x32xf32>
    %916 = arith.addf %798, %915 : vector<8x32xf32>
    %c36 = arith.constant 36 : index
    %c0_279 = arith.constant 0 : index
    %917 = vector.load %arg10[%c36, %c0_279] : memref<48x128xf32, #tpu.memory_space<vmem>>, vector<1x32xf32>
    %c37 = arith.constant 37 : index
    %c0_280 = arith.constant 0 : index
    %918 = vector.load %arg10[%c37, %c0_280] : memref<48x128xf32, #tpu.memory_space<vmem>>, vector<1x32xf32>
    %cst_281 = arith.constant dense<0.000000e+00> : vector<8xf32>
    %919 = vector.multi_reduction <add>, %916, %cst_281 [1] : vector<8x32xf32> to vector<8xf32>
    %920 = vector.shape_cast %919 : vector<8xf32> to vector<8x1xf32>
    %cst_282 = arith.constant 3.200000e+01 : f32
    %921 = vector.broadcast %cst_282 : f32 to vector<8x1xf32>
    %922 = arith.divf %920, %921 : vector<8x1xf32>
    %923 = vector.broadcast %922 : vector<8x1xf32> to vector<8x32xf32>
    %924 = arith.subf %916, %923 : vector<8x32xf32>
    %925 = arith.mulf %924, %924 : vector<8x32xf32>
    %cst_283 = arith.constant dense<0.000000e+00> : vector<8xf32>
    %926 = vector.multi_reduction <add>, %925, %cst_283 [1] : vector<8x32xf32> to vector<8xf32>
    %927 = vector.shape_cast %926 : vector<8xf32> to vector<8x1xf32>
    %cst_284 = arith.constant 3.200000e+01 : f32
    %928 = vector.broadcast %cst_284 : f32 to vector<8x1xf32>
    %929 = arith.divf %927, %928 : vector<8x1xf32>
    %cst_285 = arith.constant 9.99999974E-6 : f32
    %930 = vector.broadcast %cst_285 : f32 to vector<8x1xf32>
    %931 = arith.addf %929, %930 : vector<8x1xf32>
    %932 = math.rsqrt %931 : vector<8x1xf32>
    %933 = vector.broadcast %932 : vector<8x1xf32> to vector<8x32xf32>
    %934 = arith.mulf %924, %933 : vector<8x32xf32>
    %935 = vector.broadcast %917 : vector<1x32xf32> to vector<8x32xf32>
    %936 = arith.mulf %934, %935 : vector<8x32xf32>
    %937 = vector.broadcast %918 : vector<1x32xf32> to vector<8x32xf32>
    %938 = arith.addf %936, %937 : vector<8x32xf32>
    %c3_286 = arith.constant 3 : index
    %c0_287 = arith.constant 0 : index
    %c0_288 = arith.constant 0 : index
    %939 = vector.load %arg8[%c3_286, %c0_287, %c0_288] : memref<4x32x64xbf16, #tpu.memory_space<vmem>>, vector<1x32x64xbf16>
    %940 = vector.shape_cast %939 : vector<1x32x64xbf16> to vector<32x64xbf16>
    %941 = arith.truncf %938 : vector<8x32xf32> to vector<8x32xbf16>
    %cst_289 = arith.constant dense<0.000000e+00> : vector<8x64xf32>
    %942 = tpu.matmul %941, %940, %cst_289 {dimension_numbers = #tpu.dot_dimension_numbers<[1], [0], [0], [1], [0, 0, 1, 1], [], []>} : vector<8x32xbf16>, vector<32x64xbf16>, vector<8x64xf32> -> vector<8x64xf32>
    %c32 = arith.constant 32 : index
    %c0_290 = arith.constant 0 : index
    %943 = vector.load %arg10[%c32, %c0_290] : memref<48x128xf32, #tpu.memory_space<vmem>>, vector<1x64xf32>
    %944 = vector.broadcast %943 : vector<1x64xf32> to vector<8x64xf32>
    %945 = arith.addf %942, %944 : vector<8x64xf32>
    %cst_291 = arith.constant 0.000000e+00 : f32
    %946 = vector.broadcast %cst_291 : f32 to vector<8x64xf32>
    %947 = arith.maximumf %945, %946 : vector<8x64xf32>
    %c3_292 = arith.constant 3 : index
    %c0_293 = arith.constant 0 : index
    %c0_294 = arith.constant 0 : index
    %948 = vector.load %arg9[%c3_292, %c0_293, %c0_294] : memref<4x64x32xbf16, #tpu.memory_space<vmem>>, vector<1x64x32xbf16>
    %949 = vector.shape_cast %948 : vector<1x64x32xbf16> to vector<64x32xbf16>
    %950 = arith.truncf %947 : vector<8x64xf32> to vector<8x64xbf16>
    %cst_295 = arith.constant dense<0.000000e+00> : vector<8x32xf32>
    %951 = tpu.matmul %950, %949, %cst_295 {dimension_numbers = #tpu.dot_dimension_numbers<[1], [0], [0], [1], [0, 0, 1, 1], [], []>} : vector<8x64xbf16>, vector<64x32xbf16>, vector<8x32xf32> -> vector<8x32xf32>
    %c33 = arith.constant 33 : index
    %c0_296 = arith.constant 0 : index
    %952 = vector.load %arg10[%c33, %c0_296] : memref<48x128xf32, #tpu.memory_space<vmem>>, vector<1x32xf32>
    %953 = vector.broadcast %952 : vector<1x32xf32> to vector<8x32xf32>
    %954 = arith.addf %951, %953 : vector<8x32xf32>
    %955 = arith.addf %938, %954 : vector<8x32xf32>
    %c38 = arith.constant 38 : index
    %c0_297 = arith.constant 0 : index
    %956 = vector.load %arg10[%c38, %c0_297] : memref<48x128xf32, #tpu.memory_space<vmem>>, vector<1x32xf32>
    %c39 = arith.constant 39 : index
    %c0_298 = arith.constant 0 : index
    %957 = vector.load %arg10[%c39, %c0_298] : memref<48x128xf32, #tpu.memory_space<vmem>>, vector<1x32xf32>
    %cst_299 = arith.constant dense<0.000000e+00> : vector<8xf32>
    %958 = vector.multi_reduction <add>, %955, %cst_299 [1] : vector<8x32xf32> to vector<8xf32>
    %959 = vector.shape_cast %958 : vector<8xf32> to vector<8x1xf32>
    %cst_300 = arith.constant 3.200000e+01 : f32
    %960 = vector.broadcast %cst_300 : f32 to vector<8x1xf32>
    %961 = arith.divf %959, %960 : vector<8x1xf32>
    %962 = vector.broadcast %961 : vector<8x1xf32> to vector<8x32xf32>
    %963 = arith.subf %955, %962 : vector<8x32xf32>
    %964 = arith.mulf %963, %963 : vector<8x32xf32>
    %cst_301 = arith.constant dense<0.000000e+00> : vector<8xf32>
    %965 = vector.multi_reduction <add>, %964, %cst_301 [1] : vector<8x32xf32> to vector<8xf32>
    %966 = vector.shape_cast %965 : vector<8xf32> to vector<8x1xf32>
    %cst_302 = arith.constant 3.200000e+01 : f32
    %967 = vector.broadcast %cst_302 : f32 to vector<8x1xf32>
    %968 = arith.divf %966, %967 : vector<8x1xf32>
    %cst_303 = arith.constant 9.99999974E-6 : f32
    %969 = vector.broadcast %cst_303 : f32 to vector<8x1xf32>
    %970 = arith.addf %968, %969 : vector<8x1xf32>
    %971 = math.rsqrt %970 : vector<8x1xf32>
    %972 = vector.broadcast %971 : vector<8x1xf32> to vector<8x32xf32>
    %973 = arith.mulf %963, %972 : vector<8x32xf32>
    %974 = vector.broadcast %956 : vector<1x32xf32> to vector<8x32xf32>
    %975 = arith.mulf %973, %974 : vector<8x32xf32>
    %976 = vector.broadcast %957 : vector<1x32xf32> to vector<8x32xf32>
    %977 = arith.addf %975, %976 : vector<8x32xf32>
    %c0_304 = arith.constant 0 : index
    %c0_305 = arith.constant 0 : index
    %978 = vector.load %arg11[%c0_304, %c0_305] : memref<32x128xbf16, #tpu.memory_space<vmem>>, vector<32x128xbf16>
    %979 = arith.truncf %977 : vector<8x32xf32> to vector<8x32xbf16>
    %cst_306 = arith.constant dense<0.000000e+00> : vector<8x128xf32>
    %980 = tpu.matmul %979, %978, %cst_306 {dimension_numbers = #tpu.dot_dimension_numbers<[1], [0], [0], [1], [0, 0, 1, 1], [], []>} : vector<8x32xbf16>, vector<32x128xbf16>, vector<8x128xf32> -> vector<8x128xf32>
    %c40 = arith.constant 40 : index
    %c0_307 = arith.constant 0 : index
    %981 = vector.load %arg10[%c40, %c0_307] : memref<48x128xf32, #tpu.memory_space<vmem>>, vector<1x128xf32>
    %982 = vector.broadcast %981 : vector<1x128xf32> to vector<8x128xf32>
    %983 = arith.addf %980, %982 : vector<8x128xf32>
    %c0_308 = arith.constant 0 : index
    %c0_309 = arith.constant 0 : index
    %c0_310 = arith.constant 0 : index
    %984 = vector.load %arg12[%c0_308, %c0_309, %c0_310] : memref<1x8x128xf32, #tpu.memory_space<vmem>>, vector<1x8x128xf32>
    %985 = vector.shape_cast %984 : vector<1x8x128xf32> to vector<8x128xf32>
    %986 = vector.shape_cast %983 : vector<8x128xf32> to vector<1x8x128xf32>
    tpu.vector_store %arg12[%c0_308, %c0_309, %c0_310], %986 {strides = array<i32>} : memref<1x8x128xf32, #tpu.memory_space<vmem>>, vector<1x8x128xf32>,
    return
  }
  func.func @transform_0(%arg0: i32) -> (i32, i32, i32) {
    %c0_i32 = arith.constant 0 : i32
    %c0_i32_0 = arith.constant 0 : i32
    %c0_i32_1 = arith.constant 0 : i32
    return %arg0, %c0_i32, %c0_i32_0 : i32, i32, i32
  }
  func.func @transform_1(%arg0: i32) -> (i32, i32, i32) {
    %c0_i32 = arith.constant 0 : i32
    %c0_i32_0 = arith.constant 0 : i32
    %c0_i32_1 = arith.constant 0 : i32
    return %arg0, %c0_i32, %c0_i32_0 : i32, i32, i32
  }
  func.func @transform_2(%arg0: i32) -> (i32, i32, i32) {
    %c0_i32 = arith.constant 0 : i32
    %c0_i32_0 = arith.constant 0 : i32
    %c0_i32_1 = arith.constant 0 : i32
    return %arg0, %c0_i32, %c0_i32_0 : i32, i32, i32
  }
  func.func @transform_3(%arg0: i32) -> (i32, i32, i32) {
    %c0_i32 = arith.constant 0 : i32
    %c0_i32_0 = arith.constant 0 : i32
    %c0_i32_1 = arith.constant 0 : i32
    return %arg0, %c0_i32, %c0_i32_0 : i32, i32, i32
  }
  func.func @transform_4(%arg0: i32) -> (i32, i32, i32) {
    %c0_i32 = arith.constant 0 : i32
    %c0_i32_0 = arith.constant 0 : i32
    %c0_i32_1 = arith.constant 0 : i32
    return %arg0, %c0_i32, %c0_i32_0 : i32, i32, i32
  }
  func.func @transform_5(%arg0: i32) -> (i32, i32, i32) {
    %c0_i32 = arith.constant 0 : i32
    %c0_i32_0 = arith.constant 0 : i32
    %c0_i32_1 = arith.constant 0 : i32
    %c0_i32_2 = arith.constant 0 : i32
    return %c0_i32, %c0_i32_0, %c0_i32_1 : i32, i32, i32
  }
  func.func @transform_6(%arg0: i32) -> (i32, i32, i32) {
    %c0_i32 = arith.constant 0 : i32
    %c0_i32_0 = arith.constant 0 : i32
    %c0_i32_1 = arith.constant 0 : i32
    %c0_i32_2 = arith.constant 0 : i32
    return %c0_i32, %c0_i32_0, %c0_i32_1 : i32, i32, i32
  }
  func.func @transform_7(%arg0: i32) -> (i32, i32, i32) {
    %c0_i32 = arith.constant 0 : i32
    %c0_i32_0 = arith.constant 0 : i32
    %c0_i32_1 = arith.constant 0 : i32
    %c0_i32_2 = arith.constant 0 : i32
    return %c0_i32, %c0_i32_0, %c0_i32_1 : i32, i32, i32
  }
  func.func @transform_8(%arg0: i32) -> (i32, i32, i32) {
    %c0_i32 = arith.constant 0 : i32
    %c0_i32_0 = arith.constant 0 : i32
    %c0_i32_1 = arith.constant 0 : i32
    %c0_i32_2 = arith.constant 0 : i32
    return %c0_i32, %c0_i32_0, %c0_i32_1 : i32, i32, i32
  }
  func.func @transform_9(%arg0: i32) -> (i32, i32) {
    %c0_i32 = arith.constant 0 : i32
    %c0_i32_0 = arith.constant 0 : i32
    %c0_i32_1 = arith.constant 0 : i32
    return %c0_i32, %c0_i32_0 : i32, i32
  }
  func.func @transform_10(%arg0: i32) -> (i32, i32) {
    %c0_i32 = arith.constant 0 : i32
    %c0_i32_0 = arith.constant 0 : i32
    %c0_i32_1 = arith.constant 0 : i32
    return %c0_i32, %c0_i32_0 : i32, i32
  }
  func.func @transform_11(%arg0: i32) -> (i32, i32, i32) {
    %c0_i32 = arith.constant 0 : i32
    %c0_i32_0 = arith.constant 0 : i32
    %c0_i32_1 = arith.constant 0 : i32
    return %arg0, %c0_i32, %c0_i32_0 : i32, i32, i32
  }
}

</mosaic_0001>

<bundles_post_ra>
// kernel: smiles_transformer_forward.1
= control target key start
LH: loop header
LB: loop body
LE: loop exit
PB: predicated region body
PF: predicated region fallthrough
CT: control target
= control target key end

     0   :  { %s5051_s0 = inlined_call_operand.vmem [shape: f32[2,8,32], index: 0, kind: input, shape index: {}]   ;;  %s5052_s1 = inlined_call_operand.vmem [shape: f32[2,8,32], index: 1, kind: input, shape index: {}]   ;;  %s5053_s2 = inlined_call_operand.vmem [shape: f32[2,8,8], index: 2, kind: input, shape index: {}, may-alias: {2,4}]   ;;  %s5054_s3 = inlined_call_operand.vmem [shape: f32[2,8,8], index: 3, kind: input, shape index: {}]   ;;  %s5055_s4 = inlined_call_operand.vmem [shape: f32[2,8,8], index: 4, kind: input, shape index: {}, may-alias: {2,4}]   ;;  %s5056_s5 = inlined_call_operand.vmem [shape: bf16[6,32,96], index: 5, kind: input, shape index: {}]   ;;  %s5057_s6 = inlined_call_operand.vmem [shape: bf16[6,32,32], index: 6, kind: input, shape index: {}]   ;;  %s5058_s7 = inlined_call_operand.vmem [shape: bf16[4,32,64], index: 7, kind: input, shape index: {}]   ;;  %s5059_s8 = inlined_call_operand.vmem [shape: bf16[4,64,32], index: 8, kind: input, shape index: {}]   ;;  %s5060_s9 = inlined_call_operand.vmem [shape: f32[48,128], index: 9, kind: input, shape index: {}]   ;;  %s5061_s10 = inlined_call_operand.vmem [shape: bf16[32,128], index: 10, kind: input, shape index: {}]   ;;  %s5062_s11 = inlined_call_operand.hbm [shape: f32[2,8,128], index: 11, kind: output, shape index: {}]  }
   0x1   :  { %5093 = sst [smem:[#allocation12_spill]] %s5051_s0 }
   0x2   :  { %5094 = sst [smem:[#allocation13_spill]] %s5052_s1 }
   0x3   :  { %5095 = sst [smem:[#allocation14_spill]] %s5053_s2 }
   0x4   :  { %5096 = sst [smem:[#allocation15_spill]] %s5054_s3 }
   0x5   :  { %16 = vsyncpa [#allocation3], 0 }
   0x6   :  { %18 = vsyncpa [#allocation3 + $0x1], 0  ;;  %s4135_s17 = smov 0   ;;  %s4137_s18 = smov 0  }
   0x7   :  { %s4139_s19 = smov 0   ;;  %s4141_s20 = smov 0  }
   0x8 LB: > { %5097 = sst [smem:[#allocation5_spill]] %s4049_s17  ;;  %s4156_s21 = sadd.s32 4294967295, %s4061_s20   ;;  %s4061_s20 = sphi %s4141_s20, %s5125_s20   ;;  %s4057_s19 = sphi %s4139_s19, %s5130_s19   ;;  %s4053_s18 = sphi %s4137_s18, %s5129_s18   ;;  %s4049_s17 = sphi %s4135_s17, %s5128_s17  }
   0x9   : > { %5098 = sst [smem:[#allocation6_spill]] %s4057_s19  ;;  %s3418_s22 = sadd.s32 4294967294, %s4061_s20  }
   0xa   : > { %5099 = sst [smem:[#allocation7_spill]] %s4061_s20  ;;  %s4160_s23 = sadd.s32 1, %s4061_s20  }
   0xb   : > { %5100 = sst [smem:[#allocation8_spill]] %s4160_s23  ;;  %s287_s24 = sadd.s32 1, %s4057_s19 }
   0xc   : > { %s284_s25 = ssub.s32 %s4061_s20, %s4160_s23  ;;  %p297_p0 = scmp.ne.s32.totalorder %s4057_s19, %s4053_s18 }
   0xd   : > { %p285_p1 = scmp.eq.s32.totalorder %s284_s25, 0  ;;  %p298_p2 = scmp.eq.s32.totalorder %s4156_s21, 1 }
   0xe   : > { %p303_p3 = scmp.ne.s32.totalorder %s4053_s18, %s4049_s17  ;;  %p304_p4 = scmp.eq.s32.totalorder %s3418_s22, 1 }
   0xf   : > { %s4171_s26 = scalar_select %p285_p1, %s4057_s19, %s287_s24  }
  0x10   : > { %p4173_p5 = por %p298_p2, %p297_p0  ;;  %p4177_p6 = por %p304_p4, %p303_p3 }
  0x11   : > { %5101 = sst [smem:[#allocation9_spill]] %s4171_s26  ;;  %p3421_p7 = scmp.ge.s32.totalorder %s4061_s20, 1 }
  0x12   : > { %s5102_s27 = scalar_select %p4173_p5, 1, 0 }
  0x13   : > { %s5104_s28 = scalar_select %p4177_p6, 1, 0 }
  0x14   : > { %5103 = sst [smem:[#allocation10_spill]] %s5102_s27  ;;  %p375_p8 = scmp.lt.s32.totalorder %s4061_s20, 3 }
  0x15   : > { %5105 = sst [smem:[#allocation11_spill]] %s5104_s28 }
  0x16   : > { %p376_p9 = pnand %p3421_p7, %p375_p8 }
  0x17   : > { %p430_p10 = scmp.lt.s32.totalorder (!%p376_p9), %s4156_s21, 1  ;;  %s5106_s0 = sld [smem:[#allocation12_spill]] (!%p376_p9) }
  0x18   : > { %379 = sbr.rel (%p376_p9) target bundleno = 11338 (0x2c4a), region = 64  ;;  %s5073_s30 = smov (!%p376_p9), 88  }
  0x19   : > { %s5081_s12 = smov (!%p376_p9), 96   ;;  %s5071_s13 = smov (!%p376_p9), 120  }
  0x1a   : > { %s5083_s16 = smov (!%p376_p9), 72   ;;  %s5077_s22 = smov (!%p376_p9), 112  }
  0x1b   : > { %s5107_s2 = sld [smem:[#allocation14_spill]] (!%p376_p9)  ;;  %s5067_s29 = smov (!%p376_p9), 56  }
  0x1c   : > { %s5117_s26 = smov (!%p376_p9), 40   ;;  %s5118_s1 = sld [smem:[#allocation13_spill]] (!%p376_p9) }
  0x1d   : > { %v3750_v0 = vld [vmem:[%s5056_s5 + $0x8] sm:$0xff]  ;;  %v3749_v1 = vld [vmem:[%s5056_s5] sm:$0xff]  ;;  %s431_s14 = scalar_select %p430_p10, %s4156_s21, 1  ;;  %vm479_vm0 = vcmask 261120   ;;  %vm500_vm1 = vcmask 64512   ;;  %vm537_vm2 = vcmask 1043456  }
  0x1e   : > { %489 = vmatpush.bf16.msra.mxu0 %v3750_v0  ;;  %v3838_v4 = vld [vmem:[%s5060_s9] ss:$0 sm:$0xff]  ;;  %v460_v59 = vld [vmem:[%s5057_s6 + $0x4] sm:$0xf]  ;;  %vm913_vm7 = vcmask 523264   ;;  %s5119_s3 = sld [smem:[#allocation15_spill]] }
  0x1f   : > { %s4191_s15 = sshll.u32 %s431_s14, 3  ;;  %s5063_s14 = smov 80   ;;  %v459_v14 = vld [vmem:[%s5057_s6] sm:$0xf]  ;;  %v616_v60 = vsel %vm537_vm2, %v460_v59, 0 }
  0x20   : > { %s433_s24 = scalar_lea.vmem %s5106_s0, %s4191_s15  ;;  %v635_v17 = vsel %vm537_vm2, %v459_v14, 0  ;;  %s5120_s17 = smov 72  }
  0x21   : > { %v4197_v2 = vld [vmem:[%s433_s24] sm:$0xff]  ;;  %s441_s25 = scalar_lea.vmem %s5107_s2, %s4191_s15  ;;  %s5065_s24 = smov 40  }
  0x22   : > { %490 = vmatpush.bf16.msra.mxu0 %v3749_v1  ;;  %v465_v3 = vpack.c.bf16 %v4197_v2, %v4197_v2  ;;  %v4235_v21 = vld [vmem:[%s441_s25] sm:$0xff]  ;;  %s5075_s25 = smov 64   ;;  %s437_s20 = scalar_lea.vmem %s5118_s1, %s4191_s15 }
  0x23   : > { %s4646_s28 = scalar_lea.vmem %s5055_s4, %s4191_s15  ;;  %s4019_s27 = scalar_lea.hbm %s5062_s11, 16 }
  0x24   : > { %s4466_s2 = scalar_lea.vmem %s5119_s3, %s4191_s15  ;;  %s3746_s15 = sshll.u32 %s4156_s21, 3 }
  0x25   : > { %3436 = vmatmul.msk.bf16.vlgmr.msra.gmra.mxu0 %vm479_vm0, %v465_v3 }
  0x26   : > { %625 = vmatpush.bf16.msrb.mxu0 %v616_v60 }
  0xa2   : > { %v492_v5 = vpop.f32.mrf.mxu0 }
  0xa3   : > { %v493_v6 = vadd.f32 %v3838_v4, %v492_v5 }
  0xa5   : > { %v4205_v7 = vpack.c.bf16 %v493_v6, %v493_v6 }
  0xa7   : > { %557 = vrot.lane.b32.xlu2 %v4205_v7, %s5073_s30  ;;  %498 = vrot.lane.b32.xlu0 %v4205_v7, %s5081_s12  ;;  %s5112_s30 = smov 88   ;;  %s5113_s12 = smov 120  }
  0xaa   : > { %v494_v8 = vpop.f32.mrf.mxu0 }
  0xaf   : > { %555 = vrot.lane.b32.xlu2 %v4205_v7, %s5071_s13  ;;  %s5116_s13 = smov 48  }
  0xb7   : > { %652 = vrot.lane.b32.xlu2 %v4205_v7, %s5063_s14  ;;  %s5079_s14 = smov 104  }
  0xbf   : > { %729 = vrot.lane.b32.xlu2 %v4205_v7, %s5083_s16 }
  0xc7   : > { %650 = vrot.lane.b32.xlu2 %v4205_v7, %s5077_s22  ;;  %s5110_s22 = smov 112  }
 0x101   : > { %v558_v9 = vpop.permute.xlu2 %557 }
 0x102   : > { %v563_v10 = vsel %vm500_vm1, %v558_v9, 0 }
 0x103   : > { %572 = vmatpush.bf16.xpose.msra.mxu3 %v563_v10 }
 0x109   : > { %v556_v11 = vpop.permute.xlu2 %555 }
 0x10a   : > { %3439 = vmatmul.msk.bf16.vlgmr.msra.gmra.mxu3 %vm500_vm1, %v556_v11 }
 0x111   : > { %v653_v12 = vpop.permute.xlu2 %652 }
 0x112   : > { %v658_v13 = vsel %vm500_vm1, %v653_v12, 0 }
 0x113   : > { %667 = vmatpush.bf16.xpose.msrb.mxu3 %v658_v13 }
 0x119   : > { %v730_v15 = vpop.permute.xlu2 %729  ;;  %v499_v16 = vpop.permute.xlu0 %498 }
 0x11a   : > { %v505_v18 = vsel %vm500_vm1, %v499_v16, 0  ;;  %v735_v20 = vsel %vm500_vm1, %v730_v15, 0 }
 0x11b   : > { %514 = vmatpush.bf16.xpose.msra.mxu1 %v505_v18 }
 0x121   : > { %v651_v19 = vpop.permute.xlu2 %650 }
 0x122   : > { %3437 = vmatmul.msk.bf16.vlgmr.msra.gmra.mxu1 %vm500_vm1, %v4205_v7  ;;  %3443 = vmatmul.msk.bf16.vlgmr.msrb.gmra.mxu3 %vm500_vm1, %v651_v19 }
 0x123   : > { %644 = vmatpush.bf16.msrb.mxu1 %v635_v17 }
 0x127   : > { %744 = vmatpush.bf16.xpose.msra.mxu1 %v735_v20 }
 0x18d   : > { %v574_v22 = vpop.f32.mrf.mxu3 }
 0x18e   : > { %v575_v23 = vadd.f32 %v574_v22, %v4235_v21 }
 0x190   : > { %v578_v24 = vsel %vm500_vm1, %v575_v23, -inf }
 0x191   : > { %579 = vmax.xlane.f32.xlu2 %v578_v24 }
 0x195   : > { %v576_v25 = vpop.f32.mrf.mxu3 }
 0x19f   : > { %v516_v26 = vpop.f32.mrf.mxu1 }
 0x1a0   : > { %v517_v27 = vadd.f32 %v516_v26, %v4235_v21 }
 0x1a2   : > { %v520_v28 = vsel %vm500_vm1, %v517_v27, -inf }
 0x1a3   : > { %521 = vmax.xlane.f32.xlu0 %v520_v28 }
 0x1a5   : > { %v669_v29 = vpop.f32.mrf.mxu3 }
 0x1a6   : > { %v4242_v30 = vadd.f32 %v669_v29, %v4235_v21 }
 0x1a7   : > { %v518_v31 = vpop.f32.mrf.mxu1 }
 0x1a8   : > { %v673_v32 = vsel %vm500_vm1, %v4242_v30, -inf }
 0x1ab   : > { %674 = vmax.xlane.f32.xlu0 %v673_v32 }
 0x1ad   : > { %v671_v33 = vpop.f32.mrf.mxu3 }
 0x204   : > { %v580_v34 = vpop.xlane.xlu2 %579 }
 0x205   : > { %v581_v35 = vsub.f32 %v575_v23, %v580_v34 }
 0x207   : > { %v582_v36 = vmul.f32 1.442695, %v581_v35 }
 0x209   : > { %3879 = vpow2.f32 %v582_v36  ;;  %v461_v36 = vld [vmem:[%s5057_s6 + $0x8] sm:$0xf] }
 0x20f   : > { %v3880_v37 = vpop.eup %3879 }
 0x210   : > { %v584_v38 = vsel %vm500_vm1, %v3880_v37, 0.0 }
 0x211   : > { %585 = vadd.xlane.f32.xlu0 %v584_v38 }
 0x216   : > { %v522_v39 = vpop.xlane.xlu0 %521 }
 0x217   : > { %v523_v40 = vsub.f32 %v517_v27, %v522_v39 }
 0x219   : > { %v524_v41 = vmul.f32 1.442695, %v523_v40 }
 0x21b   : > { %3881 = vpow2.f32 %v524_v41 }
 0x21e   : > { %v675_v44 = vpop.xlane.xlu0 %674 }
 0x21f   : > { %v676_v8 = vsub.f32 %v4242_v30, %v675_v44 }
 0x221   : > { %v3882_v42 = vpop.eup %3881  ;;  %v677_v9 = vmul.f32 1.442695, %v676_v8  ;;  %v3755_v8 = vld [vmem:[%s5059_s8 + $0x10] sm:$0xff] }
 0x222   : > { %v526_v43 = vsel %vm500_vm1, %v3882_v42, 0.0 }
 0x223   : > { %527 = vadd.xlane.f32.xlu1 %v526_v43 }
 0x225   : > { %590 = vrot.lane.b32.xlu0 %v4205_v7, %s5067_s29  ;;  %s5069_s29 = smov 48  }
 0x22d   : > { %762 = vrot.lane.b32.xlu0 %v4205_v7, %s5065_s24  ;;  %s5109_s24 = smov 104  }
 0x23c   : > { %532 = vrot.lane.b32.xlu1 %v4205_v7, %s5075_s25  ;;  %s5111_s25 = smov 64  }
 0x244   : > { %727 = vrot.lane.b32.xlu1 %v4205_v7, %s5079_s14  ;;  %s5114_s14 = smov 80  }
 0x284   : > { %v586_v45 = vpop.xlane.xlu0 %585 }
 0x296   : > { %v528_v49 = vpop.xlane.xlu1 %527 }
 0x297   : > { %v591_v46 = vpop.permute.xlu0 %590  ;;  %3883 = vrcp.f32 %v528_v49 }
 0x298   : > { %v596_v54 = vsel %vm537_vm2, %v591_v46, 0  ;;  %3885 = vrcp.f32 %v586_v45  ;;  %v3839_v46 = vld [vmem:[%s5060_s9 + $0x1] ss:$0 sm:$0xff] }
 0x299   : > { %3887 = vpow2.f32 %v677_v9 }
 0x29d   : > { %v3884_v50 = vpop.eup %3883 }
 0x29e   : > { %v530_v51 = vmul.f32 %v3884_v50, %v3882_v42  ;;  %v3886_v56 = vpop.eup %3885 }
 0x29f   : > { %v763_v47 = vpop.permute.xlu0 %762  ;;  %v588_v57 = vmul.f32 %v3886_v56, %v3880_v37  ;;  %v3888_v15 = vpop.eup %3887  ;;  %v711_v37 = vsel %vm537_vm2, %v461_v36, 0 }
 0x2a0   : > { %v768_v48 = vsel %vm537_vm2, %v763_v47, 0  ;;  %v531_v55 = vpack.c.bf16 %v530_v51, %v530_v51  ;;  %v679_v18 = vsel %vm500_vm1, %v3888_v15, 0.0  ;;  %720 = vmatpush.bf16.msra.mxu0 %v711_v37 }
 0x2a1   : > { %777 = vmatpush.bf16.msra.mxu3 %v768_v48  ;;  %v589_v58 = vpack.c.bf16 %v588_v57, %v588_v57 }
 0x2ae   : > { %v533_v52 = vpop.permute.xlu1 %532 }
 0x2af   : > { %v539_v53 = vsel %vm537_vm2, %v533_v52, 0 }
 0x2b0   : > { %548 = vmatpush.bf16.msra.mxu2 %v539_v53 }
 0x2b3   : > { %3438 = vmatmul.msk.bf16.vlgmr.msra.gmra.mxu2 %vm500_vm1, %v531_v55 }
 0x2b4   : > { %605 = vmatpush.bf16.msrb.mxu2 %v596_v54  ;;  %v4074_v54 = vmov 32.0  }
 0x2b6   : > { %v728_v3 = vpop.permute.xlu1 %727 }
 0x2c3   : > { %3440 = vmatmul.msk.bf16.vlgmr.msrb.gmra.mxu2 %vm500_vm1, %v589_v58 }
 0x336   : > { %v550_v61 = vpop.f32.mrf.mxu2 }
 0x337   : > { %v554_v62 = vpack.c.bf16 %v550_v61, %v550_v61 }
 0x339   : > { %3442 = vmatmul.msk.bf16.vlgmr.msrb.gmra.mxu1 %vm500_vm1, %v554_v62 }
 0x33e   : > { %v552_v63 = vpop.f32.mrf.mxu2 }
 0x346   : > { %v607_v0 = vpop.f32.mrf.mxu2 }
 0x347   : > { %v611_v1 = vpack.c.bf16 %v607_v0, %v607_v0 }
 0x349   : > { %3441 = vmatmul.msk.bf16.vlgmr.msrb.gmra.mxu0 %vm500_vm1, %v611_v1  ;;  %3446 = vmatmul.msk.bf16.vlgmr.msra.gmra.mxu1 %vm500_vm1, %v728_v3  ;;  %v3752_v1 = vld [vmem:[%s5058_s7 + $0x8] sm:$0xff]  ;;  %v3751_v3 = vld [vmem:[%s5058_s7] sm:$0xff] }
 0x34a   : > { %870 = vmatpush.bf16.msrb.mxu0 %v3752_v1 }
 0x34e   : > { %v609_v4 = vpop.f32.mrf.mxu2  ;;  %871 = vmatpush.bf16.msrb.mxu0 %v3751_v3 }
 0x34f   : > { %v3756_v4 = vld [vmem:[%s5059_s8 + $0x18] sm:$0xff] }
 0x350   : > { %921 = vmatpush.bf16.msrb.mxu1 %v3756_v4 }
 0x354   : > { %922 = vmatpush.bf16.msrb.mxu1 %v3755_v8 }
 0x3b6   : > { %v646_v5 = vpop.f32.mrf.mxu1 }
 0x3be   : > { %v648_v6 = vpop.f32.mrf.mxu1 }
 0x3c6   : > { %v627_v10 = vpop.f32.mrf.mxu0  ;;  %v746_v11 = vpop.f32.mrf.mxu1 }
 0x3c7   : > { %v647_v12 = vadd.f32 %v646_v5, %v627_v10  ;;  %v747_v13 = vadd.f32 %v746_v11, %v4235_v21 }
 0x3c9   : > { %v750_v14 = vsel %vm500_vm1, %v747_v13, -inf }
 0x3ca   : > { %751 = vmax.xlane.f32.xlu1 %v750_v14 }
 0x3ce   : > { %v629_v16 = vpop.f32.mrf.mxu0  ;;  %v748_v17 = vpop.f32.mrf.mxu1 }
 0x3cf   : > { %v3840_v16 = vld [vmem:[%s5060_s9 + $0x4] ss:$0 sm:$0xff] }
 0x3d2   : > { %680 = vadd.xlane.f32.xlu1 %v679_v18  ;;  %v3841_v18 = vld [vmem:[%s5060_s9 + $0x5] ss:$0 sm:$0xff] }
 0x43d   : > { %v752_v19 = vpop.xlane.xlu1 %751 }
 0x43e   : > { %v753_v20 = vsub.f32 %v747_v13, %v752_v19 }
 0x440   : > { %v754_v22 = vmul.f32 1.442695, %v753_v20 }
 0x442   : > { %3889 = vpow2.f32 %v754_v22 }
 0x445   : > { %v681_v25 = vpop.xlane.xlu1 %680 }
 0x446   : > { %3891 = vrcp.f32 %v681_v25  ;;  %v3753_v25 = vld [vmem:[%s5059_s8] sm:$0xff] }
 0x448   : > { %v3890_v23 = vpop.eup %3889 }
 0x449   : > { %v756_v24 = vsel %vm500_vm1, %v3890_v23, 0.0 }
 0x44a   : > { %757 = vadd.xlane.f32.xlu2 %v756_v24  ;;  %v3754_v24 = vld [vmem:[%s5059_s8 + $0x8] sm:$0xff] }
 0x44b   : > { %923 = vmatpush.bf16.msrb.mxu1 %v3754_v24 }
 0x44c   : > { %v3892_v27 = vpop.eup %3891 }
 0x44d   : > { %v683_v29 = vmul.f32 %v3892_v27, %v3888_v15 }
 0x44f   : > { %v684_v34 = vpack.c.bf16 %v683_v29, %v683_v29  ;;  %924 = vmatpush.bf16.msrb.mxu1 %v3753_v25 }
 0x462   : > { %685 = vrot.lane.b32.xlu2 %v4205_v7, %s5069_s29  ;;  %v462_v7 = vld [vmem:[%s5057_s6 + $0xc] sm:$0xf]  ;;  %s5108_s29 = smov 96  }
 0x463   : > { %v788_v35 = vsel %vm537_vm2, %v462_v7, 0 }
 0x4bd   : > { %v758_v26 = vpop.xlane.xlu2 %757 }
 0x4be   : > { %3893 = vrcp.f32 %v758_v26  ;;  %v3842_v26 = vld [vmem:[%s5060_s9 + $0x2] ss:$0 sm:$0xff] }
 0x4bf   : > { %3895 = vrcp.f32 %v4074_v54 }
 0x4c4   : > { %v3894_v28 = vpop.eup %3893 }
 0x4c5   : > { %v760_v30 = vmul.f32 %v3894_v28, %v3890_v23  ;;  %v686_v31 = vpop.permute.xlu2 %685  ;;  %v3896_v55 = vpop.eup %3895 }
 0x4c6   : > { %v691_v32 = vsel %vm537_vm2, %v686_v31, 0  ;;  %v813_v56 = vmul.f32 32.0, %v3896_v55  ;;  %vm817_vm3 = vweird.f32 %v3896_v55 }
 0x4c7   : > { %v761_v33 = vpack.c.bf16 %v760_v30, %v760_v30  ;;  %700 = vmatpush.bf16.msra.mxu2 %v691_v32  ;;  %v3843_v32 = vld [vmem:[%s5060_s9 + $0x3] ss:$0 sm:$0xff] }
 0x4c8   : > { %v814_v57 = vsub.f32 1.0, %v813_v56 }
 0x4c9   : > { %3447 = vmatmul.msk.bf16.vlgmr.msra.gmra.mxu3 %vm500_vm1, %v761_v33 }
 0x4ca   : > { %3444 = vmatmul.msk.bf16.vlgmr.msra.gmra.mxu2 %vm500_vm1, %v684_v34  ;;  %v815_v58 = vmul.f32 %v3896_v55, %v814_v57 }
 0x4cb   : > { %797 = vmatpush.bf16.msrb.mxu2 %v788_v35 }
 0x4cc   : > { %v816_v59 = vadd.f32 %v3896_v55, %v815_v58 }
 0x4ce   : > { %v4293_v60 = vsel %vm817_vm3, %v3896_v55, %v816_v59  ;;  %v3845_v55 = vld [vmem:[%s5060_s9 + $0x7] ss:$0 sm:$0xff] }
 0x54c   : > { %v779_v38 = vpop.f32.mrf.mxu3 }
 0x54d   : > { %v783_v39 = vpack.c.bf16 %v779_v38, %v779_v38  ;;  %v702_v40 = vpop.f32.mrf.mxu2 }
 0x54e   : > { %v706_v41 = vpack.c.bf16 %v702_v40, %v702_v40 }
 0x54f   : > { %3448 = vmatmul.msk.bf16.vlgmr.msrb.gmra.mxu2 %vm500_vm1, %v783_v39 }
 0x550   : > { %3445 = vmatmul.msk.bf16.vlgmr.msra.gmra.mxu0 %vm500_vm1, %v706_v41 }
 0x554   : > { %v781_v42 = vpop.f32.mrf.mxu3 }
 0x555   : > { %v704_v43 = vpop.f32.mrf.mxu2  ;;  %v3758_v42 = vld [vmem:[%s5056_s5 + $0x18] sm:$0xff] }
 0x556   : > { %994 = vmatpush.bf16.msrb.mxu3 %v3758_v42  ;;  %v3757_v43 = vld [vmem:[%s5056_s5 + $0x10] sm:$0xff] }
 0x55a   : > { %995 = vmatpush.bf16.msrb.mxu3 %v3757_v43 }
 0x5cd   : > { %v722_v44 = vpop.f32.mrf.mxu0 }
 0x5ce   : > { %v726_v45 = vadd.f32 %v722_v44, %v647_v12 }
 0x5d2   : > { %v799_v47 = vpop.f32.mrf.mxu2 }
 0x5d3   : > { %v803_v48 = vadd.f32 %v799_v47, %v726_v45 }
 0x5d5   : > { %v805_v49 = vadd.f32 %v3839_v46, %v803_v48  ;;  %v724_v50 = vpop.f32.mrf.mxu0 }
 0x5d7   : > { %v806_v51 = vadd.f32 %v805_v49, %v4197_v2 }
 0x5d9   : > { %v809_v52 = vsel %vm479_vm0, %v806_v51, 0.0 }
 0x5da   : > { %810 = vadd.xlane.f32.xlu1 %v809_v52  ;;  %v801_v53 = vpop.f32.mrf.mxu2 }
 0x5db   : > { %v3844_v53 = vld [vmem:[%s5060_s9 + $0x6] ss:$0 sm:$0xff] }
 0x64d   : > { %v811_v61 = vpop.xlane.xlu1 %810 }
 0x64e   : > { %v819_v62 = vmul.f32 %v4293_v60, %v811_v61  ;;  %v3846_v61 = vld [vmem:[%s5060_s9 + $0x8] ss:$0 sm:$0xff] }
 0x650   : > { %v820_v63 = vsub.f32 %v806_v51, %v819_v62 }
 0x652   : > { %v821_v0 = vmul.f32 %v820_v63, %v820_v63 }
 0x654   : > { %v822_v2 = vsel %vm479_vm0, %v821_v0, 0.0 }
 0x655   : > { %823 = vadd.xlane.f32.xlu0 %v822_v2 }
 0x6c8   : > { %v824_v5 = vpop.xlane.xlu0 %823 }
 0x6c9   : > { %v825_v6 = vmul.f32 %v824_v5, %v4293_v60 }
 0x6cb   : > { %v826_v9 = vadd.f32 1e-05, %v825_v6 }
 0x6cd   : > { %3897 = vrsqrt.f32 %v826_v9  ;;  %vm833_vm5 = vweird.f32 %v826_v9 }
 0x6d3   : > { %v3898_v10 = vpop.eup %3897 }
 0x6d4   : > { %v828_v11 = vmul.f32 %v3898_v10, %v826_v9  ;;  %vm834_vm4 = vweird.f32 %v3898_v10 }
 0x6d5   : > { %vm835_vm6 = vmor %vm833_vm5, %vm834_vm4 }
 0x6d6   : > { %v829_v12 = vmul.f32 %v3898_v10, %v828_v11 }
 0x6d8   : > { %v830_v13 = vmul.f32 0.5, %v829_v12 }
 0x6da   : > { %v831_v14 = vsub.f32 1.5, %v830_v13 }
 0x6dc   : > { %v832_v15 = vmul.f32 %v3898_v10, %v831_v14 }
 0x6de   : > { %v836_v17 = vsel %vm835_vm6, %v3898_v10, %v832_v15 }
 0x6df   : > { %v837_v19 = vmul.f32 %v836_v17, %v820_v63 }
 0x6e1   : > { %v839_v20 = vmul.f32 %v3840_v16, %v837_v19  ;;  %v3479_v19 = vld [vmem:[%s5057_s6 + $0x10] sm:$0xf] }
 0x6e3   : > { %v841_v22 = vadd.f32 %v3841_v18, %v839_v20  ;;  %v1138_v20 = vsel %vm537_vm2, %v3479_v19, 0  ;;  %v3481_v19 = vld [vmem:[%s5057_s6 + $0x18] sm:$0xf] }
 0x6e5   : > { %v846_v23 = vpack.c.bf16 %v841_v22, %v841_v22 }
 0x6e7   : > { %3457 = vmatmul.msk.bf16.vlgmr.msrb.gmra.mxu0 %vm479_vm0, %v846_v23 }
 0x764   : > { %v873_v27 = vpop.f32.mrf.mxu0 }
 0x765   : > { %v874_v28 = vadd.f32 %v3842_v26, %v873_v27 }
 0x767   : > { %v877_v29 = vmax.f32 %v874_v28, 0.0 }
 0x769   : > { %v886_v30 = vpack.c.bf16 %v877_v29, %v877_v29 }
 0x76b   : > { %3474 = vmatmul.msk.bf16.vlgmr.msrb.gmra.mxu1 %vm913_vm7, %v886_v30 }
 0x76c   : > { %v875_v31 = vpop.f32.mrf.mxu0 }
 0x7e8   : > { %v926_v33 = vpop.f32.mrf.mxu1 }
 0x7e9   : > { %v927_v34 = vadd.f32 %v3843_v32, %v926_v33 }
 0x7eb   : > { %v930_v7 = vadd.f32 %v927_v34, %v841_v22 }
 0x7ed   : > { %v933_v35 = vsel %vm479_vm0, %v930_v7, 0.0 }
 0x7ee   : > { %934 = vadd.xlane.f32.xlu1 %v933_v35 }
 0x7f0   : > { %v928_v36 = vpop.f32.mrf.mxu1 }
 0x861   : > { %v935_v37 = vpop.xlane.xlu1 %934 }
 0x862   : > { %v936_v38 = vmul.f32 %v935_v37, %v4293_v60 }
 0x864   : > { %v937_v39 = vsub.f32 %v930_v7, %v936_v38 }
 0x866   : > { %v938_v40 = vmul.f32 %v937_v39, %v937_v39 }
 0x868   : > { %v939_v41 = vsel %vm479_vm0, %v938_v40, 0.0 }
 0x869   : > { %940 = vadd.xlane.f32.xlu1 %v939_v41 }
 0x8dc   : > { %v941_v44 = vpop.xlane.xlu1 %940 }
 0x8dd   : > { %v942_v45 = vmul.f32 %v941_v44, %v4293_v60 }
 0x8df   : > { %v943_v46 = vadd.f32 1e-05, %v942_v45 }
 0x8e1   : > { %3899 = vrsqrt.f32 %v943_v46  ;;  %vm950_vm9 = vweird.f32 %v943_v46 }
 0x8e7   : > { %v3900_v47 = vpop.eup %3899 }
 0x8e8   : > { %v945_v48 = vmul.f32 %v3900_v47, %v943_v46  ;;  %vm951_vm8 = vweird.f32 %v3900_v47 }
 0x8e9   : > { %vm952_vm10 = vmor %vm950_vm9, %vm951_vm8 }
 0x8ea   : > { %v946_v49 = vmul.f32 %v3900_v47, %v945_v48 }
 0x8ec   : > { %v947_v50 = vmul.f32 0.5, %v946_v49 }
 0x8ee   : > { %v948_v51 = vsub.f32 1.5, %v947_v50 }
 0x8f0   : > { %v949_v52 = vmul.f32 %v3900_v47, %v948_v51 }
 0x8f2   : > { %v953_v54 = vsel %vm952_vm10, %v3900_v47, %v949_v52 }
 0x8f3   : > { %v954_v56 = vmul.f32 %v953_v54, %v937_v39 }
 0x8f5   : > { %v956_v57 = vmul.f32 %v3844_v53, %v954_v56 }
 0x8f7   : > { %v4346_v58 = vadd.f32 %v3845_v55, %v956_v57 }
 0x8f9   : > { %v971_v59 = vpack.c.bf16 %v4346_v58, %v4346_v58 }
 0x8fb   : > { %3491 = vmatmul.msk.bf16.vlgmr.msrb.gmra.mxu3 %vm479_vm0, %v971_v59 }
 0x97e   : > { %v997_v62 = vpop.f32.mrf.mxu3 }
 0x97f   : > { %v998_v63 = vadd.f32 %v3846_v61, %v997_v62 }
 0x981   : > { %v4354_v0 = vpack.c.bf16 %v998_v63, %v998_v63 }
 0x983   : > { %1232 = vrot.lane.b32.xlu0 %v4354_v0, %s5083_s16  ;;  %1003 = vrot.lane.b32.xlu2 %v4354_v0, %s5108_s29  ;;  %s5115_s16 = smov 56  }
 0x986   : > { %v999_v2 = vpop.f32.mrf.mxu3 }
 0x98b   : > { %1230 = vrot.lane.b32.xlu0 %v4354_v0, %s5109_s24 }
 0x993   : > { %1153 = vrot.lane.b32.xlu0 %v4354_v0, %s5110_s22 }
 0x9dd   : > { %v1004_v1 = vpop.permute.xlu2 %1003 }
 0x9de   : > { %v1009_v3 = vsel %vm500_vm1, %v1004_v1, 0 }
 0x9df   : > { %1018 = vmatpush.bf16.xpose.msra.mxu2 %v1009_v3 }
 0x9e6   : > { %3492 = vmatmul.msk.bf16.vlgmr.msra.gmra.mxu2 %vm500_vm1, %v4354_v0 }
 0x9f5   : > { %v1233_v22 = vpop.permute.xlu0 %1232 }
 0x9f6   : > { %v1238_v30 = vsel %vm500_vm1, %v1233_v22, 0 }
 0x9fd   : > { %v1231_v24 = vpop.permute.xlu0 %1230 }
 0xa05   : > { %v1154_v31 = vpop.permute.xlu0 %1153 }
 0xa69   : > { %v1020_v4 = vpop.f32.mrf.mxu2 }
 0xa6a   : > { %v1021_v5 = vadd.f32 %v1020_v4, %v4235_v21 }
 0xa6c   : > { %v1024_v6 = vsel %vm500_vm1, %v1021_v5, -inf }
 0xa6d   : > { %1025 = vmax.xlane.f32.xlu1 %v1024_v6 }
 0xa71   : > { %v1022_v8 = vpop.f32.mrf.mxu2 }
 0xa86   : > { %1036 = vrot.lane.b32.xlu1 %v4354_v0, %s5111_s25 }
 0xa8e   : > { %1060 = vrot.lane.b32.xlu1 %v4354_v0, %s5112_s30 }
 0xa96   : > { %1058 = vrot.lane.b32.xlu1 %v4354_v0, %s5113_s12 }
 0xae0   : > { %v1026_v9 = vpop.xlane.xlu1 %1025 }
 0xae1   : > { %v1027_v10 = vsub.f32 %v1021_v5, %v1026_v9 }
 0xae3   : > { %v1028_v11 = vmul.f32 1.442695, %v1027_v10 }
 0xae5   : > { %3901 = vpow2.f32 %v1028_v11 }
 0xaeb   : > { %v3902_v12 = vpop.eup %3901 }
 0xaec   : > { %v1030_v13 = vsel %vm500_vm1, %v3902_v12, 0.0 }
 0xaed   : > { %1031 = vadd.xlane.f32.xlu2 %v1030_v13 }
 0xaf8   : > { %v1037_v14 = vpop.permute.xlu1 %1036 }
 0xaf9   : > { %v1042_v15 = vsel %vm537_vm2, %v1037_v14, 0 }
 0xafa   : > { %1051 = vmatpush.bf16.msra.mxu0 %v1042_v15 }
 0xafe   : > { %1147 = vmatpush.bf16.msrb.mxu0 %v1138_v20  ;;  %v1214_v20 = vsel %vm537_vm2, %v3481_v19, 0 }
 0xb00   : > { %v1061_v16 = vpop.permute.xlu1 %1060 }
 0xb01   : > { %v1066_v17 = vsel %vm500_vm1, %v1061_v16, 0 }
 0xb02   : > { %1075 = vmatpush.bf16.xpose.msra.mxu1 %v1066_v17 }
 0xb05   : > { %1155 = vrot.lane.b32.xlu2 %v4354_v0, %s5114_s14 }
 0xb08   : > { %v1059_v18 = vpop.permute.xlu1 %1058 }
 0xb09   : > { %3494 = vmatmul.msk.bf16.vlgmr.msra.gmra.mxu1 %vm500_vm1, %v1059_v18 }
 0xb60   : > { %v1032_v23 = vpop.xlane.xlu2 %1031 }
 0xb61   : > { %3903 = vrcp.f32 %v1032_v23 }
 0xb67   : > { %v3904_v25 = vpop.eup %3903 }
 0xb68   : > { %v1034_v26 = vmul.f32 %v3904_v25, %v3902_v12  ;;  %v1156_v27 = vpop.permute.xlu2 %1155  ;;  %v3480_v12 = vld [vmem:[%s5057_s6 + $0x14] sm:$0xf] }
 0xb69   : > { %v1161_v28 = vsel %vm500_vm1, %v1156_v27, 0  ;;  %v1119_v13 = vsel %vm537_vm2, %v3480_v12, 0  ;;  %v3766_v27 = vld [vmem:[%s5056_s5 + $0x28] sm:$0xff] }
 0xb6a   : > { %v1035_v29 = vpack.c.bf16 %v1034_v26, %v1034_v26  ;;  %1170 = vmatpush.bf16.xpose.msrb.mxu1 %v1161_v28  ;;  %1128 = vmatpush.bf16.msrb.mxu2 %v1119_v13 }
 0xb6c   : > { %3493 = vmatmul.msk.bf16.vlgmr.msra.gmra.mxu0 %vm500_vm1, %v1035_v29 }
 0xb6d   : > { %1247 = vmatpush.bf16.xpose.msra.mxu0 %v1238_v30 }
 0xb6e   : > { %1223 = vmatpush.bf16.msra.mxu2 %v1214_v20  ;;  %v3849_v20 = vld [vmem:[%s5060_s9 + $0xc] ss:$0 sm:$0xff] }
 0xb71   : > { %3498 = vmatmul.msk.bf16.vlgmr.msrb.gmra.mxu1 %vm500_vm1, %v1154_v31  ;;  %v3765_v31 = vld [vmem:[%s5056_s5 + $0x20] sm:$0xff] }
 0xb86   : > { %v1077_v32 = vpop.f32.mrf.mxu1 }
 0xb87   : > { %v1078_v33 = vadd.f32 %v1077_v32, %v4235_v21  ;;  %v4434_v32 = vld [vmem:[%s437_s20] sm:$0xff] }
 0xb89   : > { %v1081_v34 = vsel %vm500_vm1, %v1078_v33, -inf }
 0xb8a   : > { %1082 = vmax.xlane.f32.xlu0 %v1081_v34 }
 0xb8e   : > { %v1079_v7 = vpop.f32.mrf.mxu1 }
 0xbe9   : > { %v1053_v35 = vpop.f32.mrf.mxu0 }
 0xbea   : > { %v1057_v36 = vpack.c.bf16 %v1053_v35, %v1053_v35  ;;  %v3482_v35 = vld [vmem:[%s5057_s6 + $0x1c] sm:$0xf] }
 0xbec   : > { %3497 = vmatmul.msk.bf16.vlgmr.msrb.gmra.mxu0 %vm500_vm1, %v1057_v36  ;;  %v1291_v36 = vsel %vm537_vm2, %v3482_v35, 0  ;;  %v3762_v35 = vld [vmem:[%s5059_s8 + $0x28] sm:$0xff] }
 0xbee   : > { %v1172_v37 = vpop.f32.mrf.mxu1 }
 0xbef   : > { %v1173_v38 = vadd.f32 %v1172_v37, %v4235_v21 }
 0xbf1   : > { %v1055_v39 = vpop.f32.mrf.mxu0  ;;  %v1176_v40 = vsel %vm500_vm1, %v1173_v38, -inf }
 0xbf2   : > { %1177 = vmax.xlane.f32.xlu2 %v1176_v40 }
 0xbf6   : > { %v1174_v41 = vpop.f32.mrf.mxu1 }
 0xbfc   : > { %3501 = vmatmul.msk.bf16.vlgmr.msra.gmra.mxu0 %vm500_vm1, %v1231_v24 }
 0xbfd   : > { %v1083_v42 = vpop.xlane.xlu0 %1082 }
 0xbfe   : > { %v1084_v43 = vsub.f32 %v1078_v33, %v1083_v42  ;;  %v1469_v33 = vpack.c.bf16 %v4434_v32, %v4434_v32 }
 0xc00   : > { %v1085_v44 = vmul.f32 1.442695, %v1084_v43 }
 0xc02   : > { %3905 = vpow2.f32 %v1085_v44  ;;  %v3847_v44 = vld [vmem:[%s5060_s9 + $0x10] ss:$0 sm:$0xff] }
 0xc08   : > { %v3906_v45 = vpop.eup %3905 }
 0xc09   : > { %v1087_v46 = vsel %vm500_vm1, %v3906_v45, 0.0 }
 0xc0a   : > { %1088 = vadd.xlane.f32.xlu0 %v1087_v46 }
 0xc1e   : > { %1093 = vrot.lane.b32.xlu0 %v4354_v0, %s5115_s16 }
 0xc65   : > { %v1178_v47 = vpop.xlane.xlu2 %1177 }
 0xc66   : > { %v1179_v48 = vsub.f32 %v1173_v38, %v1178_v47 }
 0xc68   : > { %v1180_v49 = vmul.f32 1.442695, %v1179_v48 }
 0xc69   : > { %v4398_v50 = vpop.f32.mrf.mxu0 }
 0xc6a   : > { %3907 = vpow2.f32 %v1180_v49  ;;  %v3848_v49 = vld [vmem:[%s5060_s9 + $0x9] ss:$0 sm:$0xff] }
 0xc70   : > { %v3908_v51 = vpop.eup %3907 }
 0xc71   : > { %v1151_v52 = vpop.f32.mrf.mxu0  ;;  %v1182_v53 = vsel %vm500_vm1, %v3908_v51, 0.0 }
 0xc72   : > { %1183 = vadd.xlane.f32.xlu2 %v1182_v53 }
 0xc79   : > { %v1249_v54 = vpop.f32.mrf.mxu0 }
 0xc7a   : > { %v1250_v55 = vadd.f32 %v1249_v54, %v4235_v21 }
 0xc7c   : > { %v1253_v56 = vsel %vm500_vm1, %v1250_v55, -inf }
 0xc7d   : > { %1254 = vmax.xlane.f32.xlu1 %v1253_v56  ;;  %v1089_v59 = vpop.xlane.xlu0 %1088 }
 0xc7e   : > { %3909 = vrcp.f32 %v1089_v59 }
 0xc81   : > { %v1251_v57 = vpop.f32.mrf.mxu0 }
 0xc84   : > { %v3910_v61 = vpop.eup %3909 }
 0xc85   : > { %v1091_v62 = vmul.f32 %v3910_v61, %v3906_v45 }
 0xc87   : > { %v1092_v1 = vpack.c.bf16 %v1091_v62, %v1091_v62 }
 0xc8a   : > { %1188 = vrot.lane.b32.xlu2 %v4354_v0, %s5116_s13 }
 0xc90   : > { %v1094_v63 = vpop.permute.xlu0 %1093 }
 0xc91   : > { %v1099_v2 = vsel %vm537_vm2, %v1094_v63, 0 }
 0xc92   : > { %1108 = vmatpush.bf16.msra.mxu3 %v1099_v2 }
 0xc95   : > { %3495 = vmatmul.msk.bf16.vlgmr.msra.gmra.mxu3 %vm500_vm1, %v1092_v1 }
 0xce5   : > { %v1184_v3 = vpop.xlane.xlu2 %1183 }
 0xce6   : > { %3911 = vrcp.f32 %v1184_v3 }
 0xcec   : > { %v3912_v21 = vpop.eup %3911 }
 0xced   : > { %v1186_v4 = vmul.f32 %v3912_v21, %v3908_v51  ;;  %v1189_v5 = vpop.permute.xlu2 %1188 }
 0xcee   : > { %v1194_v6 = vsel %vm537_vm2, %v1189_v5, 0  ;;  %v3760_v5 = vld [vmem:[%s5058_s7 + $0x18] sm:$0xff] }
 0xcef   : > { %v1187_v8 = vpack.c.bf16 %v1186_v4, %v1186_v4  ;;  %1203 = vmatpush.bf16.msrb.mxu3 %v1194_v6  ;;  %v3759_v6 = vld [vmem:[%s5058_s7 + $0x10] sm:$0xff] }
 0xcf0   : > { %v1255_v9 = vpop.xlane.xlu1 %1254 }
 0xcf1   : > { %v1256_v10 = vsub.f32 %v1250_v55, %v1255_v9 }
 0xcf2   : > { %3499 = vmatmul.msk.bf16.vlgmr.msrb.gmra.mxu3 %vm500_vm1, %v1187_v8 }
 0xcf3   : > { %v1257_v11 = vmul.f32 1.442695, %v1256_v10  ;;  %1300 = vmatpush.bf16.msra.mxu3 %v1291_v36  ;;  %v3761_v36 = vld [vmem:[%s5059_s8 + $0x20] sm:$0xff] }
 0xcf5   : > { %3913 = vpow2.f32 %v1257_v11 }
 0xcfb   : > { %v3914_v14 = vpop.eup %3913 }
 0xcfc   : > { %v1259_v15 = vsel %vm500_vm1, %v3914_v14, 0.0 }
 0xcfd   : > { %1260 = vadd.xlane.f32.xlu1 %v1259_v15 }
 0xd16   : > { %1265 = vrot.lane.b32.xlu1 %v4354_v0, %s5117_s26 }
 0xd18   : > { %v1110_v16 = vpop.f32.mrf.mxu3 }
 0xd19   : > { %v1114_v17 = vpack.c.bf16 %v1110_v16, %v1110_v16 }
 0xd1b   : > { %3496 = vmatmul.msk.bf16.vlgmr.msrb.gmra.mxu2 %vm500_vm1, %v1114_v17 }
 0xd1c   : > { %1367 = vmatpush.bf16.msrb.mxu2 %v3760_v5 }
 0xd20   : > { %v1112_v18 = vpop.f32.mrf.mxu3  ;;  %1368 = vmatpush.bf16.msrb.mxu2 %v3759_v6 }
 0xd70   : > { %v1261_v24 = vpop.xlane.xlu1 %1260 }
 0xd71   : > { %3915 = vrcp.f32 %v1261_v24 }
 0xd75   : > { %v1205_v22 = vpop.f32.mrf.mxu3 }
 0xd76   : > { %v1209_v23 = vpack.c.bf16 %v1205_v22, %v1205_v22 }
 0xd77   : > { %v3916_v0 = vpop.eup %3915 }
 0xd78   : > { %3500 = vmatmul.msk.bf16.vlgmr.msra.gmra.mxu2 %vm500_vm1, %v1209_v23  ;;  %v1263_v26 = vmul.f32 %v3916_v0, %v3914_v14  ;;  %v3850_v23 = vld [vmem:[%s5060_s9 + $0xd] ss:$0 sm:$0xff] }
 0xd7a   : > { %v1264_v30 = vpack.c.bf16 %v1263_v26, %v1263_v26 }
 0xd7d   : > { %v1207_v25 = vpop.f32.mrf.mxu3 }
 0xd88   : > { %v1266_v28 = vpop.permute.xlu1 %1265 }
 0xd89   : > { %v1271_v29 = vsel %vm537_vm2, %v1266_v28, 0 }
 0xd8a   : > { %1280 = vmatpush.bf16.msra.mxu1 %v1271_v29 }
 0xd8d   : > { %3502 = vmatmul.msk.bf16.vlgmr.msra.gmra.mxu1 %vm500_vm1, %v1264_v30 }
 0xd8e   : > { %1492 = vmatpush.bf16.msrb.mxu1 %v3766_v27 }
 0xd92   : > { %1493 = vmatpush.bf16.msrb.mxu1 %v3765_v31  ;;  %v3764_v31 = vld [vmem:[%s5059_s8 + $0x38] sm:$0xff] }
 0xd93   : > { %1418 = vmatpush.bf16.msrb.mxu0 %v3764_v31 }
 0xd9d   : > { %3558 = vmatmul.msk.bf16.vlgmr.msrb.gmra.mxu1 %vm479_vm0, %v1469_v33  ;;  %v3546_v33 = vld [vmem:[%s5057_s6 + $0x20] sm:$0xf] }
 0xd9e   : > { %v1130_v34 = vpop.f32.mrf.mxu2 }
 0xd9f   : > { %v1150_v37 = vadd.f32 %v4398_v50, %v1130_v34  ;;  %v3763_v34 = vld [vmem:[%s5059_s8 + $0x30] sm:$0xff] }
 0xda0   : > { %1419 = vmatpush.bf16.msrb.mxu0 %v3763_v34 }
 0xda4   : > { %1420 = vmatpush.bf16.msrb.mxu0 %v3762_v35 }
 0xda6   : > { %v1132_v7 = vpop.f32.mrf.mxu2 }
 0xda7   : > { %v1636_v7 = vsel %vm537_vm2, %v3546_v33, 0 }
 0xda8   : > { %1421 = vmatpush.bf16.msrb.mxu0 %v3761_v36 }
 0xdfb   : > { %v1225_v38 = vpop.f32.mrf.mxu2 }
 0xdfc   : > { %v1229_v39 = vadd.f32 %v1225_v38, %v1150_v37 }
 0xe03   : > { %v1227_v40 = vpop.f32.mrf.mxu2 }
 0xe0a   : > { %v1282_v41 = vpop.f32.mrf.mxu1 }
 0xe0b   : > { %v1286_v42 = vpack.c.bf16 %v1282_v41, %v1282_v41 }
 0xe0d   : > { %3503 = vmatmul.msk.bf16.vlgmr.msra.gmra.mxu3 %vm500_vm1, %v1286_v42 }
 0xe12   : > { %v1284_v43 = vpop.f32.mrf.mxu1 }
 0xe13   : > { %v3851_v43 = vld [vmem:[%s5060_s9 + $0xa] ss:$0 sm:$0xff] }
 0xe1a   : > { %v1495_v45 = vpop.f32.mrf.mxu1 }
 0xe1b   : > { %v1496_v46 = vadd.f32 %v3847_v44, %v1495_v45 }
 0xe1d   : > { %v4448_v47 = vpack.c.bf16 %v1496_v46, %v1496_v46 }
 0xe1f   : > { %1501 = vrot.lane.b32.xlu1 %v4448_v47, %s5108_s29 }
 0xe22   : > { %v1497_v48 = vpop.f32.mrf.mxu1 }
 0xe90   : > { %v1302_v50 = vpop.f32.mrf.mxu3 }
 0xe91   : > { %v1306_v51 = vadd.f32 %v1302_v50, %v1229_v39  ;;  %v1502_v52 = vpop.permute.xlu1 %1501 }
 0xe92   : > { %v1507_v53 = vsel %vm500_vm1, %v1502_v52, 0 }
 0xe93   : > { %v1308_v54 = vadd.f32 %v3848_v49, %v1306_v51  ;;  %1516 = vmatpush.bf16.xpose.msrb.mxu3 %v1507_v53 }
 0xe95   : > { %v1309_v55 = vadd.f32 %v1308_v54, %v4346_v58  ;;  %v4469_v58 = vld [vmem:[%s4466_s2] sm:$0xff] }
 0xe97   : > { %v1312_v56 = vsel %vm479_vm0, %v1309_v55, 0.0 }
 0xe98   : > { %1313 = vadd.xlane.f32.xlu0 %v1312_v56  ;;  %v1304_v57 = vpop.f32.mrf.mxu3 }
 0xe9a   : > { %3559 = vmatmul.msk.bf16.vlgmr.msrb.gmra.mxu3 %vm500_vm1, %v4448_v47 }
 0xf0b   : > { %v1314_v59 = vpop.xlane.xlu0 %1313 }
 0xf0c   : > { %v1315_v61 = vmul.f32 %v1314_v59, %v4293_v60 }
 0xf0e   : > { %v1316_v62 = vsub.f32 %v1309_v55, %v1315_v61 }
 0xf10   : > { %v1317_v63 = vmul.f32 %v1316_v62, %v1316_v62 }
 0xf12   : > { %v1318_v2 = vsel %vm479_vm0, %v1317_v63, 0.0 }
 0xf13   : > { %1319 = vadd.xlane.f32.xlu2 %v1318_v2 }
 0xf1d   : > { %v1518_v1 = vpop.f32.mrf.mxu3 }
 0xf1e   : > { %v1519_v3 = vadd.f32 %v1518_v1, %v4469_v58 }
 0xf20   : > { %v1522_v21 = vsel %vm500_vm1, %v1519_v3, -inf }
 0xf21   : > { %1523 = vmax.xlane.f32.xlu1 %v1522_v21 }
 0xf25   : > { %v1520_v4 = vpop.f32.mrf.mxu3 }
 0xf2b   : > { %1556 = vrot.lane.b32.xlu2 %v4448_v47, %s5113_s12 }
 0xf3a   : > { %1534 = vrot.lane.b32.xlu1 %v4448_v47, %s5111_s25 }
 0xf42   : > { %1730 = vrot.lane.b32.xlu1 %v4448_v47, %s5120_s17 }
 0xf4a   : > { %1728 = vrot.lane.b32.xlu1 %v4448_v47, %s5109_s24 }
 0xf86   : > { %v1320_v8 = vpop.xlane.xlu2 %1319 }
 0xf87   : > { %v1321_v9 = vmul.f32 %v1320_v8, %v4293_v60 }
 0xf89   : > { %v1322_v10 = vadd.f32 1e-05, %v1321_v9  ;;  %v3852_v9 = vld [vmem:[%s5060_s9 + $0xb] ss:$0 sm:$0xff] }
 0xf8b   : > { %3917 = vrsqrt.f32 %v1322_v10  ;;  %vm1329_vm12 = vweird.f32 %v1322_v10 }
 0xf8e   : > { %v1557_v54 = vpop.permute.xlu2 %1556 }
 0xf91   : > { %v3918_v11 = vpop.eup %3917 }
 0xf92   : > { %v1324_v12 = vmul.f32 %v3918_v11, %v1322_v10  ;;  %vm1330_vm11 = vweird.f32 %v3918_v11 }
 0xf93   : > { %vm1331_vm13 = vmor %vm1329_vm12, %vm1330_vm11 }
 0xf94   : > { %v1325_v13 = vmul.f32 %v3918_v11, %v1324_v12  ;;  %v1524_v14 = vpop.xlane.xlu1 %1523 }
 0xf95   : > { %v1525_v15 = vsub.f32 %v1519_v3, %v1524_v14 }
 0xf96   : > { %v1326_v16 = vmul.f32 0.5, %v1325_v13 }
 0xf97   : > { %v1526_v17 = vmul.f32 1.442695, %v1525_v15 }
 0xf98   : > { %v1327_v18 = vsub.f32 1.5, %v1326_v16 }
 0xf99   : > { %3919 = vpow2.f32 %v1526_v17 }
 0xf9a   : > { %v1328_v19 = vmul.f32 %v3918_v11, %v1327_v18 }
 0xf9c   : > { %v1332_v22 = vsel %vm1331_vm13, %v3918_v11, %v1328_v19 }
 0xf9d   : > { %v1333_v24 = vmul.f32 %v1332_v22, %v1316_v62 }
 0xf9f   : > { %v3920_v25 = vpop.eup %3919  ;;  %v1335_v0 = vmul.f32 %v3849_v20, %v1333_v24 }
 0xfa0   : > { %v1528_v26 = vsel %vm500_vm1, %v3920_v25, 0.0 }
 0xfa1   : > { %v4495_v27 = vadd.f32 %v3850_v23, %v1335_v0  ;;  %1529 = vadd.xlane.f32.xlu0 %v1528_v26 }
 0xfa3   : > { %v1343_v28 = vpack.c.bf16 %v4495_v27, %v4495_v27 }
 0xfa5   : > { %3516 = vmatmul.msk.bf16.vlgmr.msrb.gmra.mxu2 %vm479_vm0, %v1343_v28 }
 0xfac   : > { %v1535_v29 = vpop.permute.xlu1 %1534 }
 0xfad   : > { %v1540_v30 = vsel %vm537_vm2, %v1535_v29, 0 }
 0xfae   : > { %1549 = vmatpush.bf16.msra.mxu2 %v1540_v30 }
 0xfb2   : > { %1645 = vmatpush.bf16.msrb.mxu2 %v1636_v7 }
 0xfb4   : > { %v1731_v40 = vpop.permute.xlu1 %1730 }
 0xfb5   : > { %1558 = vrot.lane.b32.xlu0 %v4448_v47, %s5112_s30  ;;  %v1736_v42 = vsel %vm500_vm1, %v1731_v40, 0 }
 0xfbc   : > { %v1729_v63 = vpop.permute.xlu1 %1728 }
 0xfbd   : > { %1653 = vrot.lane.b32.xlu0 %v4448_v47, %s5114_s14 }
 0xfc5   : > { %1651 = vrot.lane.b32.xlu0 %v4448_v47, %s5110_s22 }
0x1014   : > { %v1530_v37 = vpop.xlane.xlu0 %1529 }
0x1015   : > { %3921 = vrcp.f32 %v1530_v37 }
0x101b   : > { %v3922_v38 = vpop.eup %3921 }
0x101c   : > { %v1532_v39 = vmul.f32 %v3922_v38, %v3920_v25 }
0x101e   : > { %v1533_v41 = vpack.c.bf16 %v1532_v39, %v1532_v39 }
0x1020   : > { %3560 = vmatmul.msk.bf16.vlgmr.msra.gmra.mxu2 %vm500_vm1, %v1533_v41 }
0x1021   : > { %1745 = vmatpush.bf16.xpose.msra.mxu2 %v1736_v42 }
0x1027   : > { %v1559_v44 = vpop.permute.xlu0 %1558 }
0x1028   : > { %v1564_v45 = vsel %vm500_vm1, %v1559_v44, 0  ;;  %v1370_v46 = vpop.f32.mrf.mxu2 }
0x1029   : > { %v1371_v48 = vadd.f32 %v3851_v43, %v1370_v46  ;;  %1573 = vmatpush.bf16.xpose.msra.mxu0 %v1564_v45 }
0x102b   : > { %v1374_v49 = vmax.f32 %v1371_v48, 0.0 }
0x102d   : > { %v1384_v50 = vpack.c.bf16 %v1374_v49, %v1374_v49 }
0x102f   : > { %3541 = vmatmul.msk.bf16.vlgmr.msrb.gmra.mxu0 %vm913_vm7, %v1384_v50  ;;  %v1654_v51 = vpop.permute.xlu0 %1653 }
0x1030   : > { %v1659_v52 = vsel %vm500_vm1, %v1654_v51, 0  ;;  %v1372_v53 = vpop.f32.mrf.mxu2  ;;  %v3547_v51 = vld [vmem:[%s5057_s6 + $0x24] sm:$0xf] }
0x1031   : > { %1668 = vmatpush.bf16.xpose.msrb.mxu0 %v1659_v52  ;;  %v1617_v52 = vsel %vm537_vm2, %v3547_v51, 0 }
0x1032   : > { %1626 = vmatpush.bf16.msra.mxu3 %v1617_v52 }
0x1037   : > { %v1652_v55 = vpop.permute.xlu0 %1651 }
0x103f   : > { %3561 = vmatmul.msk.bf16.vlgmr.msra.gmra.mxu0 %vm500_vm1, %v1557_v54 }
0x104f   : > { %3565 = vmatmul.msk.bf16.vlgmr.msrb.gmra.mxu0 %vm500_vm1, %v1652_v55 }
0x10a3   : > { %v1551_v56 = vpop.f32.mrf.mxu2 }
0x10a4   : > { %v1555_v57 = vpack.c.bf16 %v1551_v56, %v1551_v56 }
0x10a6   : > { %3564 = vmatmul.msk.bf16.vlgmr.msrb.gmra.mxu2 %vm500_vm1, %v1555_v57 }
0x10ab   : > { %v1553_v59 = vpop.f32.mrf.mxu2 }
0x10ac   : > { %v1423_v61 = vpop.f32.mrf.mxu0 }
0x10ad   : > { %v1424_v10 = vadd.f32 %v3852_v9, %v1423_v61 }
0x10af   : > { %v1427_v11 = vadd.f32 %v1424_v10, %v4495_v27 }
0x10b1   : > { %v1430_v12 = vsel %vm479_vm0, %v1427_v11, 0.0 }
0x10b4   : > { %v1425_v62 = vpop.f32.mrf.mxu0 }
0x10b6   : > { %3568 = vmatmul.msk.bf16.vlgmr.msra.gmra.mxu2 %vm500_vm1, %v1729_v63 }
0x10bc   : > { %v1575_v2 = vpop.f32.mrf.mxu0 }
0x10bd   : > { %v1576_v1 = vadd.f32 %v1575_v2, %v4469_v58 }
0x10bf   : > { %v1579_v3 = vsel %vm500_vm1, %v1576_v1, -inf }
0x10c0   : > { %1580 = vmax.xlane.f32.xlu2 %v1579_v3 }
0x10c4   : > { %v1577_v21 = vpop.f32.mrf.mxu0 }
0x10cc   : > { %v1670_v4 = vpop.f32.mrf.mxu0 }
0x10cd   : > { %v1671_v5 = vadd.f32 %v1670_v4, %v4469_v58  ;;  %v3549_v4 = vld [vmem:[%s5057_s6 + $0x2c] sm:$0xf] }
0x10cf   : > { %v1674_v6 = vsel %vm500_vm1, %v1671_v5, -inf }
0x10d0   : > { %1675 = vmax.xlane.f32.xlu0 %v1674_v6 }
0x10d4   : > { %v1672_v8 = vpop.f32.mrf.mxu0 }
0x10e4   : > { %1591 = vrot.lane.b32.xlu0 %v4448_v47, %s5115_s16 }
0x110e   : > { %1431 = vadd.xlane.f32.xlu0 %v1430_v12 }
0x1129   : > { %v4546_v13 = vpop.f32.mrf.mxu2 }
0x1131   : > { %v1649_v14 = vpop.f32.mrf.mxu2 }
0x1133   : > { %v1581_v15 = vpop.xlane.xlu2 %1580 }
0x1134   : > { %v1582_v16 = vsub.f32 %v1576_v1, %v1581_v15 }
0x1136   : > { %v1583_v17 = vmul.f32 1.442695, %v1582_v16 }
0x1138   : > { %3923 = vpow2.f32 %v1583_v17  ;;  %v3854_v17 = vld [vmem:[%s5060_s9 + $0x11] ss:$0 sm:$0xff] }
0x1139   : > { %v1747_v18 = vpop.f32.mrf.mxu2 }
0x113a   : > { %v1748_v19 = vadd.f32 %v1747_v18, %v4469_v58 }
0x113c   : > { %v1751_v20 = vsel %vm500_vm1, %v1748_v19, -inf }
0x113d   : > { %1752 = vmax.xlane.f32.xlu1 %v1751_v20 }
0x113e   : > { %v3924_v22 = vpop.eup %3923 }
0x113f   : > { %v1585_v23 = vsel %vm500_vm1, %v3924_v22, 0.0 }
0x1140   : > { %1586 = vadd.xlane.f32.xlu2 %v1585_v23 }
0x1141   : > { %v1749_v24 = vpop.f32.mrf.mxu2 }
0x1143   : > { %v1676_v25 = vpop.xlane.xlu0 %1675 }
0x1144   : > { %v1677_v0 = vsub.f32 %v1671_v5, %v1676_v25  ;;  %v1789_v5 = vsel %vm537_vm2, %v3549_v4, 0 }
0x1146   : > { %v1678_v26 = vmul.f32 1.442695, %v1677_v0  ;;  %v3767_v0 = vld [vmem:[%s5056_s5 + $0x40] sm:$0xff] }
0x1148   : > { %3925 = vpow2.f32 %v1678_v26 }
0x114e   : > { %v3926_v27 = vpop.eup %3925 }
0x114f   : > { %v1680_v28 = vsel %vm500_vm1, %v3926_v27, 0.0 }
0x1150   : > { %1681 = vadd.xlane.f32.xlu1 %v1680_v28 }
0x1156   : > { %v1592_v29 = vpop.permute.xlu0 %1591 }
0x1157   : > { %v1597_v30 = vsel %vm537_vm2, %v1592_v29, 0 }
0x1158   : > { %1686 = vrot.lane.b32.xlu2 %v4448_v47, %s5116_s13  ;;  %1606 = vmatpush.bf16.msra.mxu1 %v1597_v30 }
0x1181   : > { %v1432_v45 = vpop.xlane.xlu0 %1431 }
0x1182   : > { %v1433_v46 = vmul.f32 %v1432_v45, %v4293_v60 }
0x1184   : > { %v4562_v48 = vsub.f32 %v1427_v11, %v1433_v46 }
0x1186   : > { %v1435_v49 = vmul.f32 %v4562_v48, %v4562_v48 }
0x1188   : > { %v1436_v50 = vsel %vm479_vm0, %v1435_v49, 0.0 }
0x11b0   : > { %v1753_v58 = vpop.xlane.xlu1 %1752 }
0x11b1   : > { %v1754_v31 = vsub.f32 %v1748_v19, %v1753_v58 }
0x11b3   : > { %v1755_v33 = vmul.f32 1.442695, %v1754_v31  ;;  %v1587_v34 = vpop.xlane.xlu2 %1586 }
0x11b4   : > { %3927 = vrcp.f32 %v1587_v34 }
0x11b5   : > { %3929 = vpow2.f32 %v1755_v33 }
0x11ba   : > { %v3928_v7 = vpop.eup %3927 }
0x11bb   : > { %v3930_v35 = vpop.eup %3929  ;;  %v1589_v36 = vmul.f32 %v3928_v7, %v3924_v22  ;;  %v1687_v37 = vpop.permute.xlu2 %1686 }
0x11bc   : > { %v1692_v38 = vsel %vm537_vm2, %v1687_v37, 0  ;;  %v1757_v39 = vsel %vm500_vm1, %v3930_v35, 0.0  ;;  %v3858_v37 = vld [vmem:[%s5060_s9 + $0x12] ss:$0 sm:$0xff] }
0x11bd   : > { %v1590_v40 = vpack.c.bf16 %v1589_v36, %v1589_v36  ;;  %1701 = vmatpush.bf16.msrb.mxu1 %v1692_v38  ;;  %1758 = vadd.xlane.f32.xlu1 %v1757_v39 }
0x11bf   : > { %3562 = vmatmul.msk.bf16.vlgmr.msra.gmra.mxu1 %vm500_vm1, %v1590_v40 }
0x11c1   : > { %1798 = vmatpush.bf16.msra.mxu1 %v1789_v5 }
0x11c3   : > { %v1682_v41 = vpop.xlane.xlu1 %1681 }
0x11c4   : > { %3931 = vrcp.f32 %v1682_v41 }
0x11ca   : > { %v3932_v42 = vpop.eup %3931 }
0x11cb   : > { %v1684_v43 = vmul.f32 %v3932_v42, %v3926_v27 }
0x11cd   : > { %v1685_v44 = vpack.c.bf16 %v1684_v43, %v1684_v43  ;;  %v3853_v43 = vld [vmem:[%s5060_s9 + $0xe] ss:$0 sm:$0xff] }
0x11cf   : > { %3566 = vmatmul.msk.bf16.vlgmr.msrb.gmra.mxu1 %vm500_vm1, %v1685_v44 }
0x11d6   : > { %1763 = vrot.lane.b32.xlu1 %v4448_v47, %s5117_s26  ;;  %v3548_v47 = vld [vmem:[%s5057_s6 + $0x28] sm:$0xf] }
0x11d7   : > { %v1712_v53 = vsel %vm537_vm2, %v3548_v47, 0 }
0x11d8   : > { %1721 = vmatpush.bf16.msrb.mxu3 %v1712_v53 }
0x1200   : > { %1437 = vadd.xlane.f32.xlu1 %v1436_v50  ;;  %v3857_v50 = vld [vmem:[%s5060_s9 + $0xf] ss:$0 sm:$0xff] }
0x1219   : > { %1886 = vrot.lane.b32.xlu1 %v3858_v37, %s5108_s29 }
0x1230   : > { %v1759_v54 = vpop.xlane.xlu1 %1758 }
0x1231   : > { %3933 = vrcp.f32 %v1759_v54 }
0x1237   : > { %v3934_v57 = vpop.eup %3933 }
0x1238   : > { %v1761_v61 = vmul.f32 %v3934_v57, %v3930_v35 }
0x123a   : > { %v1762_v2 = vpack.c.bf16 %v1761_v61, %v1761_v61 }
0x123c   : > { %v1608_v55 = vpop.f32.mrf.mxu1 }
0x123d   : > { %v1612_v56 = vpack.c.bf16 %v1608_v55, %v1608_v55 }
0x123f   : > { %3563 = vmatmul.msk.bf16.vlgmr.msra.gmra.mxu3 %vm500_vm1, %v1612_v56 }
0x1244   : > { %v1610_v59 = vpop.f32.mrf.mxu1 }
0x1245   : > { %v3856_v59 = vld [vmem:[%s5060_s9 + $0x17] ss:$0 sm:$0xff] }
0x1248   : > { %v1764_v62 = vpop.permute.xlu1 %1763 }
0x1249   : > { %v1769_v63 = vsel %vm537_vm2, %v1764_v62, 0 }
0x124a   : > { %1778 = vmatpush.bf16.msra.mxu0 %v1769_v63 }
0x124c   : > { %v1703_v1 = vpop.f32.mrf.mxu1 }
0x124d   : > { %v1707_v3 = vpack.c.bf16 %v1703_v1, %v1703_v1  ;;  %3569 = vmatmul.msk.bf16.vlgmr.msra.gmra.mxu0 %vm500_vm1, %v1762_v2 }
0x124f   : > { %3567 = vmatmul.msk.bf16.vlgmr.msrb.gmra.mxu3 %vm500_vm1, %v1707_v3 }
0x1254   : > { %v1705_v21 = vpop.f32.mrf.mxu1 }
0x1273   : > { %v1438_v29 = vpop.xlane.xlu1 %1437 }
0x1274   : > { %v1439_v30 = vmul.f32 %v1438_v29, %v4293_v60 }
0x1276   : > { %v1440_v58 = vadd.f32 1e-05, %v1439_v30 }
0x1278   : > { %3935 = vrsqrt.f32 %v1440_v58  ;;  %vm1447_vm15 = vweird.f32 %v1440_v58 }
0x127e   : > { %v3936_v31 = vpop.eup %3935 }
0x127f   : > { %v1442_v34 = vmul.f32 %v3936_v31, %v1440_v58  ;;  %vm1448_vm14 = vweird.f32 %v3936_v31 }
0x1280   : > { %vm1449_vm3 = vmor %vm1447_vm15, %vm1448_vm14 }
0x1281   : > { %v1443_v7 = vmul.f32 %v3936_v31, %v1442_v34 }
0x1283   : > { %v1444_v35 = vmul.f32 0.5, %v1443_v7 }
0x1285   : > { %v1445_v36 = vsub.f32 1.5, %v1444_v35 }
0x1287   : > { %v1446_v40 = vmul.f32 %v3936_v31, %v1445_v36 }
0x1289   : > { %v1450_v42 = vsel %vm1449_vm3, %v3936_v31, %v1446_v40 }
0x128a   : > { %v1451_v44 = vmul.f32 %v1450_v42, %v4562_v48  ;;  %v3855_v48 = vld [vmem:[%s5060_s9 + $0x16] ss:$0 sm:$0xff] }
0x128b   : > { %v1887_v1 = vpop.permute.xlu1 %1886 }
0x128c   : > { %v1453_v49 = vmul.f32 %v3853_v43, %v1451_v44 }
0x128e   : > { %v1455_v47 = vadd.f32 %v3857_v50, %v1453_v49 }
0x1290   : > { %v4616_v56 = vpack.c.bf16 %v1455_v47, %v1455_v47 }
0x12c2   : > { %v1628_v6 = vpop.f32.mrf.mxu3 }
0x12c3   : > { %v1648_v11 = vadd.f32 %v4546_v13, %v1628_v6  ;;  %v3768_v13 = vld [vmem:[%s5056_s5 + $0x48] sm:$0xff] }
0x12c4   : > { %1871 = vmatpush.bf16.msra.mxu3 %v3768_v13 }
0x12c8   : > { %1872 = vmatpush.bf16.msra.mxu3 %v3767_v0 }
0x12ca   : > { %v1630_v8 = vpop.f32.mrf.mxu3  ;;  %v1780_v9 = vpop.f32.mrf.mxu0 }
0x12cb   : > { %v1784_v10 = vpack.c.bf16 %v1780_v9, %v1780_v9 }
0x12cd   : > { %3570 = vmatmul.msk.bf16.vlgmr.msra.gmra.mxu1 %vm500_vm1, %v1784_v10 }
0x12d2   : > { %v1723_v12 = vpop.f32.mrf.mxu3  ;;  %v1782_v14 = vpop.f32.mrf.mxu0 }
0x12d3   : > { %v1727_v15 = vadd.f32 %v1723_v12, %v1648_v11 }
0x12da   : > { %v1725_v16 = vpop.f32.mrf.mxu3 }
0x134a   : > { %v1800_v18 = vpop.f32.mrf.mxu1 }
0x134b   : > { %v1804_v19 = vadd.f32 %v1800_v18, %v1727_v15  ;;  %v4650_v18 = vld [vmem:[%s4646_s28] sm:$0xff] }
0x134d   : > { %v1806_v20 = vadd.f32 %v3854_v17, %v1804_v19 }
0x134f   : > { %v1807_v22 = vadd.f32 %v1806_v20, %v4434_v32 }
0x1351   : > { %v1810_v23 = vsel %vm479_vm0, %v1807_v22, 0.0 }
0x1352   : > { %1811 = vadd.xlane.f32.xlu2 %v1810_v23  ;;  %v1802_v24 = vpop.f32.mrf.mxu1 }
0x136a   : > { %1881 = vrot.lane.b32.xlu2 %v3768_v13, %s5108_s29 }
0x13c5   : > { %v1812_v25 = vpop.xlane.xlu2 %1811 }
0x13c6   : > { %v1813_v26 = vmul.f32 %v1812_v25, %v4293_v60 }
0x13c8   : > { %v1814_v32 = vsub.f32 %v1807_v22, %v1813_v26 }
0x13ca   : > { %v1815_v27 = vmul.f32 %v1814_v32, %v1814_v32 }
0x13cc   : > { %v1816_v28 = vsel %vm479_vm0, %v1815_v27, 0.0 }
0x13cd   : > { %1817 = vadd.xlane.f32.xlu0 %v1816_v28  ;;  %v1882_v33 = vpop.permute.xlu2 %1881 }
0x13ce   : > { %1898 = vmatpush.bf16.msrb.mxu2 %v1882_v33  ;;  %v3575_v33 = vld [vmem:[%s5057_s6 + $0x40] sm:$0xf] }
0x13cf   : > { %v2042_v34 = vsel %vm537_vm2, %v3575_v33, 0 }
0x13e1   : > { %1879 = vrot.lane.b32.xlu0 %v3767_v0, %s5108_s29 }
0x1440   : > { %v1818_v38 = vpop.xlane.xlu0 %1817 }
0x1441   : > { %v1819_v39 = vmul.f32 %v1818_v38, %v4293_v60 }
0x1443   : > { %v1820_v41 = vadd.f32 1e-05, %v1819_v39 }
0x1445   : > { %3937 = vrsqrt.f32 %v1820_v41  ;;  %vm1827_vm5 = vweird.f32 %v1820_v41 }
0x144b   : > { %v3938_v45 = vpop.eup %3937 }
0x144c   : > { %v1822_v46 = vmul.f32 %v3938_v45, %v1820_v41  ;;  %vm1828_vm4 = vweird.f32 %v3938_v45 }
0x144d   : > { %vm1829_vm6 = vmor %vm1827_vm5, %vm1828_vm4 }
0x144e   : > { %v1823_v51 = vmul.f32 %v3938_v45, %v1822_v46 }
0x1450   : > { %v1824_v52 = vmul.f32 0.5, %v1823_v51 }
0x1452   : > { %v1825_v53 = vsub.f32 1.5, %v1824_v52 }
0x1453   : > { %v1880_v54 = vpop.permute.xlu0 %1879 }
0x1454   : > { %v1826_v55 = vmul.f32 %v3938_v45, %v1825_v53  ;;  %1899 = vmatpush.bf16.msrb.mxu2 %v1880_v54 }
0x1456   : > { %v1830_v57 = vsel %vm1829_vm6, %v3938_v45, %v1826_v55 }
0x1457   : > { %v1831_v61 = vmul.f32 %v1830_v57, %v1814_v32  ;;  %3588 = vmatmul.msk.bf16.vlgmr.msrb.gmra.mxu2 %vm479_vm0, %v4616_v56 }
0x1459   : > { %v1833_v62 = vmul.f32 %v3855_v48, %v1831_v61 }
0x145b   : > { %v4623_v63 = vadd.f32 %v3856_v59, %v1833_v62 }
0x145d   : > { %v1848_v2 = vpack.c.bf16 %v4623_v63, %v4623_v63 }
0x145f   : > { %3587 = vmatmul.msk.bf16.vlgmr.msra.gmra.mxu3 %vm479_vm0, %v1848_v2 }
0x14da   : > { %v1901_v3 = vpop.f32.mrf.mxu2 }
0x14db   : > { %v1902_v21 = vadd.f32 %v1901_v3, %v1887_v1 }
0x14dd   : > { %v4628_v4 = vpack.c.bf16 %v1902_v21, %v1902_v21 }
0x14df   : > { %1939 = vrot.lane.b32.xlu1 %v4628_v4, %s5108_s29  ;;  %v1911_v5 = vsel %vm500_vm1, %v4628_v4, 0 }
0x14e0   : > { %1920 = vmatpush.bf16.xpose.msrb.mxu0 %v1911_v5 }
0x14e2   : > { %v1874_v6 = vpop.f32.mrf.mxu3  ;;  %v1903_v8 = vpop.f32.mrf.mxu2 }
0x14e3   : > { %v1875_v9 = vadd.f32 %v3858_v37, %v1874_v6 }
0x14e5   : > { %v1905_v10 = vpack.c.bf16 %v1875_v9, %v1875_v9 }
0x14e7   : > { %1964 = vrot.lane.b32.xlu1 %v4628_v4, %s5113_s12  ;;  %3589 = vmatmul.msk.bf16.vlgmr.msrb.gmra.mxu0 %vm500_vm1, %v1905_v10 }
0x14ea   : > { %v1876_v11 = vpop.f32.mrf.mxu3 }
0x14ef   : > { %1962 = vrot.lane.b32.xlu1 %v1905_v10, %s5113_s12 }
0x14f7   : > { %2057 = vrot.lane.b32.xlu1 %v1905_v10, %s5110_s22 }
0x14ff   : > { %2134 = vrot.lane.b32.xlu1 %v1905_v10, %s5109_s24 }
0x1551   : > { %v1940_v12 = vpop.permute.xlu1 %1939 }
0x1552   : > { %v1945_v14 = vsel %vm537_vm2, %v1940_v12, 0 }
0x1553   : > { %1954 = vmatpush.bf16.msrb.mxu1 %v1945_v14 }
0x1557   : > { %2051 = vmatpush.bf16.msra.mxu1 %v2042_v34 }
0x1559   : > { %v1965_v15 = vpop.permute.xlu1 %1964 }
0x155a   : > { %v1970_v16 = vsel %vm500_vm1, %v1965_v15, 0 }
0x155b   : > { %1979 = vmatpush.bf16.xpose.msrb.mxu3 %v1970_v16 }
0x1561   : > { %v1963_v17 = vpop.permute.xlu1 %1962 }
0x1562   : > { %3591 = vmatmul.msk.bf16.vlgmr.msrb.gmra.mxu3 %vm500_vm1, %v1963_v17 }
0x1564   : > { %v1922_v19 = vpop.f32.mrf.mxu0 }
0x1565   : > { %v1923_v20 = vadd.f32 %v1922_v19, %v4650_v18 }
0x1567   : > { %v1926_v22 = vsel %vm500_vm1, %v1923_v20, -inf }
0x1568   : > { %1927 = vmax.xlane.f32.xlu0 %v1926_v22 }
0x1569   : > { %v2058_v31 = vpop.permute.xlu1 %2057 }
0x156c   : > { %v1924_v23 = vpop.f32.mrf.mxu0 }
0x1571   : > { %v2135_v7 = vpop.permute.xlu1 %2134 }
0x157c   : > { %2059 = vrot.lane.b32.xlu0 %v4628_v4, %s5110_s22 }
0x15db   : > { %v1928_v24 = vpop.xlane.xlu0 %1927 }
0x15dc   : > { %v1929_v13 = vsub.f32 %v1923_v20, %v1928_v24 }
0x15de   : > { %v1930_v25 = vmul.f32 1.442695, %v1929_v13 }
0x15e0   : > { %3939 = vpow2.f32 %v1930_v25  ;;  %v3576_v25 = vld [vmem:[%s5057_s6 + $0x44] sm:$0xf] }
0x15e5   : > { %v1981_v0 = vpop.f32.mrf.mxu3 }
0x15e6   : > { %v3940_v26 = vpop.eup %3939  ;;  %v1982_v32 = vadd.f32 %v1981_v0, %v4650_v18  ;;  %v2023_v0 = vsel %vm537_vm2, %v3576_v25, 0  ;;  %v3862_v25 = vld [vmem:[%s5060_s9 + $0x14] ss:$0 sm:$0xff] }
0x15e7   : > { %v1932_v27 = vsel %vm500_vm1, %v3940_v26, 0.0  ;;  %2032 = vmatpush.bf16.msra.mxu0 %v2023_v0 }
0x15e8   : > { %1933 = vadd.xlane.f32.xlu2 %v1932_v27  ;;  %v1985_v28 = vsel %vm500_vm1, %v1982_v32, -inf }
0x15e9   : > { %1986 = vmax.xlane.f32.xlu1 %v1985_v28 }
0x15ed   : > { %v1983_v29 = vpop.f32.mrf.mxu3 }
0x15ee   : > { %v2060_v30 = vpop.permute.xlu0 %2059 }
0x15ef   : > { %v2065_v58 = vsel %vm500_vm1, %v2060_v30, 0 }
0x15f0   : > { %2074 = vmatpush.bf16.xpose.msra.mxu3 %v2065_v58 }
0x15f7   : > { %3595 = vmatmul.msk.bf16.vlgmr.msra.gmra.mxu3 %vm500_vm1, %v2058_v31 }
0x1600   : > { %2136 = vrot.lane.b32.xlu2 %v4628_v4, %s5109_s24 }
0x165b   : > { %v1934_v35 = vpop.xlane.xlu2 %1933 }
0x165c   : > { %3941 = vrcp.f32 %v1934_v35  ;;  %v1987_v36 = vpop.xlane.xlu1 %1986 }
0x165d   : > { %v1988_v37 = vsub.f32 %v1982_v32, %v1987_v36 }
0x165f   : > { %v1989_v38 = vmul.f32 1.442695, %v1988_v37  ;;  %v3578_v37 = vld [vmem:[%s5057_s6 + $0x4c] sm:$0xf] }
0x1661   : > { %3943 = vpow2.f32 %v1989_v38  ;;  %v2195_v38 = vsel %vm537_vm2, %v3578_v37, 0 }
0x1662   : > { %v3942_v39 = vpop.eup %3941 }
0x1663   : > { %v1936_v40 = vmul.f32 %v3942_v39, %v3940_v26  ;;  %v2137_v41 = vpop.permute.xlu2 %2136 }
0x1664   : > { %v2142_v44 = vsel %vm500_vm1, %v2137_v41, 0 }
0x1665   : > { %v1937_v42 = vpack.c.bf16 %v1936_v40, %v1936_v40 }
0x1667   : > { %v3944_v43 = vpop.eup %3943  ;;  %3590 = vmatmul.msk.bf16.vlgmr.msrb.gmra.mxu1 %vm500_vm1, %v1937_v42 }
0x1668   : > { %2151 = vmatpush.bf16.xpose.msrb.mxu1 %v2142_v44  ;;  %v1991_v45 = vsel %vm500_vm1, %v3944_v43, 0.0 }
0x1669   : > { %1992 = vadd.xlane.f32.xlu1 %v1991_v45 }
0x167a   : > { %v2076_v46 = vpop.f32.mrf.mxu3 }
0x167b   : > { %v2077_v49 = vadd.f32 %v2076_v46, %v4650_v18 }
0x167d   : > { %v2080_v50 = vsel %vm500_vm1, %v2077_v49, -inf }
0x167e   : > { %2081 = vmax.xlane.f32.xlu2 %v2080_v50  ;;  %v3859_v50 = vld [vmem:[%s5060_s9 + $0x13] ss:$0 sm:$0xff] }
0x1682   : > { %v2078_v51 = vpop.f32.mrf.mxu3 }
0x16dc   : > { %v1993_v8 = vpop.xlane.xlu1 %1992 }
0x16e4   : > { %v1956_v52 = vpop.f32.mrf.mxu1 }
0x16e5   : > { %v1960_v47 = vpack.c.bf16 %v1956_v52, %v1956_v52 }
0x16e7   : > { %3594 = vmatmul.msk.bf16.vlgmr.msra.gmra.mxu1 %vm500_vm1, %v1960_v47 }
0x16ec   : > { %v1958_v53 = vpop.f32.mrf.mxu1 }
0x16f1   : > { %v2082_v54 = vpop.xlane.xlu2 %2081 }
0x16f2   : > { %v2083_v55 = vsub.f32 %v2077_v49, %v2082_v54 }
0x16f4   : > { %v2084_v48 = vmul.f32 1.442695, %v2083_v55 }
0x16f6   : > { %3945 = vpow2.f32 %v2084_v48 }
0x16f7   : > { %3598 = vmatmul.msk.bf16.vlgmr.msrb.gmra.mxu1 %vm500_vm1, %v2135_v7 }
0x16fc   : > { %v3946_v57 = vpop.eup %3945 }
0x16fd   : > { %v2086_v59 = vsel %vm500_vm1, %v3946_v57, 0.0 }
0x16fe   : > { %2087 = vadd.xlane.f32.xlu1 %v2086_v59 }
0x1717   : > { %2092 = vrot.lane.b32.xlu1 %v4628_v4, %s5114_s14 }
0x1764   : > { %v4677_v61 = vpop.f32.mrf.mxu1 }
0x176c   : > { %v2055_v62 = vpop.f32.mrf.mxu1 }
0x1771   : > { %v2088_v10 = vpop.xlane.xlu1 %2087 }
0x1774   : > { %v2153_v2 = vpop.f32.mrf.mxu1 }
0x1775   : > { %v2154_v1 = vadd.f32 %v2153_v2, %v4650_v18  ;;  %v3770_v2 = vld [vmem:[%s5058_s7 + $0x28] sm:$0xff] }
0x1777   : > { %v2157_v3 = vsel %vm500_vm1, %v2154_v1, -inf }
0x1778   : > { %2158 = vmax.xlane.f32.xlu0 %v2157_v3 }
0x177c   : > { %v2155_v21 = vpop.f32.mrf.mxu1 }
0x1789   : > { %v2093_v16 = vpop.permute.xlu1 %2092 }
0x178a   : > { %v2098_v20 = vsel %vm537_vm2, %v2093_v16, 0 }
0x178c   : > { %1997 = vrot.lane.b32.xlu0 %v4628_v4, %s5112_s30 }
0x17eb   : > { %v2159_v5 = vpop.xlane.xlu0 %2158 }
0x17ec   : > { %v2160_v6 = vsub.f32 %v2154_v1, %v2159_v5  ;;  %v3774_v1 = vld [vmem:[%s5059_s8 + $0x58] sm:$0xff]  ;;  %v3773_v5 = vld [vmem:[%s5059_s8 + $0x50] sm:$0xff] }
0x17ed   : > { %2322 = vmatpush.bf16.msra.mxu1 %v3774_v1 }
0x17ee   : > { %v2161_v9 = vmul.f32 1.442695, %v2160_v6 }
0x17f0   : > { %3947 = vpow2.f32 %v2161_v9 }
0x17f1   : > { %3949 = vrcp.f32 %v1993_v8  ;;  %2323 = vmatpush.bf16.msra.mxu1 %v3773_v5 }
0x17f2   : > { %3951 = vrcp.f32 %v2088_v10 }
0x17f6   : > { %v3948_v11 = vpop.eup %3947 }
0x17f7   : > { %v2163_v12 = vsel %vm500_vm1, %v3948_v11, 0.0  ;;  %v3950_v14 = vpop.eup %3949 }
0x17f8   : > { %2164 = vadd.xlane.f32.xlu2 %v2163_v12  ;;  %v1995_v15 = vmul.f32 %v3950_v14, %v3944_v43  ;;  %v3952_v23 = vpop.eup %3951 }
0x17f9   : > { %v2090_v24 = vmul.f32 %v3952_v23, %v3946_v57 }
0x17fa   : > { %v1996_v22 = vpack.c.bf16 %v1995_v15, %v1995_v15  ;;  %v3860_v15 = vld [vmem:[%s5060_s9 + $0x18] ss:$0 sm:$0xff] }
0x17fb   : > { %v2091_v13 = vpack.c.bf16 %v2090_v24, %v2090_v24  ;;  %v3772_v24 = vld [vmem:[%s5059_s8 + $0x48] sm:$0xff] }
0x17fc   : > { %2324 = vmatpush.bf16.msra.mxu1 %v3772_v24 }
0x17fe   : > { %v1998_v17 = vpop.permute.xlu0 %1997 }
0x17ff   : > { %v2003_v19 = vsel %vm537_vm2, %v1998_v17, 0  ;;  %v3861_v17 = vld [vmem:[%s5060_s9 + $0x19] ss:$0 sm:$0xff] }
0x1800   : > { %2012 = vmatpush.bf16.msra.mxu2 %v2003_v19 }
0x1803   : > { %3592 = vmatmul.msk.bf16.vlgmr.msra.gmra.mxu2 %vm500_vm1, %v1996_v22 }
0x1804   : > { %2107 = vmatpush.bf16.msrb.mxu2 %v2098_v20 }
0x1808   : > { %2204 = vmatpush.bf16.msra.mxu2 %v2195_v38  ;;  %v3776_v38 = vld [vmem:[%s5056_s5 + $0x38] sm:$0xff] }
0x1810   : > { %2169 = vrot.lane.b32.xlu2 %v4628_v4, %s5120_s17  ;;  %v3577_v4 = vld [vmem:[%s5057_s6 + $0x48] sm:$0xf] }
0x1811   : > { %v2118_v58 = vsel %vm537_vm2, %v3577_v4, 0 }
0x1812   : > { %2127 = vmatpush.bf16.msrb.mxu0 %v2118_v58 }
0x1813   : > { %3596 = vmatmul.msk.bf16.vlgmr.msrb.gmra.mxu2 %vm500_vm1, %v2091_v13  ;;  %v3771_v13 = vld [vmem:[%s5059_s8 + $0x40] sm:$0xff] }
0x1814   : > { %2325 = vmatpush.bf16.msra.mxu1 %v3771_v13 }
0x186b   : > { %v2165_v26 = vpop.xlane.xlu2 %2164 }
0x186c   : > { %3953 = vrcp.f32 %v2165_v26 }
0x1872   : > { %v3954_v32 = vpop.eup %3953 }
0x1873   : > { %v2167_v27 = vmul.f32 %v3954_v32, %v3948_v11  ;;  %v2170_v28 = vpop.permute.xlu2 %2169 }
0x1874   : > { %v2175_v29 = vsel %vm537_vm2, %v2170_v28, 0 }
0x1875   : > { %v2168_v30 = vpack.c.bf16 %v2167_v27, %v2167_v27  ;;  %2184 = vmatpush.bf16.msrb.mxu3 %v2175_v29  ;;  %v3863_v29 = vld [vmem:[%s5060_s9 + $0x15] ss:$0 sm:$0xff] }
0x1878   : > { %3599 = vmatmul.msk.bf16.vlgmr.msrb.gmra.mxu3 %vm500_vm1, %v2168_v30 }
0x1879   : > { %2395 = vmatpush.bf16.msra.mxu3 %v3776_v38 }
0x1886   : > { %v2014_v31 = vpop.f32.mrf.mxu2 }
0x1887   : > { %v2018_v33 = vpack.c.bf16 %v2014_v31, %v2014_v31 }
0x1889   : > { %3593 = vmatmul.msk.bf16.vlgmr.msra.gmra.mxu0 %vm500_vm1, %v2018_v33 }
0x188a   : > { %2271 = vmatpush.bf16.msra.mxu0 %v3770_v2 }
0x188e   : > { %v2016_v34 = vpop.f32.mrf.mxu2 }
0x1896   : > { %v2109_v7 = vpop.f32.mrf.mxu2 }
0x1897   : > { %v2113_v35 = vpack.c.bf16 %v2109_v7, %v2109_v7 }
0x1899   : > { %3597 = vmatmul.msk.bf16.vlgmr.msrb.gmra.mxu0 %vm500_vm1, %v2113_v35 }
0x189e   : > { %v2111_v36 = vpop.f32.mrf.mxu2 }
0x18fb   : > { %v2186_v39 = vpop.f32.mrf.mxu3 }
0x18fc   : > { %v2190_v40 = vpack.c.bf16 %v2186_v39, %v2186_v39  ;;  %v3775_v39 = vld [vmem:[%s5056_s5 + $0x30] sm:$0xff] }
0x18fd   : > { %2396 = vmatpush.bf16.msra.mxu3 %v3775_v39 }
0x18fe   : > { %3600 = vmatmul.msk.bf16.vlgmr.msra.gmra.mxu2 %vm500_vm1, %v2190_v40 }
0x1903   : > { %v2188_v41 = vpop.f32.mrf.mxu3 }
0x1906   : > { %v2034_v42 = vpop.f32.mrf.mxu0 }
0x1907   : > { %v2054_v44 = vadd.f32 %v4677_v61, %v2034_v42 }
0x190e   : > { %v2036_v43 = vpop.f32.mrf.mxu0 }
0x1916   : > { %v2129_v45 = vpop.f32.mrf.mxu0 }
0x1917   : > { %v2133_v46 = vadd.f32 %v2129_v45, %v2054_v44 }
0x191e   : > { %v2131_v49 = vpop.f32.mrf.mxu0 }
0x1981   : > { %v2206_v51 = vpop.f32.mrf.mxu2 }
0x1982   : > { %v2210_v52 = vadd.f32 %v2206_v51, %v2133_v46  ;;  %v3864_v51 = vld [vmem:[%s5060_s9 + $0x1a] ss:$0 sm:$0xff] }
0x1984   : > { %v2212_v47 = vadd.f32 %v3859_v50, %v2210_v52 }
0x1986   : > { %v2213_v53 = vadd.f32 %v2212_v47, %v4623_v63  ;;  %v3769_v63 = vld [vmem:[%s5058_s7 + $0x20] sm:$0xff]  ;;  %v3865_v47 = vld [vmem:[%s5060_s9 + $0x1b] ss:$0 sm:$0xff] }
0x1987   : > { %2272 = vmatpush.bf16.msra.mxu0 %v3769_v63 }
0x1988   : > { %v2216_v54 = vsel %vm479_vm0, %v2213_v53, 0.0 }
0x1989   : > { %2217 = vadd.xlane.f32.xlu0 %v2216_v54  ;;  %v2208_v55 = vpop.f32.mrf.mxu2 }
0x19fc   : > { %v2218_v48 = vpop.xlane.xlu0 %2217 }
0x19fd   : > { %v2219_v57 = vmul.f32 %v2218_v48, %v4293_v60 }
0x19ff   : > { %v2220_v59 = vsub.f32 %v2213_v53, %v2219_v57  ;;  %v3866_v57 = vld [vmem:[%s5060_s9 + $0x1c] ss:$0 sm:$0xff] }
0x1a01   : > { %v2221_v61 = vmul.f32 %v2220_v59, %v2220_v59 }
0x1a03   : > { %v2222_v62 = vsel %vm479_vm0, %v2221_v61, 0.0 }
0x1a04   : > { %2223 = vadd.xlane.f32.xlu2 %v2222_v62 }
0x1a77   : > { %v2224_v3 = vpop.xlane.xlu2 %2223 }
0x1a78   : > { %v2225_v21 = vmul.f32 %v2224_v3, %v4293_v60 }
0x1a7a   : > { %v2226_v6 = vadd.f32 1e-05, %v2225_v21  ;;  %v4788_v21 = vld [vmem:[%s4466_s2] sm:$0xff] }
0x1a7c   : > { %3955 = vrsqrt.f32 %v2226_v6  ;;  %vm2233_vm9 = vweird.f32 %v2226_v6 }
0x1a82   : > { %v3956_v8 = vpop.eup %3955 }
0x1a83   : > { %v2228_v9 = vmul.f32 %v3956_v8, %v2226_v6  ;;  %vm2234_vm8 = vweird.f32 %v3956_v8 }
0x1a84   : > { %vm2235_vm10 = vmor %vm2233_vm9, %vm2234_vm8 }
0x1a85   : > { %v2229_v10 = vmul.f32 %v3956_v8, %v2228_v9 }
0x1a87   : > { %v2230_v11 = vmul.f32 0.5, %v2229_v10 }
0x1a89   : > { %v2231_v12 = vsub.f32 1.5, %v2230_v11 }
0x1a8b   : > { %v2232_v14 = vmul.f32 %v3956_v8, %v2231_v12 }
0x1a8d   : > { %v2236_v16 = vsel %vm2235_vm10, %v3956_v8, %v2232_v14 }
0x1a8e   : > { %v2237_v19 = vmul.f32 %v2236_v16, %v2220_v59 }
0x1a90   : > { %v2239_v20 = vmul.f32 %v3860_v15, %v2237_v19 }
0x1a92   : > { %v2241_v22 = vadd.f32 %v3861_v17, %v2239_v20  ;;  %v3643_v17 = vld [vmem:[%s5057_s6 + $0x30] sm:$0xf] }
0x1a93   : > { %v2539_v19 = vsel %vm537_vm2, %v3643_v17, 0  ;;  %v3778_v17 = vld [vmem:[%s5056_s5 + $0x58] sm:$0xff] }
0x1a94   : > { %v2247_v23 = vpack.c.bf16 %v2241_v22, %v2241_v22 }
0x1a96   : > { %3613 = vmatmul.msk.bf16.vlgmr.msra.gmra.mxu0 %vm479_vm0, %v2247_v23 }
0x1b13   : > { %v2274_v0 = vpop.f32.mrf.mxu0 }
0x1b14   : > { %v2275_v26 = vadd.f32 %v3862_v25, %v2274_v0 }
0x1b16   : > { %v2278_v32 = vmax.f32 %v2275_v26, 0.0 }
0x1b18   : > { %v2288_v27 = vpack.c.bf16 %v2278_v32, %v2278_v32 }
0x1b1a   : > { %3638 = vmatmul.msk.bf16.vlgmr.msra.gmra.mxu1 %vm913_vm7, %v2288_v27 }
0x1b1b   : > { %v2276_v28 = vpop.f32.mrf.mxu0 }
0x1b97   : > { %v2327_v30 = vpop.f32.mrf.mxu1 }
0x1b98   : > { %v2328_v4 = vadd.f32 %v3863_v29, %v2327_v30 }
0x1b9a   : > { %v2331_v58 = vadd.f32 %v2328_v4, %v2241_v22 }
0x1b9c   : > { %v2334_v31 = vsel %vm479_vm0, %v2331_v58, 0.0 }
0x1b9d   : > { %2335 = vadd.xlane.f32.xlu1 %v2334_v31 }
0x1b9f   : > { %v2329_v33 = vpop.f32.mrf.mxu1 }
0x1c10   : > { %v2336_v34 = vpop.xlane.xlu1 %2335 }
0x1c11   : > { %v2337_v7 = vmul.f32 %v2336_v34, %v4293_v60 }
0x1c13   : > { %v2338_v35 = vsub.f32 %v2331_v58, %v2337_v7 }
0x1c15   : > { %v2339_v36 = vmul.f32 %v2338_v35, %v2338_v35 }
0x1c17   : > { %v2340_v37 = vsel %vm479_vm0, %v2339_v36, 0.0 }
0x1c18   : > { %2341 = vadd.xlane.f32.xlu0 %v2340_v37 }
0x1c8b   : > { %v2342_v40 = vpop.xlane.xlu0 %2341 }
0x1c8c   : > { %v2343_v41 = vmul.f32 %v2342_v40, %v4293_v60 }
0x1c8e   : > { %v2344_v42 = vadd.f32 1e-05, %v2343_v41 }
0x1c90   : > { %3957 = vrsqrt.f32 %v2344_v42  ;;  %vm2351_vm12 = vweird.f32 %v2344_v42 }
0x1c96   : > { %v3958_v43 = vpop.eup %3957 }
0x1c97   : > { %v2346_v44 = vmul.f32 %v3958_v43, %v2344_v42  ;;  %vm2352_vm11 = vweird.f32 %v3958_v43 }
0x1c98   : > { %vm2353_vm13 = vmor %vm2351_vm12, %vm2352_vm11 }
0x1c99   : > { %v2347_v45 = vmul.f32 %v3958_v43, %v2346_v44 }
0x1c9b   : > { %v2348_v46 = vmul.f32 0.5, %v2347_v45 }
0x1c9d   : > { %v2349_v49 = vsub.f32 1.5, %v2348_v46 }
0x1c9f   : > { %v2350_v50 = vmul.f32 %v3958_v43, %v2349_v49 }
0x1ca1   : > { %v2354_v52 = vsel %vm2353_vm13, %v3958_v43, %v2350_v50 }
0x1ca2   : > { %v2355_v53 = vmul.f32 %v2354_v52, %v2338_v35 }
0x1ca4   : > { %v2357_v54 = vmul.f32 %v3864_v51, %v2355_v53 }
0x1ca6   : > { %v4764_v55 = vadd.f32 %v3865_v47, %v2357_v54 }
0x1ca8   : > { %v2372_v48 = vpack.c.bf16 %v4764_v55, %v4764_v55 }
0x1caa   : > { %3655 = vmatmul.msk.bf16.vlgmr.msra.gmra.mxu3 %vm479_vm0, %v2372_v48 }
0x1d2d   : > { %v2398_v59 = vpop.f32.mrf.mxu3 }
0x1d2e   : > { %v2399_v61 = vadd.f32 %v3866_v57, %v2398_v59 }
0x1d30   : > { %v4772_v62 = vpack.c.bf16 %v2399_v61, %v2399_v61 }
0x1d32   : > { %2404 = vrot.lane.b32.xlu0 %v4772_v62, %s5108_s29 }
0x1d35   : > { %v2400_v2 = vpop.f32.mrf.mxu3 }
0x1d3a   : > { %2459 = vrot.lane.b32.xlu0 %v4772_v62, %s5113_s12 }
0x1d42   : > { %2556 = vrot.lane.b32.xlu0 %v4772_v62, %s5114_s14 }
0x1d4a   : > { %2554 = vrot.lane.b32.xlu0 %v4772_v62, %s5110_s22 }
0x1d52   : > { %2631 = vrot.lane.b32.xlu0 %v4772_v62, %s5109_s24 }
0x1da4   : > { %v2405_v63 = vpop.permute.xlu0 %2404 }
0x1da5   : > { %v2410_v1 = vsel %vm500_vm1, %v2405_v63, 0 }
0x1da6   : > { %2419 = vmatpush.bf16.xpose.msrb.mxu2 %v2410_v1 }
0x1dac   : > { %v2460_v0 = vpop.permute.xlu0 %2459 }
0x1dad   : > { %3656 = vmatmul.msk.bf16.vlgmr.msrb.gmra.mxu2 %vm500_vm1, %v4772_v62 }
0x1db4   : > { %v2557_v26 = vpop.permute.xlu0 %2556 }
0x1db5   : > { %v2562_v28 = vsel %vm500_vm1, %v2557_v26, 0 }
0x1dbc   : > { %v2555_v29 = vpop.permute.xlu0 %2554 }
0x1dc4   : > { %v2632_v31 = vpop.permute.xlu0 %2631 }
0x1e30   : > { %v2421_v3 = vpop.f32.mrf.mxu2 }
0x1e31   : > { %v2422_v5 = vadd.f32 %v4788_v21, %v2421_v3 }
0x1e33   : > { %v2425_v6 = vsel %vm500_vm1, %v2422_v5, -inf }
0x1e34   : > { %2426 = vmax.xlane.f32.xlu2 %v2425_v6 }
0x1e38   : > { %v2423_v8 = vpop.f32.mrf.mxu2 }
0x1e4c   : > { %2437 = vrot.lane.b32.xlu2 %v4772_v62, %s5111_s25 }
0x1e54   : > { %2633 = vrot.lane.b32.xlu2 %v4772_v62, %s5120_s17 }
0x1ea7   : > { %v2427_v9 = vpop.xlane.xlu2 %2426 }
0x1ea8   : > { %v2428_v10 = vsub.f32 %v2422_v5, %v2427_v9 }
0x1eaa   : > { %v2429_v11 = vmul.f32 1.442695, %v2428_v10 }
0x1eac   : > { %3959 = vpow2.f32 %v2429_v11 }
0x1eaf   : > { %v2438_v12 = vpop.permute.xlu2 %2437 }
0x1eb0   : > { %v2443_v14 = vsel %vm537_vm2, %v2438_v12, 0 }
0x1eb1   : > { %2452 = vmatpush.bf16.msrb.mxu0 %v2443_v14 }
0x1eb2   : > { %v3960_v15 = vpop.eup %3959 }
0x1eb3   : > { %v2431_v16 = vsel %vm500_vm1, %v3960_v15, 0.0 }
0x1eb4   : > { %2432 = vadd.xlane.f32.xlu1 %v2431_v16 }
0x1eb5   : > { %2548 = vmatpush.bf16.msra.mxu0 %v2539_v19  ;;  %v3777_v19 = vld [vmem:[%s5056_s5 + $0x50] sm:$0xff] }
0x1eb7   : > { %v2634_v24 = vpop.permute.xlu2 %2633 }
0x1eb8   : > { %v2639_v25 = vsel %vm500_vm1, %v2634_v24, 0 }
0x1ecd   : > { %2461 = vrot.lane.b32.xlu1 %v4772_v62, %s5112_s30 }
0x1f27   : > { %v2433_v20 = vpop.xlane.xlu1 %2432 }
0x1f28   : > { %3961 = vrcp.f32 %v2433_v20  ;;  %v3644_v20 = vld [vmem:[%s5057_s6 + $0x34] sm:$0xf] }
0x1f2e   : > { %v3962_v22 = vpop.eup %3961 }
0x1f2f   : > { %v2435_v23 = vmul.f32 %v3962_v22, %v3960_v15  ;;  %v3645_v22 = vld [vmem:[%s5057_s6 + $0x38] sm:$0xf] }
0x1f31   : > { %v2436_v13 = vpack.c.bf16 %v2435_v23, %v2435_v23  ;;  %v2615_v23 = vsel %vm537_vm2, %v3645_v22, 0 }
0x1f33   : > { %3657 = vmatmul.msk.bf16.vlgmr.msrb.gmra.mxu0 %vm500_vm1, %v2436_v13  ;;  %v4852_v13 = vld [vmem:[%s5060_s9 + $0x1e] ss:$0 sm:$0xff] }
0x1f34   : > { %2648 = vmatpush.bf16.xpose.msrb.mxu0 %v2639_v25 }
0x1f3f   : > { %v2462_v32 = vpop.permute.xlu1 %2461 }
0x1f40   : > { %v2467_v27 = vsel %vm500_vm1, %v2462_v32, 0 }
0x1f41   : > { %2476 = vmatpush.bf16.xpose.msrb.mxu1 %v2467_v27 }
0x1f48   : > { %3658 = vmatmul.msk.bf16.vlgmr.msrb.gmra.mxu1 %vm500_vm1, %v2460_v0 }
0x1f49   : > { %2571 = vmatpush.bf16.xpose.msra.mxu1 %v2562_v28 }
0x1f58   : > { %3662 = vmatmul.msk.bf16.vlgmr.msra.gmra.mxu1 %vm500_vm1, %v2555_v29 }
0x1fb0   : > { %v2454_v30 = vpop.f32.mrf.mxu0 }
0x1fb1   : > { %v2458_v4 = vpack.c.bf16 %v2454_v30, %v2454_v30 }
0x1fb3   : > { %3661 = vmatmul.msk.bf16.vlgmr.msra.gmra.mxu0 %vm500_vm1, %v2458_v4 }
0x1fb8   : > { %v2456_v58 = vpop.f32.mrf.mxu0 }
0x1fc3   : > { %3665 = vmatmul.msk.bf16.vlgmr.msrb.gmra.mxu0 %vm500_vm1, %v2632_v31 }
0x1fc5   : > { %v2478_v33 = vpop.f32.mrf.mxu1 }
0x1fc6   : > { %v2479_v34 = vadd.f32 %v4788_v21, %v2478_v33 }
0x1fc8   : > { %v2482_v7 = vsel %vm500_vm1, %v2479_v34, -inf }
0x1fc9   : > { %2483 = vmax.xlane.f32.xlu1 %v2482_v7  ;;  %v3646_v7 = vld [vmem:[%s5057_s6 + $0x3c] sm:$0xf] }
0x1fcd   : > { %v2480_v35 = vpop.f32.mrf.mxu1 }
0x1fce   : > { %v2692_v35 = vsel %vm537_vm2, %v3646_v7, 0 }
0x1fd5   : > { %v2573_v36 = vpop.f32.mrf.mxu1 }
0x1fd6   : > { %v2574_v37 = vadd.f32 %v4788_v21, %v2573_v36 }
0x1fd8   : > { %v2577_v38 = vsel %vm500_vm1, %v2574_v37, -inf }
0x1fd9   : > { %2578 = vmax.xlane.f32.xlu2 %v2577_v38 }
0x1fdd   : > { %v2575_v39 = vpop.f32.mrf.mxu1 }
0x1ff1   : > { %2494 = vrot.lane.b32.xlu2 %v4772_v62, %s5115_s16 }
0x2030   : > { %v4818_v40 = vpop.f32.mrf.mxu0 }
0x2038   : > { %v2552_v41 = vpop.f32.mrf.mxu0 }
0x203c   : > { %v2484_v42 = vpop.xlane.xlu1 %2483 }
0x203d   : > { %v2485_v43 = vsub.f32 %v2479_v34, %v2484_v42 }
0x203f   : > { %v2486_v44 = vmul.f32 1.442695, %v2485_v43 }
0x2040   : > { %v2650_v45 = vpop.f32.mrf.mxu0 }
0x2041   : > { %3963 = vpow2.f32 %v2486_v44  ;;  %v2651_v46 = vadd.f32 %v4788_v21, %v2650_v45 }
0x2043   : > { %v2654_v49 = vsel %vm500_vm1, %v2651_v46, -inf }
0x2044   : > { %2655 = vmax.xlane.f32.xlu0 %v2654_v49 }
0x2047   : > { %v3964_v50 = vpop.eup %3963 }
0x2048   : > { %v2652_v51 = vpop.f32.mrf.mxu0  ;;  %v2488_v52 = vsel %vm500_vm1, %v3964_v50, 0.0 }
0x2049   : > { %2489 = vadd.xlane.f32.xlu1 %v2488_v52 }
0x204c   : > { %v2579_v47 = vpop.xlane.xlu2 %2578 }
0x204d   : > { %v2580_v53 = vsub.f32 %v2574_v37, %v2579_v47  ;;  %v3868_v47 = vld [vmem:[%s5060_s9 + $0x1d] ss:$0 sm:$0xff] }
0x204f   : > { %v2581_v54 = vmul.f32 1.442695, %v2580_v53 }
0x2051   : > { %3965 = vpow2.f32 %v2581_v54 }
0x2054   : > { %v2495_v48 = vpop.permute.xlu2 %2494 }
0x2055   : > { %v2500_v57 = vsel %vm537_vm2, %v2495_v48, 0 }
0x2056   : > { %2509 = vmatpush.bf16.msrb.mxu3 %v2500_v57 }
0x2057   : > { %v3966_v59 = vpop.eup %3965 }
0x2058   : > { %v2583_v61 = vsel %vm500_vm1, %v3966_v59, 0.0 }
0x2059   : > { %2584 = vadd.xlane.f32.xlu0 %v2583_v61 }
0x2062   : > { %2589 = vrot.lane.b32.xlu1 %v4772_v62, %s5116_s13  ;;  %s427_s13 = sand.u32 1, %s4053_s18  }
0x2063   : > { %s3296_s0 = scalar_lea.sflag [#allocation3], %s427_s13 }
0x20b7   : > { %v2656_v2 = vpop.xlane.xlu0 %2655 }
0x20b8   : > { %v2657_v63 = vsub.f32 %v2651_v46, %v2656_v2 }
0x20ba   : > { %v2658_v1 = vmul.f32 1.442695, %v2657_v63 }
0x20bc   : > { %3967 = vpow2.f32 %v2658_v1  ;;  %v2490_v3 = vpop.xlane.xlu1 %2489 }
0x20bd   : > { %3969 = vrcp.f32 %v2490_v3 }
0x20c2   : > { %v3968_v21 = vpop.eup %3967 }
0x20c3   : > { %v3970_v5 = vpop.eup %3969  ;;  %v2660_v6 = vsel %vm500_vm1, %v3968_v21, 0.0 }
0x20c4   : > { %v2492_v8 = vmul.f32 %v3970_v5, %v3964_v50  ;;  %2661 = vadd.xlane.f32.xlu0 %v2660_v6 }
0x20c6   : > { %v2493_v9 = vpack.c.bf16 %v2492_v8, %v2492_v8 }
0x20c8   : > { %3659 = vmatmul.msk.bf16.vlgmr.msrb.gmra.mxu3 %vm500_vm1, %v2493_v9 }
0x20cc   : > { %v2585_v10 = vpop.xlane.xlu0 %2584 }
0x20cd   : > { %3971 = vrcp.f32 %v2585_v10 }
0x20d3   : > { %v3972_v11 = vpop.eup %3971 }
0x20d4   : > { %v2587_v12 = vmul.f32 %v3972_v11, %v3966_v59  ;;  %v2590_v14 = vpop.permute.xlu1 %2589 }
0x20d5   : > { %v2595_v15 = vsel %vm537_vm2, %v2590_v14, 0  ;;  %v3869_v14 = vld [vmem:[%s5060_s9 + $0x22] ss:$0 sm:$0xff] }
0x20d6   : > { %v2588_v16 = vpack.c.bf16 %v2587_v12, %v2587_v12  ;;  %2604 = vmatpush.bf16.msra.mxu3 %v2595_v15 }
0x20d8   : > { %2666 = vrot.lane.b32.xlu0 %v4772_v62, %s5117_s26  ;;  %v2520_v62 = vsel %vm537_vm2, %v3644_v20, 0 }
0x20d9   : > { %3663 = vmatmul.msk.bf16.vlgmr.msra.gmra.mxu3 %vm500_vm1, %v2588_v16  ;;  %2529 = vmatpush.bf16.msra.mxu2 %v2520_v62  ;;  %v3870_v16 = vld [vmem:[%s5060_s9 + $0x23] ss:$0 sm:$0xff] }
0x20da   : > { %2701 = vmatpush.bf16.msrb.mxu3 %v2692_v35 }
0x20dd   : > { %2624 = vmatpush.bf16.msrb.mxu2 %v2615_v23 }
0x20e0   : > { %2783 = vrot.lane.b32.xlu0 %v3778_v17, %s5108_s29 }
0x20e8   : > { %2781 = vrot.lane.b32.xlu0 %v3777_v19, %s5108_s29 }
0x20f0   : > { %2788 = vrot.lane.b32.xlu0 %v4852_v13, %s5108_s29 }
0x2137   : > { %v2662_v24 = vpop.xlane.xlu0 %2661 }
0x2138   : > { %3973 = vrcp.f32 %v2662_v24 }
0x213e   : > { %v3974_v25 = vpop.eup %3973 }
0x213f   : > { %v2664_v0 = vmul.f32 %v3974_v25, %v3968_v21 }
0x2141   : > { %v2665_v29 = vpack.c.bf16 %v2664_v0, %v2664_v0 }
0x214a   : > { %v2667_v26 = vpop.permute.xlu0 %2666 }
0x214b   : > { %v2672_v32 = vsel %vm537_vm2, %v2667_v26, 0  ;;  %v2511_v27 = vpop.f32.mrf.mxu3 }
0x214c   : > { %v2515_v28 = vpack.c.bf16 %v2511_v27, %v2511_v27  ;;  %2681 = vmatpush.bf16.msrb.mxu1 %v2672_v32 }
0x214e   : > { %3660 = vmatmul.msk.bf16.vlgmr.msra.gmra.mxu2 %vm500_vm1, %v2515_v28 }
0x214f   : > { %3666 = vmatmul.msk.bf16.vlgmr.msrb.gmra.mxu1 %vm500_vm1, %v2665_v29  ;;  %2774 = vmatpush.bf16.msra.mxu2 %v3778_v17 }
0x2152   : > { %v2784_v30 = vpop.permute.xlu0 %2783 }
0x2153   : > { %v2513_v4 = vpop.f32.mrf.mxu3  ;;  %2797 = vmatpush.bf16.msra.mxu0 %v2784_v30  ;;  %2775 = vmatpush.bf16.msra.mxu2 %v3777_v19 }
0x215a   : > { %v2782_v58 = vpop.permute.xlu0 %2781 }
0x215b   : > { %2798 = vmatpush.bf16.msra.mxu0 %v2782_v58 }
0x215c   : > { %v2606_v31 = vpop.f32.mrf.mxu3 }
0x215d   : > { %v2610_v33 = vpack.c.bf16 %v2606_v31, %v2606_v31 }
0x215e   : > { %3685 = vmatmul.msk.bf16.vlgmr.msra.gmra.mxu0 %vm479_vm0, %v4616_v56 }
0x215f   : > { %3664 = vmatmul.msk.bf16.vlgmr.msrb.gmra.mxu2 %vm500_vm1, %v2610_v33 }
0x2162   : > { %v2789_v42 = vpop.permute.xlu0 %2788 }
0x2164   : > { %v2608_v34 = vpop.f32.mrf.mxu3 }
0x21cc   : > { %v2683_v36 = vpop.f32.mrf.mxu1 }
0x21cd   : > { %v2687_v37 = vpack.c.bf16 %v2683_v36, %v2683_v36 }
0x21cf   : > { %3667 = vmatmul.msk.bf16.vlgmr.msrb.gmra.mxu3 %vm500_vm1, %v2687_v37  ;;  %v3672_v37 = vld [vmem:[%s5057_s6 + $0x50] sm:$0xf] }
0x21d1   : > { %v2531_v38 = vpop.f32.mrf.mxu2 }
0x21d2   : > { %v2551_v46 = vadd.f32 %v4818_v40, %v2531_v38  ;;  %v2941_v38 = vsel %vm537_vm2, %v3672_v37, 0 }
0x21d4   : > { %v2685_v39 = vpop.f32.mrf.mxu1 }
0x21d9   : > { %v2533_v41 = vpop.f32.mrf.mxu2 }
0x21db   : > { %v2800_v43 = vpop.f32.mrf.mxu0 }
0x21dc   : > { %v2801_v56 = vadd.f32 %v2800_v43, %v2789_v42 }
0x21de   : > { %v4867_v44 = vpack.c.bf16 %v2801_v56, %v2801_v56 }
0x21e0   : > { %v2810_v45 = vsel %vm500_vm1, %v4867_v44, 0 }
0x21e1   : > { %2819 = vmatpush.bf16.xpose.msra.mxu1 %v2810_v45 }
0x21e2   : > { %v2626_v49 = vpop.f32.mrf.mxu2 }
0x21e3   : > { %v2630_v50 = vadd.f32 %v2626_v49, %v2551_v46  ;;  %v2802_v51 = vpop.f32.mrf.mxu0 }
0x21ea   : > { %v2628_v52 = vpop.f32.mrf.mxu2 }
0x2252   : > { %v2703_v53 = vpop.f32.mrf.mxu3 }
0x2253   : > { %v2707_v54 = vadd.f32 %v2703_v53, %v2630_v50 }
0x2255   : > { %v2709_v48 = vadd.f32 %v3868_v47, %v2707_v54 }
0x2257   : > { %v2710_v57 = vadd.f32 %v2709_v48, %v4764_v55 }
0x2259   : > { %v2713_v59 = vsel %vm479_vm0, %v2710_v57, 0.0 }
0x225a   : > { %2714 = vadd.xlane.f32.xlu2 %v2713_v59  ;;  %v2705_v61 = vpop.f32.mrf.mxu3 }
0x22cd   : > { %v2715_v2 = vpop.xlane.xlu2 %2714 }
0x22ce   : > { %v2716_v40 = vmul.f32 %v2715_v2, %v4293_v60 }
0x22d0   : > { %v2717_v63 = vsub.f32 %v2710_v57, %v2716_v40 }
0x22d2   : > { %v2718_v1 = vmul.f32 %v2717_v63, %v2717_v63 }
0x22d4   : > { %v2719_v3 = vsel %vm479_vm0, %v2718_v1, 0.0 }
0x22d5   : > { %2720 = vadd.xlane.f32.xlu1 %v2719_v3 }
0x22ee   : > { %2838 = vrot.lane.b32.xlu1 %v4867_v44, %s5108_s29  ;;  %s3422_s29 = sshll.u32 %s427_s13, 3 }
0x22f6   : > { %3035 = vrot.lane.b32.xlu1 %v4867_v44, %s5109_s24 }
0x2348   : > { %v2721_v21 = vpop.xlane.xlu1 %2720 }
0x2349   : > { %v2722_v55 = vmul.f32 %v2721_v21, %v4293_v60 }
0x234b   : > { %v2723_v5 = vadd.f32 1e-05, %v2722_v55 }
0x234d   : > { %3975 = vrsqrt.f32 %v2723_v5  ;;  %vm2730_vm15 = vweird.f32 %v2723_v5 }
0x2353   : > { %v3976_v6 = vpop.eup %3975 }
0x2354   : > { %v2725_v8 = vmul.f32 %v3976_v6, %v2723_v5  ;;  %vm2731_vm14 = vweird.f32 %v3976_v6 }
0x2355   : > { %vm2732_vm3 = vmor %vm2730_vm15, %vm2731_vm14 }
0x2356   : > { %v2726_v9 = vmul.f32 %v3976_v6, %v2725_v8 }
0x2358   : > { %v2727_v10 = vmul.f32 0.5, %v2726_v9 }
0x235a   : > { %v2728_v11 = vsub.f32 1.5, %v2727_v10 }
0x235c   : > { %v2729_v12 = vmul.f32 %v3976_v6, %v2728_v11 }
0x235e   : > { %v2733_v15 = vsel %vm2732_vm3, %v3976_v6, %v2729_v12  ;;  %v3998_v12 = vld [vmem:[%s4646_s28] sm:$0xff] }
0x235f   : > { %v2734_v17 = vmul.f32 %v2733_v15, %v2717_v63 }
0x2360   : > { %v2839_v19 = vpop.permute.xlu1 %2838 }
0x2361   : > { %v2736_v20 = vmul.f32 %v3869_v14, %v2734_v17  ;;  %v2844_v62 = vsel %vm537_vm2, %v2839_v19, 0 }
0x2362   : > { %2853 = vmatpush.bf16.msra.mxu3 %v2844_v62 }
0x2363   : > { %v4891_v22 = vadd.f32 %v3870_v16, %v2736_v20 }
0x2365   : > { %v2751_v23 = vpack.c.bf16 %v4891_v22, %v4891_v22 }
0x2366   : > { %2950 = vmatpush.bf16.msrb.mxu3 %v2941_v38 }
0x2367   : > { %3684 = vmatmul.msk.bf16.vlgmr.msra.gmra.mxu2 %vm479_vm0, %v2751_v23 }
0x2368   : > { %v3036_v43 = vpop.permute.xlu1 %3035 }
0x2369   : > { %v3041_v45 = vsel %vm500_vm1, %v3036_v43, 0 }
0x23ea   : > { %v2777_v24 = vpop.f32.mrf.mxu2 }
0x23eb   : > { %v2778_v25 = vadd.f32 %v4852_v13, %v2777_v24 }
0x23ed   : > { %v2804_v0 = vpack.c.bf16 %v2778_v25, %v2778_v25 }
0x23ef   : > { %3033 = vrot.lane.b32.xlu1 %v2804_v0, %s5109_s24  ;;  %3686 = vmatmul.msk.bf16.vlgmr.msra.gmra.mxu1 %vm500_vm1, %v2804_v0 }
0x23f2   : > { %v2779_v26 = vpop.f32.mrf.mxu2 }
0x2461   : > { %v3034_v21 = vpop.permute.xlu1 %3033 }
0x246c   : > { %v2821_v32 = vpop.f32.mrf.mxu1 }
0x246d   : > { %v2822_v27 = vadd.f32 %v2821_v32, %v4650_v18 }
0x246f   : > { %v2825_v28 = vsel %vm500_vm1, %v2822_v27, -inf }
0x2470   : > { %2826 = vmax.xlane.f32.xlu2 %v2825_v28 }
0x2474   : > { %v2823_v29 = vpop.f32.mrf.mxu1 }
0x2488   : > { %2863 = vrot.lane.b32.xlu2 %v4867_v44, %s5113_s12 }
0x2490   : > { %2861 = vrot.lane.b32.xlu2 %v2804_v0, %s5113_s12 }
0x2498   : > { %2958 = vrot.lane.b32.xlu2 %v4867_v44, %s5110_s22 }
0x24e3   : > { %v2827_v13 = vpop.xlane.xlu2 %2826 }
0x24e4   : > { %v2828_v30 = vsub.f32 %v2822_v27, %v2827_v13 }
0x24e6   : > { %v2829_v4 = vmul.f32 1.442695, %v2828_v30 }
0x24e8   : > { %3977 = vpow2.f32 %v2829_v4 }
0x24eb   : > { %v2864_v58 = vpop.permute.xlu2 %2863 }
0x24ec   : > { %v2869_v31 = vsel %vm500_vm1, %v2864_v58, 0 }
0x24ed   : > { %2878 = vmatpush.bf16.xpose.msrb.mxu2 %v2869_v31  ;;  %v3673_v31 = vld [vmem:[%s5057_s6 + $0x54] sm:$0xf] }
0x24ee   : > { %v3978_v33 = vpop.eup %3977 }
0x24ef   : > { %v2831_v34 = vsel %vm500_vm1, %v3978_v33, 0.0 }
0x24f0   : > { %2832 = vadd.xlane.f32.xlu0 %v2831_v34 }
0x24f3   : > { %v2862_v7 = vpop.permute.xlu2 %2861 }
0x24f4   : > { %3688 = vmatmul.msk.bf16.vlgmr.msrb.gmra.mxu2 %vm500_vm1, %v2862_v7 }
0x24fb   : > { %v2959_v35 = vpop.permute.xlu2 %2958 }
0x24fc   : > { %v2964_v36 = vsel %vm500_vm1, %v2959_v35, 0 }
0x24fd   : > { %2973 = vmatpush.bf16.xpose.msra.mxu2 %v2964_v36 }
0x2504   : > { %2956 = vrot.lane.b32.xlu0 %v2804_v0, %s5110_s22  ;;  %s3306_s22 = scalar_lea.hbm %s5062_s11, %s3746_s15 }
0x2505   : > { %s3310_s23 = sshll.u32 %s3306_s22, 4  ;;  %s3311_s23 = int_to_ptr.hbm [resolvable:$true] %s3310_s23 }
0x2506   : > { %s4013_s21 = sshra.s32 %s3311_s23, 4  ;;  %s4014_s21 = int_to_ptr.hbm [resolvable:$true] %s4013_s21 }
0x2507   : > { %s4015_s26 = scalar_lea.hbm %s4014_s21, 8  ;;  %p4020_p0 = scmp.lt.s32.totalorder %s4014_s21, %s5062_s11 }
0x2508   : > { %p4016_p11 = scmp.ne.s32.totalorder %s4014_s21, %s4015_s26  ;;  %p4021_p1 = scmp.lt.s32.totalorder %s4019_s27, %s4015_s26 }
0x250a   : > { %p4017_p12 = pnand %p4016_p11, %p4173_p5  ;;  %p4022_p2 = por %p4021_p1, %p4020_p0 }
0x250c   : > { %p4018_p13 = pneg %p4017_p12 }
0x250e   : > { %p4023_p3 = pnand %p4022_p2, %p4018_p13 }
0x2563   : > { %v2833_v39 = vpop.xlane.xlu0 %2832 }
0x2564   : > { %3979 = vrcp.f32 %v2833_v39 }
0x256a   : > { %v3980_v41 = vpop.eup %3979 }
0x256b   : > { %v2835_v42 = vmul.f32 %v3980_v41, %v3978_v33  ;;  %v2922_v33 = vsel %vm537_vm2, %v3673_v31, 0 }
0x256c   : > { %2931 = vmatpush.bf16.msrb.mxu1 %v2922_v33 }
0x256d   : > { %v2836_v56 = vpack.c.bf16 %v2835_v42, %v2835_v42 }
0x256f   : > { %3687 = vmatmul.msk.bf16.vlgmr.msra.gmra.mxu3 %vm500_vm1, %v2836_v56 }
0x2570   : > { %3050 = vmatpush.bf16.xpose.msra.mxu3 %v3041_v45 }
0x2576   : > { %v2957_v46 = vpop.permute.xlu0 %2956 }
0x2577   : > { %v2880_v49 = vpop.f32.mrf.mxu2  ;;  %3692 = vmatmul.msk.bf16.vlgmr.msra.gmra.mxu2 %vm500_vm1, %v2957_v46 }
0x2578   : > { %v2881_v50 = vadd.f32 %v2880_v49, %v4650_v18  ;;  %v3675_v49 = vld [vmem:[%s5057_s6 + $0x5c] sm:$0xf] }
0x257a   : > { %v2884_v51 = vsel %vm500_vm1, %v2881_v50, -inf }
0x257b   : > { %2885 = vmax.xlane.f32.xlu2 %v2884_v51 }
0x257f   : > { %v2882_v52 = vpop.f32.mrf.mxu2 }
0x25ee   : > { %v2886_v47 = vpop.xlane.xlu2 %2885 }
0x25ef   : > { %v2887_v53 = vsub.f32 %v2881_v50, %v2886_v47  ;;  %v3094_v50 = vsel %vm537_vm2, %v3675_v49, 0  ;;  %v3785_v49 = vld [vmem:[%s5061_s10] sm:$0xff] }
0x25f1   : > { %v2888_v54 = vmul.f32 1.442695, %v2887_v53 }
0x25f2   : > { %v2855_v48 = vpop.f32.mrf.mxu3 }
0x25f3   : > { %3981 = vpow2.f32 %v2888_v54  ;;  %v2859_v57 = vpack.c.bf16 %v2855_v48, %v2855_v48 }
0x25f5   : > { %3691 = vmatmul.msk.bf16.vlgmr.msrb.gmra.mxu3 %vm500_vm1, %v2859_v57 }
0x25f9   : > { %v3982_v59 = vpop.eup %3981 }
0x25fa   : > { %v2857_v61 = vpop.f32.mrf.mxu3  ;;  %v2975_v2 = vpop.f32.mrf.mxu2  ;;  %v2890_v40 = vsel %vm500_vm1, %v3982_v59, 0.0 }
0x25fb   : > { %v2976_v63 = vadd.f32 %v2975_v2, %v4650_v18  ;;  %2891 = vadd.xlane.f32.xlu2 %v2890_v40  ;;  %v3871_v2 = vld [vmem:[%s5060_s9 + $0x1f] ss:$0 sm:$0xff] }
0x25fd   : > { %v2979_v1 = vsel %vm500_vm1, %v2976_v63, -inf }
0x25fe   : > { %2980 = vmax.xlane.f32.xlu0 %v2979_v1 }
0x2602   : > { %v2977_v3 = vpop.f32.mrf.mxu2 }
0x2605   : > { %3695 = vmatmul.msk.bf16.vlgmr.msra.gmra.mxu3 %vm500_vm1, %v3034_v21 }
0x266e   : > { %v2892_v23 = vpop.xlane.xlu2 %2891 }
0x2671   : > { %v2981_v55 = vpop.xlane.xlu0 %2980 }
0x2672   : > { %v2982_v5 = vsub.f32 %v2976_v63, %v2981_v55 }
0x2674   : > { %v2983_v6 = vmul.f32 1.442695, %v2982_v5 }
0x2676   : > { %3983 = vpow2.f32 %v2983_v6 }
0x2678   : > { %v4925_v8 = vpop.f32.mrf.mxu3 }
0x267c   : > { %v3984_v9 = vpop.eup %3983 }
0x267d   : > { %v2985_v10 = vsel %vm500_vm1, %v3984_v9, 0.0 }
0x267e   : > { %2986 = vadd.xlane.f32.xlu0 %v2985_v10 }
0x2680   : > { %v2954_v18 = vpop.f32.mrf.mxu3 }
0x2681   : > { %v3780_v18 = vld [vmem:[%s5058_s7 + $0x38] sm:$0xff] }
0x2688   : > { %v3052_v11 = vpop.f32.mrf.mxu3 }
0x2689   : > { %v3053_v14 = vadd.f32 %v3998_v12, %v3052_v11  ;;  %v3784_v11 = vld [vmem:[%s5059_s8 + $0x78] sm:$0xff] }
0x268a   : > { %3221 = vmatpush.bf16.msrb.mxu3 %v3784_v11 }
0x268b   : > { %v3056_v15 = vsel %vm500_vm1, %v3053_v14, -inf }
0x268c   : > { %3057 = vmax.xlane.f32.xlu1 %v3056_v15  ;;  %v3783_v15 = vld [vmem:[%s5059_s8 + $0x70] sm:$0xff] }
0x268e   : > { %3222 = vmatpush.bf16.msrb.mxu3 %v3783_v15 }
0x2690   : > { %v3054_v16 = vpop.f32.mrf.mxu3 }
0x2692   : > { %2991 = vrot.lane.b32.xlu0 %v4867_v44, %s5114_s14 }
0x26a5   : > { %2896 = vrot.lane.b32.xlu1 %v4867_v44, %s5112_s30 }
0x26f1   : > { %v2987_v25 = vpop.xlane.xlu0 %2986 }
0x26ff   : > { %v3058_v17 = vpop.xlane.xlu1 %3057 }
0x2700   : > { %v3059_v19 = vsub.f32 %v3053_v14, %v3058_v17 }
0x2702   : > { %v3060_v20 = vmul.f32 1.442695, %v3059_v19 }
0x2704   : > { %3985 = vpow2.f32 %v3060_v20  ;;  %v2992_v32 = vpop.permute.xlu0 %2991 }
0x2705   : > { %3987 = vrcp.f32 %v2892_v23  ;;  %v2997_v29 = vsel %vm537_vm2, %v2992_v32, 0 }
0x2706   : > { %3989 = vrcp.f32 %v2987_v25  ;;  %v3872_v25 = vld [vmem:[%s5060_s9 + $0x24] ss:$0 sm:$0xff] }
0x270a   : > { %v3986_v62 = vpop.eup %3985 }
0x270b   : > { %v3062_v24 = vsel %vm500_vm1, %v3986_v62, 0.0  ;;  %v3988_v0 = vpop.eup %3987 }
0x270c   : > { %3063 = vadd.xlane.f32.xlu2 %v3062_v24  ;;  %v2894_v26 = vmul.f32 %v3988_v0, %v3982_v59  ;;  %v3990_v30 = vpop.eup %3989 }
0x270d   : > { %v2989_v4 = vmul.f32 %v3990_v30, %v3984_v9  ;;  %v3781_v30 = vld [vmem:[%s5059_s8 + $0x60] sm:$0xff] }
0x270e   : > { %v2895_v13 = vpack.c.bf16 %v2894_v26, %v2894_v26  ;;  %v3873_v26 = vld [vmem:[%s5060_s9 + $0x25] ss:$0 sm:$0xff] }
0x270f   : > { %v2990_v58 = vpack.c.bf16 %v2989_v4, %v2989_v4  ;;  %v3874_v4 = vld [vmem:[%s5060_s9 + $0x20] ss:$0 sm:$0xff] }
0x2717   : > { %v2897_v27 = vpop.permute.xlu1 %2896 }
0x2718   : > { %v2902_v28 = vsel %vm537_vm2, %v2897_v27, 0 }
0x2719   : > { %2911 = vmatpush.bf16.msrb.mxu0 %v2902_v28 }
0x271c   : > { %3689 = vmatmul.msk.bf16.vlgmr.msrb.gmra.mxu0 %vm500_vm1, %v2895_v13  ;;  %v3782_v13 = vld [vmem:[%s5059_s8 + $0x68] sm:$0xff] }
0x271d   : > { %3006 = vmatpush.bf16.msra.mxu0 %v2997_v29  ;;  %3223 = vmatpush.bf16.msrb.mxu3 %v3782_v13 }
0x2721   : > { %3103 = vmatpush.bf16.msrb.mxu0 %v3094_v50  ;;  %3224 = vmatpush.bf16.msrb.mxu3 %v3781_v30 }
0x2724   : > { %3068 = vrot.lane.b32.xlu2 %v4867_v44, %s5120_s17  ;;  %v3674_v44 = vld [vmem:[%s5057_s6 + $0x58] sm:$0xf]  ;;  %s429_s17 = scalar_lea.vmem [#allocation2], %s3422_s29 }
0x2725   : > { %v3017_v39 = vsel %vm537_vm2, %v3674_v44, 0  ;;  %s3308_s28 = sshll.u32 %s429_s17, 4  ;;  %s3309_s28 = int_to_ptr.vmem [resolvable:$true] %s3308_s28 }
0x2726   : > { %3026 = vmatpush.bf16.msra.mxu1 %v3017_v39 }
0x272c   : > { %3693 = vmatmul.msk.bf16.vlgmr.msra.gmra.mxu0 %vm500_vm1, %v2990_v58 }
0x277f   : > { %v3064_v34 = vpop.xlane.xlu2 %3063 }
0x2780   : > { %3991 = vrcp.f32 %v3064_v34 }
0x2786   : > { %v3992_v7 = vpop.eup %3991 }
0x2787   : > { %v3066_v35 = vmul.f32 %v3992_v7, %v3986_v62  ;;  %v3069_v36 = vpop.permute.xlu2 %3068 }
0x2788   : > { %v3074_v37 = vsel %vm537_vm2, %v3069_v36, 0 }
0x2789   : > { %v3067_v38 = vpack.c.bf16 %v3066_v35, %v3066_v35  ;;  %3083 = vmatpush.bf16.msrb.mxu2 %v3074_v37  ;;  %v3875_v35 = vld [vmem:[%s5060_s9 + $0x21] ss:$0 sm:$0xff] }
0x278c   : > { %3696 = vmatmul.msk.bf16.vlgmr.msrb.gmra.mxu2 %vm500_vm1, %v3067_v38 }
0x2799   : > { %v2913_v41 = vpop.f32.mrf.mxu0 }
0x279a   : > { %v2917_v42 = vpack.c.bf16 %v2913_v41, %v2913_v41 }
0x279c   : > { %3690 = vmatmul.msk.bf16.vlgmr.msrb.gmra.mxu1 %vm500_vm1, %v2917_v42 }
0x279d   : > { %3170 = vmatpush.bf16.msrb.mxu1 %v3780_v18 }
0x27a1   : > { %v2915_v43 = vpop.f32.mrf.mxu0 }
0x27a9   : > { %v3008_v56 = vpop.f32.mrf.mxu0 }
0x27aa   : > { %v3012_v45 = vpack.c.bf16 %v3008_v56, %v3008_v56 }
0x27ac   : > { %3694 = vmatmul.msk.bf16.vlgmr.msra.gmra.mxu1 %vm500_vm1, %v3012_v45 }
0x27b1   : > { %v3010_v46 = vpop.f32.mrf.mxu0 }
0x27b2   : > { %v3786_v46 = vld [vmem:[%s5061_s10 + $0x8] sm:$0xff] }
0x27b3   : > { %3287 = vmatpush.bf16.msra.mxu2 %v3786_v46 }
0x27b7   : > { %3288 = vmatpush.bf16.msra.mxu2 %v3785_v49 }
0x280f   : > { %v3085_v51 = vpop.f32.mrf.mxu2 }
0x2810   : > { %v3089_v52 = vpack.c.bf16 %v3085_v51, %v3085_v51 }
0x2812   : > { %3697 = vmatmul.msk.bf16.vlgmr.msrb.gmra.mxu0 %vm500_vm1, %v3089_v52 }
0x2817   : > { %v3087_v47 = vpop.f32.mrf.mxu2 }
0x2819   : > { %v2933_v53 = vpop.f32.mrf.mxu1 }
0x281a   : > { %v2953_v48 = vadd.f32 %v4925_v8, %v2933_v53 }
0x2821   : > { %v2935_v54 = vpop.f32.mrf.mxu1 }
0x2829   : > { %v3028_v57 = vpop.f32.mrf.mxu1 }
0x282a   : > { %v3032_v59 = vadd.f32 %v3028_v57, %v2953_v48 }
0x2831   : > { %v3030_v61 = vpop.f32.mrf.mxu1 }
0x2832   : > { %v3876_v61 = vld [vmem:[%s5060_s9 + $0x26] ss:$0 sm:$0xff] }
0x288f   : > { %v3105_v40 = vpop.f32.mrf.mxu0 }
0x2890   : > { %v3109_v63 = vadd.f32 %v3105_v40, %v3032_v59 }
0x2892   : > { %v3111_v1 = vadd.f32 %v3871_v2, %v3109_v63 }
0x2894   : > { %v3112_v3 = vadd.f32 %v3111_v1, %v4891_v22  ;;  %v3779_v22 = vld [vmem:[%s5058_s7 + $0x30] sm:$0xff] }
0x2895   : > { %3171 = vmatpush.bf16.msrb.mxu1 %v3779_v22 }
0x2896   : > { %v3115_v21 = vsel %vm479_vm0, %v3112_v3, 0.0 }
0x2897   : > { %3116 = vadd.xlane.f32.xlu1 %v3115_v21  ;;  %v3107_v55 = vpop.f32.mrf.mxu0  ;;  %v3878_v21 = vld [vmem:[%s5060_s9 + $0x28] ss:$0 sm:$0xff] }
0x290a   : > { %v3117_v5 = vpop.xlane.xlu1 %3116 }
0x290b   : > { %v3118_v6 = vmul.f32 %v3117_v5, %v4293_v60 }
0x290d   : > { %v3119_v8 = vsub.f32 %v3112_v3, %v3118_v6 }
0x290f   : > { %v3120_v9 = vmul.f32 %v3119_v8, %v3119_v8 }
0x2911   : > { %v3121_v10 = vsel %vm479_vm0, %v3120_v9, 0.0 }
0x2912   : > { %3122 = vadd.xlane.f32.xlu2 %v3121_v10 }
0x2985   : > { %v3123_v12 = vpop.xlane.xlu2 %3122 }
0x2986   : > { %v3124_v14 = vmul.f32 %v3123_v12, %v4293_v60 }
0x2988   : > { %v3125_v16 = vadd.f32 1e-05, %v3124_v14 }
0x298a   : > { %3993 = vrsqrt.f32 %v3125_v16  ;;  %vm3132_vm2 = vweird.f32 %v3125_v16 }
0x2990   : > { %v3994_v17 = vpop.eup %3993 }
0x2991   : > { %v3127_v19 = vmul.f32 %v3994_v17, %v3125_v16  ;;  %vm3133_vm1 = vweird.f32 %v3994_v17 }
0x2992   : > { %vm3134_vm4 = vmor %vm3132_vm2, %vm3133_vm1 }
0x2993   : > { %v3128_v20 = vmul.f32 %v3994_v17, %v3127_v19 }
0x2995   : > { %v3129_v62 = vmul.f32 0.5, %v3128_v20 }
0x2997   : > { %v3130_v23 = vsub.f32 1.5, %v3129_v62 }
0x2999   : > { %v3131_v24 = vmul.f32 %v3994_v17, %v3130_v23 }
0x299b   : > { %v3135_v0 = vsel %vm3134_vm4, %v3994_v17, %v3131_v24 }
0x299c   : > { %v3136_v32 = vmul.f32 %v3135_v0, %v3119_v8 }
0x299e   : > { %v3138_v27 = vmul.f32 %v3872_v25, %v3136_v32 }
0x29a0   : > { %v3140_v28 = vadd.f32 %v3873_v26, %v3138_v27 }
0x29a2   : > { %v3146_v29 = vpack.c.bf16 %v3140_v28, %v3140_v28 }
0x29a4   : > { %3710 = vmatmul.msk.bf16.vlgmr.msrb.gmra.mxu1 %vm479_vm0, %v3146_v29 }
0x2a21   : > { %v3173_v58 = vpop.f32.mrf.mxu1 }
0x2a22   : > { %v3174_v31 = vadd.f32 %v3874_v4, %v3173_v58 }
0x2a24   : > { %v3177_v33 = vmax.f32 %v3174_v31, 0.0 }
0x2a26   : > { %v3187_v34 = vpack.c.bf16 %v3177_v33, %v3177_v33 }
0x2a28   : > { %3735 = vmatmul.msk.bf16.vlgmr.msrb.gmra.mxu3 %vm913_vm7, %v3187_v34 }
0x2a29   : > { %v3175_v7 = vpop.f32.mrf.mxu1 }
0x2aab   : > { %v3226_v36 = vpop.f32.mrf.mxu3 }
0x2aac   : > { %v3227_v37 = vadd.f32 %v3875_v35, %v3226_v36 }
0x2aae   : > { %v3230_v44 = vadd.f32 %v3227_v37, %v3140_v28 }
0x2ab0   : > { %v3233_v38 = vsel %vm479_vm0, %v3230_v44, 0.0 }
0x2ab1   : > { %3234 = vadd.xlane.f32.xlu0 %v3233_v38 }
0x2ab3   : > { %v3228_v39 = vpop.f32.mrf.mxu3 }
0x2b24   : > { %v3235_v41 = vpop.xlane.xlu0 %3234 }
0x2b25   : > { %v3236_v42 = vmul.f32 %v3235_v41, %v4293_v60 }
0x2b27   : > { %v3237_v43 = vsub.f32 %v3230_v44, %v3236_v42 }
0x2b29   : > { %v3238_v56 = vmul.f32 %v3237_v43, %v3237_v43 }
0x2b2b   : > { %v3239_v45 = vsel %vm479_vm0, %v3238_v56, 0.0 }
0x2b2c   : > { %3240 = vadd.xlane.f32.xlu1 %v3239_v45 }
0x2b9f   : > { %v3241_v50 = vpop.xlane.xlu1 %3240 }
0x2ba0   : > { %v3242_v51 = vmul.f32 %v3241_v50, %v4293_v60  ;;  %v3877_v60 = vld [vmem:[%s5060_s9 + $0x27] ss:$0 sm:$0xff] }
0x2ba2   : > { %v3243_v52 = vadd.f32 1e-05, %v3242_v51 }
0x2ba4   : > { %3995 = vrsqrt.f32 %v3243_v52  ;;  %vm3250_vm5 = vweird.f32 %v3243_v52 }
0x2baa   : > { %v3996_v47 = vpop.eup %3995 }
0x2bab   : > { %v3245_v53 = vmul.f32 %v3996_v47, %v3243_v52  ;;  %vm3251_vm7 = vweird.f32 %v3996_v47 }
0x2bac   : > { %vm3252_vm6 = vmor %vm3250_vm5, %vm3251_vm7 }
0x2bad   : > { %v3246_v54 = vmul.f32 %v3996_v47, %v3245_v53 }
0x2baf   : > { %v3247_v48 = vmul.f32 0.5, %v3246_v54 }
0x2bb1   : > { %v3248_v57 = vsub.f32 1.5, %v3247_v48 }
0x2bb3   : > { %v3249_v59 = vmul.f32 %v3996_v47, %v3248_v57 }
0x2bb5   : > { %v3253_v2 = vsel %vm3252_vm6, %v3996_v47, %v3249_v59 }
0x2bb6   : > { %v3254_v40 = vmul.f32 %v3253_v2, %v3237_v43 }
0x2bb8   : > { %v3256_v63 = vmul.f32 %v3876_v61, %v3254_v40 }
0x2bba   : > { %v3258_v1 = vadd.f32 %v3877_v60, %v3256_v63 }
0x2bbc   : > { %v3263_v3 = vpack.c.bf16 %v3258_v1, %v3258_v1 }
0x2bbe   : > { %3744 = vmatmul.msk.bf16.vlgmr.msra.gmra.mxu2 %vm479_vm0, %v3263_v3 }
0x2c41   : > { %v3290_v55 = vpop.f32.mrf.mxu2 }
0x2c42   : > { %v3291_v5 = vadd.f32 %v3878_v21, %v3290_v55 }
0x2c44   : > { %3294 = vst [vmem:[%s429_s17] sm:$0xff] %v3291_v5 }
0x2c45   : > { %4026 = shalt.err (!%p4023_p3)
}
0x2c46   : > { %3787 = dma.vmem_to_hbm [thread:$0]  (%p4173_p5), %s3309_s28, 128, %s3311_s23, %s3296_s0  }
0x2c49   : > { %v3292_v6 = vpop.f32.mrf.mxu2 }
0x2c4a PF: > { %s5122_s25 = sld [smem:[#allocation7_spill]] }
0x2c4b   : > { %s5123_s16 = sld [smem:[#allocation5_spill]] }
0x2c50   : > { %p3793_p4 = scmp.ge.s32.totalorder %s5122_s25, 2 }
0x2c51   : > { %s3322_s15 = sand.u32 1, %s5123_s16  }
0x2c52   : > { %p3790_p7 = pnand %p3793_p4, %p4177_p6  ;;  %s3323_s29 = scalar_lea.sflag [#allocation3], %s3322_s15 }
0x2c54   : > { %p3791_p8 = pneg %p3790_p7 }
0x2c56   : > { %4044 = dma.done.wait (%p3791_p8), %s3323_s29, 128  }
0x2c57   : > { %4046 = vsyncadd (%p3791_p8), %s3323_s29, 4294967168  ;;  %s5125_s20 = sld [smem:[#allocation8_spill]]  ;;  %s5128_s17 = smov %s4053_s18 }
0x2c58   : > { %s5126_s19 = sld [smem:[#allocation6_spill]] }
0x2c59   : > { %s5127_s24 = sld [smem:[#allocation9_spill]] }
0x2c5d   : > { %p21_p9 = scmp.ge.s32.totalorder %s5125_s20, 4  }
0x2c5e   : > { %s5129_s18 = smov %s5126_s19 }
0x2c5f   : > { %s5130_s19 = smov %s5127_s24  ;;  %23 = sbr.rel (!%p21_p9) target bundleno = 8 (0x8), region = 127 }
0x2c64   :  { %3329 = vsyncpa [#allocation3], 1 }
0x2c65   :  { %3331 = vsyncpa [#allocation3 + $0x1], 1 }

</bundles_post_ra>
